<compile_context>
chip_gen: v7x
topology: tpu7x:2x2x1
jax: 0.10.0
libtpu: 0.0.40
codegen_flags: <defaults>
</compile_context>

<pallas_src>
import functools
import math

import jax
import jax.numpy as jnp
from jax.experimental import pallas as pl
from jax.experimental.pallas import tpu as pltpu


def _round_up(v, m):
    return ((v + m - 1) // m) * m


# ----------------------------------------------------------------------------
# Fused kernel: GRU stack (PyTorch gate order r, z, n) + MHA + residual + proj
# ----------------------------------------------------------------------------
def _cadence_fused_kernel(num_layers, num_heads, hidden_dim, exact_softmax,
                          x_ref, *refs):
    # x_ref:       [bt, S, I]  (bf16, concatenated embeddings, batch-major block)
    # per layer:   w_ih [in, Gp] bf16, w_hh [H, Gp] bf16, b_ih [1, Gp] f32,
    #              b_hh [1, Gp] f32    (Gp = round_up(3H,128); cols [r|z|n|pad])
    # attention:   w_qkv [3, H, H] bf16, b_qkv [3, 1, H] f32,
    #              w_o [H, H] bf16, b_o [1, H] f32
    # projection:  w_p [H, Vp] bf16, b_p [1, Vp] f32
    # output:      logits_ref [bt, S, Vp] f32
    n_gru = 4 * num_layers
    gru_refs = refs[:n_gru]
    (wqkv_ref, bqkv_ref, wo_ref, bo_ref, wp_ref, bp_ref, logits_ref) = refs[n_gru:]

    bt, S, in_dim = x_ref.shape
    H = hidden_dim
    f32 = jnp.float32
    bf16 = jnp.bfloat16

    # ------------------------------------------------------------------ GRU --
    # Layer 0 rows are batch-major (b*S + s); layers >= 1 are fed time-major
    # (s*bt + b) so the per-step gate slice is a leading-axis slice.
    x_rows = x_ref[...].reshape(bt * S, in_dim)
    time_major = False
    h_list = []

    for layer in range(num_layers):
        w_ih, w_hh, b_ih, b_hh = gru_refs[4 * layer: 4 * layer + 4]

        # Hoisted input-side GEMM: ONE packed (rows, in) x (in, Gp) matmul for
        # the whole sequence and all three gates.
        gi = (jnp.dot(x_rows.astype(bf16), w_ih[...],
                      preferred_element_type=f32) + b_ih[...])
        Gp = gi.shape[-1]
        gi3 = gi.reshape(S, bt, Gp) if time_major else gi.reshape(bt, S, Gp)

        whh = w_hh[...]
        bhh = b_hh[...]

        h = jnp.zeros((bt, H), f32)
        h_list = []
        # Unrolled recurrence (short, static S): one packed h @ W_hh per step.
        # NOTE: for long sequences this should become a lax.fori_loop
        # (unroll=k) over a time-major scratch; full unroll is right at S=8.
        for t in range(S):
            g_i = gi3[t] if time_major else gi3[:, t, :]          # [bt, Gp]
            gh = (jnp.dot(h.astype(bf16), whh,
                          preferred_element_type=f32) + bhh)       # [bt, Gp]
            r = jax.nn.sigmoid(g_i[:, 0:H] + gh[:, 0:H])
            z = jax.nn.sigmoid(g_i[:, H:2 * H] + gh[:, H:2 * H])
            # b_hn sits inside r * (.) exactly as in PyTorch's GRU.
            n = jnp.tanh(g_i[:, 2 * H:3 * H] + r * gh[:, 2 * H:3 * H])
            h = (1.0 - z) * n + z * h
            h_list.append(h)                                       # stays in regs

        if layer + 1 < num_layers:
            # Next layer consumes the hidden sequence time-major; one bulk
            # assembly (no per-step scratch stores).  Inter-layer GRU dropout
            # is identity in eval mode.
            x_rows = jnp.concatenate([hh[None] for hh in h_list],
                                     axis=0).reshape(S * bt, H)
            time_major = True

    # gru_out, batch-major [bt, S, H]: one bulk assembly from the register-
    # resident per-step states.
    y_bm = jnp.concatenate([hh[:, None, :] for hh in h_list], axis=1)
    x2 = y_bm.reshape(bt * S, H)                                   # rows b*S + s

    # ---------------------------------------------- attention + residual ----
    N = bt * S
    hd = H // num_heads
    scale = 1.0 / math.sqrt(hd)

    x2b = x2.astype(bf16)
    q = jnp.dot(x2b, wqkv_ref[0], preferred_element_type=f32) + bqkv_ref[0]
    k = jnp.dot(x2b, wqkv_ref[1], preferred_element_type=f32) + bqkv_ref[1]
    v = jnp.dot(x2b, wqkv_ref[2], preferred_element_type=f32) + bqkv_ref[2]

    def split_heads(t):
        # [N, H] -> [num_heads * bt, S, hd]  (per-(head, batch) groups)
        return jnp.concatenate(
            [t[:, i * hd:(i + 1) * hd].reshape(bt, S, hd)
             for i in range(num_heads)], axis=0)

    qb = split_heads(q).astype(bf16)
    kb = split_heads(k).astype(bf16)
    vb = split_heads(v).astype(bf16)

    # Single batched einsum over all (head, batch) groups.
    s_att = jnp.einsum('bqd,bkd->bqk', qb, kb,
                       preferred_element_type=f32) * scale
    s_att = s_att - jnp.max(s_att, axis=-1, keepdims=True)
    p = jnp.exp(s_att)
    denom = jnp.sum(p, axis=-1, keepdims=True)
    if exact_softmax:
        p = p / denom
    else:
        p = p * pl.reciprocal(denom, approx=True)
    attn = jnp.einsum('bqk,bkd->bqd', p.astype(bf16), vb,
                      preferred_element_type=f32)

    # Merge heads back to [N, H] in concat order (head-major columns).
    attn_c = jnp.concatenate(
        [attn[i * bt:(i + 1) * bt].reshape(N, hd) for i in range(num_heads)],
        axis=-1)

    attn_out = (jnp.dot(attn_c.astype(bf16), wo_ref[...],
                        preferred_element_type=f32) + bo_ref[...])
    combined = x2 + attn_out                          # gru_out + attended (residual)
    # module dropout is identity in eval mode
    logits = (jnp.dot(combined.astype(bf16), wp_ref[...],
                      preferred_element_type=f32) + bp_ref[...])
    logits_ref[...] = logits.reshape(bt, S, -1)       # one bulk, lane-dense store


# ----------------------------------------------------------------------------
# pallas_call wrapper (grid over batch, full-weight blocks)
# ----------------------------------------------------------------------------
def _const_index_map(ndim):
    return lambda i: (0,) * ndim


def _pick_batch_tile(B, S, in_dim, H, Vp):
    """Largest batch tile that (a) leaves >=2 grid steps when B>=2 (v7x dual
    TensorCore), (b) fits a conservative per-block VMEM estimate (safe on
    v7x's 64 MiB VMEM), (c) keeps the unrolled recurrence live-ranges sane."""
    Gp = _round_up(3 * H, 128)

    def vmem_est(bt):
        rows = bt * S
        est = 2 * rows * in_dim * 2        # x block (bf16), double-buffered
        est += 2 * rows * Vp * 4           # logits block (f32), double-buffered
        est += rows * Gp * 4               # packed gate pre-activations
        est += 6 * rows * H * 4            # hidden seq / q / k / v / attn work
        est += rows * Vp * 4               # logits value before the bulk store
        return est

    budget = 40 * 1024 * 1024
    divs = [d for d in range(1, B + 1) if B % d == 0 and d <= 256]
    cand = [d for d in divs if B // d >= 2] or divs    # keep grid >= 2 if possible
    fit = [d for d in cand if vmem_est(d) <= budget] or [min(cand)]
    return max(fit)


def cadence_fused_forward(x, gru_layers, attn_params, proj_params,
                          num_heads=8, exact_softmax=False):
    """x: [B, S, I] concatenated embeddings (bf16). Returns padded logits
    [B, S, Vp] (f32)."""
    B, S, I = x.shape
    H = attn_params['w_o'].shape[0]
    Vp = proj_params['w'].shape[-1]
    L = len(gru_layers)

    bt = _pick_batch_tile(B, S, I, H, Vp)
    grid = (B // bt,)

    inputs = [x]
    in_specs = [pl.BlockSpec((bt, S, I), lambda i: (i, 0, 0))]
    for layer in gru_layers:
        for name in ('w_ih', 'w_hh', 'b_ih', 'b_hh'):
            arr = layer[name]
            inputs.append(arr)
            in_specs.append(pl.BlockSpec(arr.shape, _const_index_map(arr.ndim)))
    for name in ('w_qkv', 'b_qkv', 'w_o', 'b_o'):
        arr = attn_params[name]
        inputs.append(arr)
        in_specs.append(pl.BlockSpec(arr.shape, _const_index_map(arr.ndim)))
    for name in ('w', 'b'):
        arr = proj_params[name]
        inputs.append(arr)
        in_specs.append(pl.BlockSpec(arr.shape, _const_index_map(arr.ndim)))

    kernel = functools.partial(_cadence_fused_kernel, L, num_heads, H,
                               exact_softmax)

    return pl.pallas_call(
        kernel,
        out_shape=jax.ShapeDtypeStruct((B, S, Vp), jnp.float32),
        grid=grid,
        in_specs=in_specs,
        out_specs=pl.BlockSpec((bt, S, Vp), lambda i: (i, 0, 0)),
        compiler_params=pltpu.CompilerParams(
            dimension_semantics=("parallel",),
            # > 16/32 MiB scoped defaults (v5e/v6e), < 64 MiB physical (v7x).
            vmem_limit_bytes=48 * 1024 * 1024),
    )(*inputs)


# ----------------------------------------------------------------------------
# Parameter initialization (deterministic, synthetic; packed-gate layout)
#
# Layouts (for loading real PyTorch checkpoints, weights must be converted):
#   GRU:  weight_ih_l{k} [3H, in] -> transpose -> [in, 3H] -> pad cols to Gp
#         (gate order r, z, n kept as in PyTorch); same for weight_hh / biases.
#   MHA:  in_proj_weight [3H, H] -> split into q/k/v, transpose to [3, H, H];
#         out_proj -> w_o [H, H] transposed.
#   Proj: output_projection.weight [V, H] -> transpose -> [H, V] -> pad to Vp.
# ----------------------------------------------------------------------------
def init_params(key, vocab_size, num_categories, config):
    E = config['embedding_dim']
    H = config['hidden_dim']
    L = config['num_layers']
    Vp = _round_up(vocab_size, 128)          # lane-dense padded vocab
    Gp = _round_up(3 * H, 128)               # lane-dense packed gates [r|z|n|pad]
    keys = iter(jax.random.split(key, 128))
    f32 = jnp.float32
    bf16 = jnp.bfloat16

    def w(shape, s=0.05):
        return jax.random.normal(next(keys), shape, f32) * s

    def packed(rows, scale=0.05, dtype=f32):
        arr = jnp.zeros((rows, Gp), f32).at[:, :3 * H].set(w((rows, 3 * H), scale))
        return arr.astype(dtype)

    def gru_stack(input_dim):
        layers = []
        d = input_dim
        for _ in range(L):
            layers.append({
                'w_ih': packed(d, dtype=bf16),
                'w_hh': packed(H, dtype=bf16),
                'b_ih': packed(1, dtype=f32),
                'b_hh': packed(1, dtype=f32),
            })
            d = H
        return layers

    I = E + E // 2
    wp = jnp.zeros((H, Vp), f32).at[:, :vocab_size].set(w((H, vocab_size)))
    bp = jnp.zeros((1, Vp), f32).at[:, :vocab_size].set(w((1, vocab_size)))

    return {
        'word_embedding': w((vocab_size, E)),
        'category_embedding': w((num_categories, E // 2)),
        'query_gru': gru_stack(I),
        'catalog_gru': gru_stack(I),
        'attn': {
            'w_qkv': w((3, H, H)).astype(bf16),   # q / k / v slabs, pre-transposed
            'b_qkv': w((3, 1, H)),
            'w_o': w((H, H)).astype(bf16),
            'b_o': w((1, H)),
        },
        'out_proj': {'w': wp.astype(bf16), 'b': bp},
    }


# ----------------------------------------------------------------------------
# Full forward (mirrors RealCADENCEModel.forward, eval mode)
# ----------------------------------------------------------------------------
def cadence_forward(params, input_ids, category_ids, target_ids=None,
                    model_type='query', num_heads=8, exact_softmax=False):
    vocab_size = params['word_embedding'].shape[0]

    # Embedding gathers + concat: plain-JAX glue (not the hot path).
    word_embeds = params['word_embedding'][input_ids]          # [B, S, E]
    cat_embeds = params['category_embedding'][category_ids]    # [B, S, E//2]
    x = jnp.concatenate([word_embeds, cat_embeds], axis=-1)    # [B, S, E + E//2]
    x = x.astype(jnp.bfloat16)                                 # halve input DMA

    gru_layers = (params['query_gru'] if model_type == 'query'
                  else params['catalog_gru'])

    logits_p = cadence_fused_forward(x, gru_layers, params['attn'],
                                     params['out_proj'], num_heads,
                                     exact_softmax)
    # Padded vocab columns are exactly zero; slice them off before any softmax.
    logits = logits_p[..., :vocab_size]

    result = {'logits': logits}
    if target_ids is not None:
        # cross-entropy with ignore_index=0 (tiny; plain JAX glue)
        logp = jax.nn.log_softmax(logits.reshape(-1, vocab_size), axis=-1)
        tgt = target_ids.reshape(-1)
        mask = (tgt != 0).astype(jnp.float32)
        nll = -jnp.take_along_axis(logp, tgt[:, None], axis=1)[:, 0]
        result['loss'] = jnp.sum(nll * mask) / jnp.maximum(jnp.sum(mask), 1.0)
    return result


# ----------------------------------------------------------------------------
if __name__ == "__main__":
    # Small, forward-consistent shapes
    vocab_size = 64
    num_categories = 8
    config = {'embedding_dim': 32, 'hidden_dim': 32, 'num_layers': 2,
              'dropout': 0.3, 'attention_dim': 32}
    B, S = 2, 8

    key = jax.random.PRNGKey(0)
    k_param, k_in, k_cat = jax.random.split(key, 3)

    params = init_params(k_param, vocab_size, num_categories, config)
    input_ids = jax.random.randint(k_in, (B, S), 0, vocab_size, dtype=jnp.int32)
    category_ids = jax.random.randint(k_cat, (B, S), 0, num_categories,
                                      dtype=jnp.int32)

    out = cadence_forward(params, input_ids, category_ids, target_ids=None,
                          model_type='query')
    logits = jax.block_until_ready(out['logits'])
    assert logits.shape == (B, S, vocab_size)
    assert bool(jnp.all(jnp.isfinite(logits)))
    print("KERNEL_OK")
</pallas_src>

<mosaic_0001>
module attributes {stable_mosaic.version = 11 : i64} {
  func.func @_cadence_fused_kernel(%arg0: i32, %arg1: memref<1x8x48xbf16, #tpu.memory_space<vmem>>, %arg2: memref<48x128xbf16, #tpu.memory_space<vmem>>, %arg3: memref<32x128xbf16, #tpu.memory_space<vmem>>, %arg4: memref<1x128xf32, #tpu.memory_space<vmem>>, %arg5: memref<1x128xf32, #tpu.memory_space<vmem>>, %arg6: memref<32x128xbf16, #tpu.memory_space<vmem>>, %arg7: memref<32x128xbf16, #tpu.memory_space<vmem>>, %arg8: memref<1x128xf32, #tpu.memory_space<vmem>>, %arg9: memref<1x128xf32, #tpu.memory_space<vmem>>, %arg10: memref<3x32x32xbf16, #tpu.memory_space<vmem>>, %arg11: memref<3x1x32xf32, #tpu.memory_space<vmem>>, %arg12: memref<32x32xbf16, #tpu.memory_space<vmem>>, %arg13: memref<1x32xf32, #tpu.memory_space<vmem>>, %arg14: memref<32x128xbf16, #tpu.memory_space<vmem>>, %arg15: memref<1x128xf32, #tpu.memory_space<vmem>>, %arg16: memref<1x8x128xf32, #tpu.memory_space<vmem>>) attributes {dimension_semantics = [#tpu.dimension_semantics<parallel>], iteration_bounds = array<i64: 2>, scalar_prefetch = 0 : i64, scratch_operands = 0 : i64, tpu.core_type = #tpu.core_type<tc>, window_params = [{transform_indices = @transform_0, window_bounds = array<i64: 1, 8, 48>}, {pipeline_mode = #tpu.pipeline_mode<synchronous>, transform_indices = @transform_1, window_bounds = array<i64: 48, 128>}, {pipeline_mode = #tpu.pipeline_mode<synchronous>, transform_indices = @transform_2, window_bounds = array<i64: 32, 128>}, {pipeline_mode = #tpu.pipeline_mode<synchronous>, transform_indices = @transform_3, window_bounds = array<i64: 1, 128>}, {pipeline_mode = #tpu.pipeline_mode<synchronous>, transform_indices = @transform_4, window_bounds = array<i64: 1, 128>}, {pipeline_mode = #tpu.pipeline_mode<synchronous>, transform_indices = @transform_5, window_bounds = array<i64: 32, 128>}, {pipeline_mode = #tpu.pipeline_mode<synchronous>, transform_indices = @transform_6, window_bounds = array<i64: 32, 128>}, {pipeline_mode = #tpu.pipeline_mode<synchronous>, transform_indices = @transform_7, window_bounds = array<i64: 1, 128>}, {pipeline_mode = #tpu.pipeline_mode<synchronous>, transform_indices = @transform_8, window_bounds = array<i64: 1, 128>}, {pipeline_mode = #tpu.pipeline_mode<synchronous>, transform_indices = @transform_9, window_bounds = array<i64: 3, 32, 32>}, {pipeline_mode = #tpu.pipeline_mode<synchronous>, transform_indices = @transform_10, window_bounds = array<i64: 3, 1, 32>}, {pipeline_mode = #tpu.pipeline_mode<synchronous>, transform_indices = @transform_11, window_bounds = array<i64: 32, 32>}, {pipeline_mode = #tpu.pipeline_mode<synchronous>, transform_indices = @transform_12, window_bounds = array<i64: 1, 32>}, {pipeline_mode = #tpu.pipeline_mode<synchronous>, transform_indices = @transform_13, window_bounds = array<i64: 32, 128>}, {pipeline_mode = #tpu.pipeline_mode<synchronous>, transform_indices = @transform_14, window_bounds = array<i64: 1, 128>}, {transform_indices = @transform_15, window_bounds = array<i64: 1, 8, 128>}]} {
    %c0 = arith.constant 0 : index
    %c0_0 = arith.constant 0 : index
    %c0_1 = arith.constant 0 : index
    %0 = vector.load %arg1[%c0, %c0_0, %c0_1] : memref<1x8x48xbf16, #tpu.memory_space<vmem>>, vector<1x8x48xbf16>
    %1 = vector.shape_cast %0 : vector<1x8x48xbf16> to vector<8x48xbf16>
    %c0_2 = arith.constant 0 : index
    %c0_3 = arith.constant 0 : index
    %2 = vector.load %arg2[%c0_2, %c0_3] : memref<48x128xbf16, #tpu.memory_space<vmem>>, vector<48x128xbf16>
    %cst = arith.constant dense<0.000000e+00> : vector<8x128xf32>
    %3 = tpu.matmul %1, %2, %cst {dimension_numbers = #tpu.dot_dimension_numbers<[1], [0], [0], [1], [0, 0, 1, 1], [], []>} : vector<8x48xbf16>, vector<48x128xbf16>, vector<8x128xf32> -> vector<8x128xf32>
    %c0_4 = arith.constant 0 : index
    %c0_5 = arith.constant 0 : index
    %4 = vector.load %arg4[%c0_4, %c0_5] : memref<1x128xf32, #tpu.memory_space<vmem>>, vector<1x128xf32>
    %5 = vector.broadcast %4 : vector<1x128xf32> to vector<8x128xf32>
    %6 = arith.addf %3, %5 : vector<8x128xf32>
    %7 = vector.shape_cast %6 : vector<8x128xf32> to vector<1x8x128xf32>
    %c0_6 = arith.constant 0 : index
    %c0_7 = arith.constant 0 : index
    %8 = vector.load %arg3[%c0_6, %c0_7] : memref<32x128xbf16, #tpu.memory_space<vmem>>, vector<32x128xbf16>
    %c0_8 = arith.constant 0 : index
    %c0_9 = arith.constant 0 : index
    %9 = vector.load %arg5[%c0_8, %c0_9] : memref<1x128xf32, #tpu.memory_space<vmem>>, vector<1x128xf32>
    %cst_10 = arith.constant 0.000000e+00 : f32
    %10 = vector.broadcast %cst_10 : f32 to vector<1x32xf32>
    %11 = vector.extract_strided_slice %7 {offsets = [0, 0, 0], sizes = [1, 1, 128], strides = [1, 1, 1]} : vector<1x8x128xf32> to vector<1x1x128xf32>
    %12 = vector.shape_cast %11 : vector<1x1x128xf32> to vector<1x128xf32>
    %13 = arith.truncf %10 : vector<1x32xf32> to vector<1x32xbf16>
    %cst_11 = arith.constant dense<0.000000e+00> : vector<1x128xf32>
    %14 = tpu.matmul %13, %8, %cst_11 {dimension_numbers = #tpu.dot_dimension_numbers<[1], [0], [0], [1], [0, 0, 1, 1], [], []>} : vector<1x32xbf16>, vector<32x128xbf16>, vector<1x128xf32> -> vector<1x128xf32>
    %15 = arith.addf %14, %9 : vector<1x128xf32>
    %16 = vector.extract_strided_slice %12 {offsets = [0, 0], sizes = [1, 32], strides = [1, 1]} : vector<1x128xf32> to vector<1x32xf32>
    %17 = vector.extract_strided_slice %15 {offsets = [0, 0], sizes = [1, 32], strides = [1, 1]} : vector<1x128xf32> to vector<1x32xf32>
    %18 = arith.addf %16, %17 : vector<1x32xf32>
    %19 = arith.negf %18 : vector<1x32xf32>
    %20 = math.exp %19 : vector<1x32xf32>
    %cst_12 = arith.constant 1.000000e+00 : f32
    %21 = vector.broadcast %cst_12 : f32 to vector<1x32xf32>
    %22 = arith.addf %21, %20 : vector<1x32xf32>
    %23 = arith.divf %21, %22 : vector<1x32xf32>
    %24 = vector.extract_strided_slice %12 {offsets = [0, 32], sizes = [1, 32], strides = [1, 1]} : vector<1x128xf32> to vector<1x32xf32>
    %25 = vector.extract_strided_slice %15 {offsets = [0, 32], sizes = [1, 32], strides = [1, 1]} : vector<1x128xf32> to vector<1x32xf32>
    %26 = arith.addf %24, %25 : vector<1x32xf32>
    %27 = arith.negf %26 : vector<1x32xf32>
    %28 = math.exp %27 : vector<1x32xf32>
    %cst_13 = arith.constant 1.000000e+00 : f32
    %29 = vector.broadcast %cst_13 : f32 to vector<1x32xf32>
    %30 = arith.addf %29, %28 : vector<1x32xf32>
    %31 = arith.divf %29, %30 : vector<1x32xf32>
    %32 = vector.extract_strided_slice %12 {offsets = [0, 64], sizes = [1, 32], strides = [1, 1]} : vector<1x128xf32> to vector<1x32xf32>
    %33 = vector.extract_strided_slice %15 {offsets = [0, 64], sizes = [1, 32], strides = [1, 1]} : vector<1x128xf32> to vector<1x32xf32>
    %34 = arith.mulf %23, %33 : vector<1x32xf32>
    %35 = arith.addf %32, %34 : vector<1x32xf32>
    %36 = math.tanh %35 : vector<1x32xf32>
    %cst_14 = arith.constant 1.000000e+00 : f32
    %37 = vector.broadcast %cst_14 : f32 to vector<1x32xf32>
    %38 = arith.subf %37, %31 : vector<1x32xf32>
    %39 = arith.mulf %38, %36 : vector<1x32xf32>
    %40 = arith.mulf %31, %10 : vector<1x32xf32>
    %41 = arith.addf %39, %40 : vector<1x32xf32>
    %42 = vector.extract_strided_slice %7 {offsets = [0, 1, 0], sizes = [1, 1, 128], strides = [1, 1, 1]} : vector<1x8x128xf32> to vector<1x1x128xf32>
    %43 = vector.shape_cast %42 : vector<1x1x128xf32> to vector<1x128xf32>
    %44 = arith.truncf %41 : vector<1x32xf32> to vector<1x32xbf16>
    %cst_15 = arith.constant dense<0.000000e+00> : vector<1x128xf32>
    %45 = tpu.matmul %44, %8, %cst_15 {dimension_numbers = #tpu.dot_dimension_numbers<[1], [0], [0], [1], [0, 0, 1, 1], [], []>} : vector<1x32xbf16>, vector<32x128xbf16>, vector<1x128xf32> -> vector<1x128xf32>
    %46 = arith.addf %45, %9 : vector<1x128xf32>
    %47 = vector.extract_strided_slice %43 {offsets = [0, 0], sizes = [1, 32], strides = [1, 1]} : vector<1x128xf32> to vector<1x32xf32>
    %48 = vector.extract_strided_slice %46 {offsets = [0, 0], sizes = [1, 32], strides = [1, 1]} : vector<1x128xf32> to vector<1x32xf32>
    %49 = arith.addf %47, %48 : vector<1x32xf32>
    %50 = arith.negf %49 : vector<1x32xf32>
    %51 = math.exp %50 : vector<1x32xf32>
    %cst_16 = arith.constant 1.000000e+00 : f32
    %52 = vector.broadcast %cst_16 : f32 to vector<1x32xf32>
    %53 = arith.addf %52, %51 : vector<1x32xf32>
    %54 = arith.divf %52, %53 : vector<1x32xf32>
    %55 = vector.extract_strided_slice %43 {offsets = [0, 32], sizes = [1, 32], strides = [1, 1]} : vector<1x128xf32> to vector<1x32xf32>
    %56 = vector.extract_strided_slice %46 {offsets = [0, 32], sizes = [1, 32], strides = [1, 1]} : vector<1x128xf32> to vector<1x32xf32>
    %57 = arith.addf %55, %56 : vector<1x32xf32>
    %58 = arith.negf %57 : vector<1x32xf32>
    %59 = math.exp %58 : vector<1x32xf32>
    %cst_17 = arith.constant 1.000000e+00 : f32
    %60 = vector.broadcast %cst_17 : f32 to vector<1x32xf32>
    %61 = arith.addf %60, %59 : vector<1x32xf32>
    %62 = arith.divf %60, %61 : vector<1x32xf32>
    %63 = vector.extract_strided_slice %43 {offsets = [0, 64], sizes = [1, 32], strides = [1, 1]} : vector<1x128xf32> to vector<1x32xf32>
    %64 = vector.extract_strided_slice %46 {offsets = [0, 64], sizes = [1, 32], strides = [1, 1]} : vector<1x128xf32> to vector<1x32xf32>
    %65 = arith.mulf %54, %64 : vector<1x32xf32>
    %66 = arith.addf %63, %65 : vector<1x32xf32>
    %67 = math.tanh %66 : vector<1x32xf32>
    %cst_18 = arith.constant 1.000000e+00 : f32
    %68 = vector.broadcast %cst_18 : f32 to vector<1x32xf32>
    %69 = arith.subf %68, %62 : vector<1x32xf32>
    %70 = arith.mulf %69, %67 : vector<1x32xf32>
    %71 = arith.mulf %62, %41 : vector<1x32xf32>
    %72 = arith.addf %70, %71 : vector<1x32xf32>
    %73 = vector.extract_strided_slice %7 {offsets = [0, 2, 0], sizes = [1, 1, 128], strides = [1, 1, 1]} : vector<1x8x128xf32> to vector<1x1x128xf32>
    %74 = vector.shape_cast %73 : vector<1x1x128xf32> to vector<1x128xf32>
    %75 = arith.truncf %72 : vector<1x32xf32> to vector<1x32xbf16>
    %cst_19 = arith.constant dense<0.000000e+00> : vector<1x128xf32>
    %76 = tpu.matmul %75, %8, %cst_19 {dimension_numbers = #tpu.dot_dimension_numbers<[1], [0], [0], [1], [0, 0, 1, 1], [], []>} : vector<1x32xbf16>, vector<32x128xbf16>, vector<1x128xf32> -> vector<1x128xf32>
    %77 = arith.addf %76, %9 : vector<1x128xf32>
    %78 = vector.extract_strided_slice %74 {offsets = [0, 0], sizes = [1, 32], strides = [1, 1]} : vector<1x128xf32> to vector<1x32xf32>
    %79 = vector.extract_strided_slice %77 {offsets = [0, 0], sizes = [1, 32], strides = [1, 1]} : vector<1x128xf32> to vector<1x32xf32>
    %80 = arith.addf %78, %79 : vector<1x32xf32>
    %81 = arith.negf %80 : vector<1x32xf32>
    %82 = math.exp %81 : vector<1x32xf32>
    %cst_20 = arith.constant 1.000000e+00 : f32
    %83 = vector.broadcast %cst_20 : f32 to vector<1x32xf32>
    %84 = arith.addf %83, %82 : vector<1x32xf32>
    %85 = arith.divf %83, %84 : vector<1x32xf32>
    %86 = vector.extract_strided_slice %74 {offsets = [0, 32], sizes = [1, 32], strides = [1, 1]} : vector<1x128xf32> to vector<1x32xf32>
    %87 = vector.extract_strided_slice %77 {offsets = [0, 32], sizes = [1, 32], strides = [1, 1]} : vector<1x128xf32> to vector<1x32xf32>
    %88 = arith.addf %86, %87 : vector<1x32xf32>
    %89 = arith.negf %88 : vector<1x32xf32>
    %90 = math.exp %89 : vector<1x32xf32>
    %cst_21 = arith.constant 1.000000e+00 : f32
    %91 = vector.broadcast %cst_21 : f32 to vector<1x32xf32>
    %92 = arith.addf %91, %90 : vector<1x32xf32>
    %93 = arith.divf %91, %92 : vector<1x32xf32>
    %94 = vector.extract_strided_slice %74 {offsets = [0, 64], sizes = [1, 32], strides = [1, 1]} : vector<1x128xf32> to vector<1x32xf32>
    %95 = vector.extract_strided_slice %77 {offsets = [0, 64], sizes = [1, 32], strides = [1, 1]} : vector<1x128xf32> to vector<1x32xf32>
    %96 = arith.mulf %85, %95 : vector<1x32xf32>
    %97 = arith.addf %94, %96 : vector<1x32xf32>
    %98 = math.tanh %97 : vector<1x32xf32>
    %cst_22 = arith.constant 1.000000e+00 : f32
    %99 = vector.broadcast %cst_22 : f32 to vector<1x32xf32>
    %100 = arith.subf %99, %93 : vector<1x32xf32>
    %101 = arith.mulf %100, %98 : vector<1x32xf32>
    %102 = arith.mulf %93, %72 : vector<1x32xf32>
    %103 = arith.addf %101, %102 : vector<1x32xf32>
    %104 = vector.extract_strided_slice %7 {offsets = [0, 3, 0], sizes = [1, 1, 128], strides = [1, 1, 1]} : vector<1x8x128xf32> to vector<1x1x128xf32>
    %105 = vector.shape_cast %104 : vector<1x1x128xf32> to vector<1x128xf32>
    %106 = arith.truncf %103 : vector<1x32xf32> to vector<1x32xbf16>
    %cst_23 = arith.constant dense<0.000000e+00> : vector<1x128xf32>
    %107 = tpu.matmul %106, %8, %cst_23 {dimension_numbers = #tpu.dot_dimension_numbers<[1], [0], [0], [1], [0, 0, 1, 1], [], []>} : vector<1x32xbf16>, vector<32x128xbf16>, vector<1x128xf32> -> vector<1x128xf32>
    %108 = arith.addf %107, %9 : vector<1x128xf32>
    %109 = vector.extract_strided_slice %105 {offsets = [0, 0], sizes = [1, 32], strides = [1, 1]} : vector<1x128xf32> to vector<1x32xf32>
    %110 = vector.extract_strided_slice %108 {offsets = [0, 0], sizes = [1, 32], strides = [1, 1]} : vector<1x128xf32> to vector<1x32xf32>
    %111 = arith.addf %109, %110 : vector<1x32xf32>
    %112 = arith.negf %111 : vector<1x32xf32>
    %113 = math.exp %112 : vector<1x32xf32>
    %cst_24 = arith.constant 1.000000e+00 : f32
    %114 = vector.broadcast %cst_24 : f32 to vector<1x32xf32>
    %115 = arith.addf %114, %113 : vector<1x32xf32>
    %116 = arith.divf %114, %115 : vector<1x32xf32>
    %117 = vector.extract_strided_slice %105 {offsets = [0, 32], sizes = [1, 32], strides = [1, 1]} : vector<1x128xf32> to vector<1x32xf32>
    %118 = vector.extract_strided_slice %108 {offsets = [0, 32], sizes = [1, 32], strides = [1, 1]} : vector<1x128xf32> to vector<1x32xf32>
    %119 = arith.addf %117, %118 : vector<1x32xf32>
    %120 = arith.negf %119 : vector<1x32xf32>
    %121 = math.exp %120 : vector<1x32xf32>
    %cst_25 = arith.constant 1.000000e+00 : f32
    %122 = vector.broadcast %cst_25 : f32 to vector<1x32xf32>
    %123 = arith.addf %122, %121 : vector<1x32xf32>
    %124 = arith.divf %122, %123 : vector<1x32xf32>
    %125 = vector.extract_strided_slice %105 {offsets = [0, 64], sizes = [1, 32], strides = [1, 1]} : vector<1x128xf32> to vector<1x32xf32>
    %126 = vector.extract_strided_slice %108 {offsets = [0, 64], sizes = [1, 32], strides = [1, 1]} : vector<1x128xf32> to vector<1x32xf32>
    %127 = arith.mulf %116, %126 : vector<1x32xf32>
    %128 = arith.addf %125, %127 : vector<1x32xf32>
    %129 = math.tanh %128 : vector<1x32xf32>
    %cst_26 = arith.constant 1.000000e+00 : f32
    %130 = vector.broadcast %cst_26 : f32 to vector<1x32xf32>
    %131 = arith.subf %130, %124 : vector<1x32xf32>
    %132 = arith.mulf %131, %129 : vector<1x32xf32>
    %133 = arith.mulf %124, %103 : vector<1x32xf32>
    %134 = arith.addf %132, %133 : vector<1x32xf32>
    %135 = vector.extract_strided_slice %7 {offsets = [0, 4, 0], sizes = [1, 1, 128], strides = [1, 1, 1]} : vector<1x8x128xf32> to vector<1x1x128xf32>
    %136 = vector.shape_cast %135 : vector<1x1x128xf32> to vector<1x128xf32>
    %137 = arith.truncf %134 : vector<1x32xf32> to vector<1x32xbf16>
    %cst_27 = arith.constant dense<0.000000e+00> : vector<1x128xf32>
    %138 = tpu.matmul %137, %8, %cst_27 {dimension_numbers = #tpu.dot_dimension_numbers<[1], [0], [0], [1], [0, 0, 1, 1], [], []>} : vector<1x32xbf16>, vector<32x128xbf16>, vector<1x128xf32> -> vector<1x128xf32>
    %139 = arith.addf %138, %9 : vector<1x128xf32>
    %140 = vector.extract_strided_slice %136 {offsets = [0, 0], sizes = [1, 32], strides = [1, 1]} : vector<1x128xf32> to vector<1x32xf32>
    %141 = vector.extract_strided_slice %139 {offsets = [0, 0], sizes = [1, 32], strides = [1, 1]} : vector<1x128xf32> to vector<1x32xf32>
    %142 = arith.addf %140, %141 : vector<1x32xf32>
    %143 = arith.negf %142 : vector<1x32xf32>
    %144 = math.exp %143 : vector<1x32xf32>
    %cst_28 = arith.constant 1.000000e+00 : f32
    %145 = vector.broadcast %cst_28 : f32 to vector<1x32xf32>
    %146 = arith.addf %145, %144 : vector<1x32xf32>
    %147 = arith.divf %145, %146 : vector<1x32xf32>
    %148 = vector.extract_strided_slice %136 {offsets = [0, 32], sizes = [1, 32], strides = [1, 1]} : vector<1x128xf32> to vector<1x32xf32>
    %149 = vector.extract_strided_slice %139 {offsets = [0, 32], sizes = [1, 32], strides = [1, 1]} : vector<1x128xf32> to vector<1x32xf32>
    %150 = arith.addf %148, %149 : vector<1x32xf32>
    %151 = arith.negf %150 : vector<1x32xf32>
    %152 = math.exp %151 : vector<1x32xf32>
    %cst_29 = arith.constant 1.000000e+00 : f32
    %153 = vector.broadcast %cst_29 : f32 to vector<1x32xf32>
    %154 = arith.addf %153, %152 : vector<1x32xf32>
    %155 = arith.divf %153, %154 : vector<1x32xf32>
    %156 = vector.extract_strided_slice %136 {offsets = [0, 64], sizes = [1, 32], strides = [1, 1]} : vector<1x128xf32> to vector<1x32xf32>
    %157 = vector.extract_strided_slice %139 {offsets = [0, 64], sizes = [1, 32], strides = [1, 1]} : vector<1x128xf32> to vector<1x32xf32>
    %158 = arith.mulf %147, %157 : vector<1x32xf32>
    %159 = arith.addf %156, %158 : vector<1x32xf32>
    %160 = math.tanh %159 : vector<1x32xf32>
    %cst_30 = arith.constant 1.000000e+00 : f32
    %161 = vector.broadcast %cst_30 : f32 to vector<1x32xf32>
    %162 = arith.subf %161, %155 : vector<1x32xf32>
    %163 = arith.mulf %162, %160 : vector<1x32xf32>
    %164 = arith.mulf %155, %134 : vector<1x32xf32>
    %165 = arith.addf %163, %164 : vector<1x32xf32>
    %166 = vector.extract_strided_slice %7 {offsets = [0, 5, 0], sizes = [1, 1, 128], strides = [1, 1, 1]} : vector<1x8x128xf32> to vector<1x1x128xf32>
    %167 = vector.shape_cast %166 : vector<1x1x128xf32> to vector<1x128xf32>
    %168 = arith.truncf %165 : vector<1x32xf32> to vector<1x32xbf16>
    %cst_31 = arith.constant dense<0.000000e+00> : vector<1x128xf32>
    %169 = tpu.matmul %168, %8, %cst_31 {dimension_numbers = #tpu.dot_dimension_numbers<[1], [0], [0], [1], [0, 0, 1, 1], [], []>} : vector<1x32xbf16>, vector<32x128xbf16>, vector<1x128xf32> -> vector<1x128xf32>
    %170 = arith.addf %169, %9 : vector<1x128xf32>
    %171 = vector.extract_strided_slice %167 {offsets = [0, 0], sizes = [1, 32], strides = [1, 1]} : vector<1x128xf32> to vector<1x32xf32>
    %172 = vector.extract_strided_slice %170 {offsets = [0, 0], sizes = [1, 32], strides = [1, 1]} : vector<1x128xf32> to vector<1x32xf32>
    %173 = arith.addf %171, %172 : vector<1x32xf32>
    %174 = arith.negf %173 : vector<1x32xf32>
    %175 = math.exp %174 : vector<1x32xf32>
    %cst_32 = arith.constant 1.000000e+00 : f32
    %176 = vector.broadcast %cst_32 : f32 to vector<1x32xf32>
    %177 = arith.addf %176, %175 : vector<1x32xf32>
    %178 = arith.divf %176, %177 : vector<1x32xf32>
    %179 = vector.extract_strided_slice %167 {offsets = [0, 32], sizes = [1, 32], strides = [1, 1]} : vector<1x128xf32> to vector<1x32xf32>
    %180 = vector.extract_strided_slice %170 {offsets = [0, 32], sizes = [1, 32], strides = [1, 1]} : vector<1x128xf32> to vector<1x32xf32>
    %181 = arith.addf %179, %180 : vector<1x32xf32>
    %182 = arith.negf %181 : vector<1x32xf32>
    %183 = math.exp %182 : vector<1x32xf32>
    %cst_33 = arith.constant 1.000000e+00 : f32
    %184 = vector.broadcast %cst_33 : f32 to vector<1x32xf32>
    %185 = arith.addf %184, %183 : vector<1x32xf32>
    %186 = arith.divf %184, %185 : vector<1x32xf32>
    %187 = vector.extract_strided_slice %167 {offsets = [0, 64], sizes = [1, 32], strides = [1, 1]} : vector<1x128xf32> to vector<1x32xf32>
    %188 = vector.extract_strided_slice %170 {offsets = [0, 64], sizes = [1, 32], strides = [1, 1]} : vector<1x128xf32> to vector<1x32xf32>
    %189 = arith.mulf %178, %188 : vector<1x32xf32>
    %190 = arith.addf %187, %189 : vector<1x32xf32>
    %191 = math.tanh %190 : vector<1x32xf32>
    %cst_34 = arith.constant 1.000000e+00 : f32
    %192 = vector.broadcast %cst_34 : f32 to vector<1x32xf32>
    %193 = arith.subf %192, %186 : vector<1x32xf32>
    %194 = arith.mulf %193, %191 : vector<1x32xf32>
    %195 = arith.mulf %186, %165 : vector<1x32xf32>
    %196 = arith.addf %194, %195 : vector<1x32xf32>
    %197 = vector.extract_strided_slice %7 {offsets = [0, 6, 0], sizes = [1, 1, 128], strides = [1, 1, 1]} : vector<1x8x128xf32> to vector<1x1x128xf32>
    %198 = vector.shape_cast %197 : vector<1x1x128xf32> to vector<1x128xf32>
    %199 = arith.truncf %196 : vector<1x32xf32> to vector<1x32xbf16>
    %cst_35 = arith.constant dense<0.000000e+00> : vector<1x128xf32>
    %200 = tpu.matmul %199, %8, %cst_35 {dimension_numbers = #tpu.dot_dimension_numbers<[1], [0], [0], [1], [0, 0, 1, 1], [], []>} : vector<1x32xbf16>, vector<32x128xbf16>, vector<1x128xf32> -> vector<1x128xf32>
    %201 = arith.addf %200, %9 : vector<1x128xf32>
    %202 = vector.extract_strided_slice %198 {offsets = [0, 0], sizes = [1, 32], strides = [1, 1]} : vector<1x128xf32> to vector<1x32xf32>
    %203 = vector.extract_strided_slice %201 {offsets = [0, 0], sizes = [1, 32], strides = [1, 1]} : vector<1x128xf32> to vector<1x32xf32>
    %204 = arith.addf %202, %203 : vector<1x32xf32>
    %205 = arith.negf %204 : vector<1x32xf32>
    %206 = math.exp %205 : vector<1x32xf32>
    %cst_36 = arith.constant 1.000000e+00 : f32
    %207 = vector.broadcast %cst_36 : f32 to vector<1x32xf32>
    %208 = arith.addf %207, %206 : vector<1x32xf32>
    %209 = arith.divf %207, %208 : vector<1x32xf32>
    %210 = vector.extract_strided_slice %198 {offsets = [0, 32], sizes = [1, 32], strides = [1, 1]} : vector<1x128xf32> to vector<1x32xf32>
    %211 = vector.extract_strided_slice %201 {offsets = [0, 32], sizes = [1, 32], strides = [1, 1]} : vector<1x128xf32> to vector<1x32xf32>
    %212 = arith.addf %210, %211 : vector<1x32xf32>
    %213 = arith.negf %212 : vector<1x32xf32>
    %214 = math.exp %213 : vector<1x32xf32>
    %cst_37 = arith.constant 1.000000e+00 : f32
    %215 = vector.broadcast %cst_37 : f32 to vector<1x32xf32>
    %216 = arith.addf %215, %214 : vector<1x32xf32>
    %217 = arith.divf %215, %216 : vector<1x32xf32>
    %218 = vector.extract_strided_slice %198 {offsets = [0, 64], sizes = [1, 32], strides = [1, 1]} : vector<1x128xf32> to vector<1x32xf32>
    %219 = vector.extract_strided_slice %201 {offsets = [0, 64], sizes = [1, 32], strides = [1, 1]} : vector<1x128xf32> to vector<1x32xf32>
    %220 = arith.mulf %209, %219 : vector<1x32xf32>
    %221 = arith.addf %218, %220 : vector<1x32xf32>
    %222 = math.tanh %221 : vector<1x32xf32>
    %cst_38 = arith.constant 1.000000e+00 : f32
    %223 = vector.broadcast %cst_38 : f32 to vector<1x32xf32>
    %224 = arith.subf %223, %217 : vector<1x32xf32>
    %225 = arith.mulf %224, %222 : vector<1x32xf32>
    %226 = arith.mulf %217, %196 : vector<1x32xf32>
    %227 = arith.addf %225, %226 : vector<1x32xf32>
    %228 = vector.extract_strided_slice %7 {offsets = [0, 7, 0], sizes = [1, 1, 128], strides = [1, 1, 1]} : vector<1x8x128xf32> to vector<1x1x128xf32>
    %229 = vector.shape_cast %228 : vector<1x1x128xf32> to vector<1x128xf32>
    %230 = arith.truncf %227 : vector<1x32xf32> to vector<1x32xbf16>
    %cst_39 = arith.constant dense<0.000000e+00> : vector<1x128xf32>
    %231 = tpu.matmul %230, %8, %cst_39 {dimension_numbers = #tpu.dot_dimension_numbers<[1], [0], [0], [1], [0, 0, 1, 1], [], []>} : vector<1x32xbf16>, vector<32x128xbf16>, vector<1x128xf32> -> vector<1x128xf32>
    %232 = arith.addf %231, %9 : vector<1x128xf32>
    %233 = vector.extract_strided_slice %229 {offsets = [0, 0], sizes = [1, 32], strides = [1, 1]} : vector<1x128xf32> to vector<1x32xf32>
    %234 = vector.extract_strided_slice %232 {offsets = [0, 0], sizes = [1, 32], strides = [1, 1]} : vector<1x128xf32> to vector<1x32xf32>
    %235 = arith.addf %233, %234 : vector<1x32xf32>
    %236 = arith.negf %235 : vector<1x32xf32>
    %237 = math.exp %236 : vector<1x32xf32>
    %cst_40 = arith.constant 1.000000e+00 : f32
    %238 = vector.broadcast %cst_40 : f32 to vector<1x32xf32>
    %239 = arith.addf %238, %237 : vector<1x32xf32>
    %240 = arith.divf %238, %239 : vector<1x32xf32>
    %241 = vector.extract_strided_slice %229 {offsets = [0, 32], sizes = [1, 32], strides = [1, 1]} : vector<1x128xf32> to vector<1x32xf32>
    %242 = vector.extract_strided_slice %232 {offsets = [0, 32], sizes = [1, 32], strides = [1, 1]} : vector<1x128xf32> to vector<1x32xf32>
    %243 = arith.addf %241, %242 : vector<1x32xf32>
    %244 = arith.negf %243 : vector<1x32xf32>
    %245 = math.exp %244 : vector<1x32xf32>
    %cst_41 = arith.constant 1.000000e+00 : f32
    %246 = vector.broadcast %cst_41 : f32 to vector<1x32xf32>
    %247 = arith.addf %246, %245 : vector<1x32xf32>
    %248 = arith.divf %246, %247 : vector<1x32xf32>
    %249 = vector.extract_strided_slice %229 {offsets = [0, 64], sizes = [1, 32], strides = [1, 1]} : vector<1x128xf32> to vector<1x32xf32>
    %250 = vector.extract_strided_slice %232 {offsets = [0, 64], sizes = [1, 32], strides = [1, 1]} : vector<1x128xf32> to vector<1x32xf32>
    %251 = arith.mulf %240, %250 : vector<1x32xf32>
    %252 = arith.addf %249, %251 : vector<1x32xf32>
    %253 = math.tanh %252 : vector<1x32xf32>
    %cst_42 = arith.constant 1.000000e+00 : f32
    %254 = vector.broadcast %cst_42 : f32 to vector<1x32xf32>
    %255 = arith.subf %254, %248 : vector<1x32xf32>
    %256 = arith.mulf %255, %253 : vector<1x32xf32>
    %257 = arith.mulf %248, %227 : vector<1x32xf32>
    %258 = arith.addf %256, %257 : vector<1x32xf32>
    %259 = vector.shape_cast %41 : vector<1x32xf32> to vector<1x1x32xf32>
    %260 = vector.shape_cast %72 : vector<1x32xf32> to vector<1x1x32xf32>
    %261 = vector.shape_cast %103 : vector<1x32xf32> to vector<1x1x32xf32>
    %262 = vector.shape_cast %134 : vector<1x32xf32> to vector<1x1x32xf32>
    %263 = vector.shape_cast %165 : vector<1x32xf32> to vector<1x1x32xf32>
    %264 = vector.shape_cast %196 : vector<1x32xf32> to vector<1x1x32xf32>
    %265 = vector.shape_cast %227 : vector<1x32xf32> to vector<1x1x32xf32>
    %266 = vector.shape_cast %258 : vector<1x32xf32> to vector<1x1x32xf32>
    %267 = tpu.concatenate %259, %260, %261, %262, %263, %264, %265, %266 in 0 : vector<1x1x32xf32>, vector<1x1x32xf32>, vector<1x1x32xf32>, vector<1x1x32xf32>, vector<1x1x32xf32>, vector<1x1x32xf32>, vector<1x1x32xf32>, vector<1x1x32xf32> -> vector<8x1x32xf32>
    %268 = vector.shape_cast %267 : vector<8x1x32xf32> to vector<8x32xf32>
    %269 = arith.truncf %268 : vector<8x32xf32> to vector<8x32xbf16>
    %c0_43 = arith.constant 0 : index
    %c0_44 = arith.constant 0 : index
    %270 = vector.load %arg6[%c0_43, %c0_44] : memref<32x128xbf16, #tpu.memory_space<vmem>>, vector<32x128xbf16>
    %cst_45 = arith.constant dense<0.000000e+00> : vector<8x128xf32>
    %271 = tpu.matmul %269, %270, %cst_45 {dimension_numbers = #tpu.dot_dimension_numbers<[1], [0], [0], [1], [0, 0, 1, 1], [], []>} : vector<8x32xbf16>, vector<32x128xbf16>, vector<8x128xf32> -> vector<8x128xf32>
    %c0_46 = arith.constant 0 : index
    %c0_47 = arith.constant 0 : index
    %272 = vector.load %arg8[%c0_46, %c0_47] : memref<1x128xf32, #tpu.memory_space<vmem>>, vector<1x128xf32>
    %273 = vector.broadcast %272 : vector<1x128xf32> to vector<8x128xf32>
    %274 = arith.addf %271, %273 : vector<8x128xf32>
    %275 = vector.shape_cast %274 : vector<8x128xf32> to vector<8x1x128xf32>
    %c0_48 = arith.constant 0 : index
    %c0_49 = arith.constant 0 : index
    %276 = vector.load %arg7[%c0_48, %c0_49] : memref<32x128xbf16, #tpu.memory_space<vmem>>, vector<32x128xbf16>
    %c0_50 = arith.constant 0 : index
    %c0_51 = arith.constant 0 : index
    %277 = vector.load %arg9[%c0_50, %c0_51] : memref<1x128xf32, #tpu.memory_space<vmem>>, vector<1x128xf32>
    %cst_52 = arith.constant 0.000000e+00 : f32
    %278 = vector.broadcast %cst_52 : f32 to vector<1x32xf32>
    %279 = vector.extract_strided_slice %275 {offsets = [0, 0, 0], sizes = [1, 1, 128], strides = [1, 1, 1]} : vector<8x1x128xf32> to vector<1x1x128xf32>
    %280 = vector.shape_cast %279 : vector<1x1x128xf32> to vector<1x128xf32>
    %281 = arith.truncf %278 : vector<1x32xf32> to vector<1x32xbf16>
    %cst_53 = arith.constant dense<0.000000e+00> : vector<1x128xf32>
    %282 = tpu.matmul %281, %276, %cst_53 {dimension_numbers = #tpu.dot_dimension_numbers<[1], [0], [0], [1], [0, 0, 1, 1], [], []>} : vector<1x32xbf16>, vector<32x128xbf16>, vector<1x128xf32> -> vector<1x128xf32>
    %283 = arith.addf %282, %277 : vector<1x128xf32>
    %284 = vector.extract_strided_slice %280 {offsets = [0, 0], sizes = [1, 32], strides = [1, 1]} : vector<1x128xf32> to vector<1x32xf32>
    %285 = vector.extract_strided_slice %283 {offsets = [0, 0], sizes = [1, 32], strides = [1, 1]} : vector<1x128xf32> to vector<1x32xf32>
    %286 = arith.addf %284, %285 : vector<1x32xf32>
    %287 = arith.negf %286 : vector<1x32xf32>
    %288 = math.exp %287 : vector<1x32xf32>
    %cst_54 = arith.constant 1.000000e+00 : f32
    %289 = vector.broadcast %cst_54 : f32 to vector<1x32xf32>
    %290 = arith.addf %289, %288 : vector<1x32xf32>
    %291 = arith.divf %289, %290 : vector<1x32xf32>
    %292 = vector.extract_strided_slice %280 {offsets = [0, 32], sizes = [1, 32], strides = [1, 1]} : vector<1x128xf32> to vector<1x32xf32>
    %293 = vector.extract_strided_slice %283 {offsets = [0, 32], sizes = [1, 32], strides = [1, 1]} : vector<1x128xf32> to vector<1x32xf32>
    %294 = arith.addf %292, %293 : vector<1x32xf32>
    %295 = arith.negf %294 : vector<1x32xf32>
    %296 = math.exp %295 : vector<1x32xf32>
    %cst_55 = arith.constant 1.000000e+00 : f32
    %297 = vector.broadcast %cst_55 : f32 to vector<1x32xf32>
    %298 = arith.addf %297, %296 : vector<1x32xf32>
    %299 = arith.divf %297, %298 : vector<1x32xf32>
    %300 = vector.extract_strided_slice %280 {offsets = [0, 64], sizes = [1, 32], strides = [1, 1]} : vector<1x128xf32> to vector<1x32xf32>
    %301 = vector.extract_strided_slice %283 {offsets = [0, 64], sizes = [1, 32], strides = [1, 1]} : vector<1x128xf32> to vector<1x32xf32>
    %302 = arith.mulf %291, %301 : vector<1x32xf32>
    %303 = arith.addf %300, %302 : vector<1x32xf32>
    %304 = math.tanh %303 : vector<1x32xf32>
    %cst_56 = arith.constant 1.000000e+00 : f32
    %305 = vector.broadcast %cst_56 : f32 to vector<1x32xf32>
    %306 = arith.subf %305, %299 : vector<1x32xf32>
    %307 = arith.mulf %306, %304 : vector<1x32xf32>
    %308 = arith.mulf %299, %278 : vector<1x32xf32>
    %309 = arith.addf %307, %308 : vector<1x32xf32>
    %310 = vector.extract_strided_slice %275 {offsets = [1, 0, 0], sizes = [1, 1, 128], strides = [1, 1, 1]} : vector<8x1x128xf32> to vector<1x1x128xf32>
    %311 = vector.shape_cast %310 : vector<1x1x128xf32> to vector<1x128xf32>
    %312 = arith.truncf %309 : vector<1x32xf32> to vector<1x32xbf16>
    %cst_57 = arith.constant dense<0.000000e+00> : vector<1x128xf32>
    %313 = tpu.matmul %312, %276, %cst_57 {dimension_numbers = #tpu.dot_dimension_numbers<[1], [0], [0], [1], [0, 0, 1, 1], [], []>} : vector<1x32xbf16>, vector<32x128xbf16>, vector<1x128xf32> -> vector<1x128xf32>
    %314 = arith.addf %313, %277 : vector<1x128xf32>
    %315 = vector.extract_strided_slice %311 {offsets = [0, 0], sizes = [1, 32], strides = [1, 1]} : vector<1x128xf32> to vector<1x32xf32>
    %316 = vector.extract_strided_slice %314 {offsets = [0, 0], sizes = [1, 32], strides = [1, 1]} : vector<1x128xf32> to vector<1x32xf32>
    %317 = arith.addf %315, %316 : vector<1x32xf32>
    %318 = arith.negf %317 : vector<1x32xf32>
    %319 = math.exp %318 : vector<1x32xf32>
    %cst_58 = arith.constant 1.000000e+00 : f32
    %320 = vector.broadcast %cst_58 : f32 to vector<1x32xf32>
    %321 = arith.addf %320, %319 : vector<1x32xf32>
    %322 = arith.divf %320, %321 : vector<1x32xf32>
    %323 = vector.extract_strided_slice %311 {offsets = [0, 32], sizes = [1, 32], strides = [1, 1]} : vector<1x128xf32> to vector<1x32xf32>
    %324 = vector.extract_strided_slice %314 {offsets = [0, 32], sizes = [1, 32], strides = [1, 1]} : vector<1x128xf32> to vector<1x32xf32>
    %325 = arith.addf %323, %324 : vector<1x32xf32>
    %326 = arith.negf %325 : vector<1x32xf32>
    %327 = math.exp %326 : vector<1x32xf32>
    %cst_59 = arith.constant 1.000000e+00 : f32
    %328 = vector.broadcast %cst_59 : f32 to vector<1x32xf32>
    %329 = arith.addf %328, %327 : vector<1x32xf32>
    %330 = arith.divf %328, %329 : vector<1x32xf32>
    %331 = vector.extract_strided_slice %311 {offsets = [0, 64], sizes = [1, 32], strides = [1, 1]} : vector<1x128xf32> to vector<1x32xf32>
    %332 = vector.extract_strided_slice %314 {offsets = [0, 64], sizes = [1, 32], strides = [1, 1]} : vector<1x128xf32> to vector<1x32xf32>
    %333 = arith.mulf %322, %332 : vector<1x32xf32>
    %334 = arith.addf %331, %333 : vector<1x32xf32>
    %335 = math.tanh %334 : vector<1x32xf32>
    %cst_60 = arith.constant 1.000000e+00 : f32
    %336 = vector.broadcast %cst_60 : f32 to vector<1x32xf32>
    %337 = arith.subf %336, %330 : vector<1x32xf32>
    %338 = arith.mulf %337, %335 : vector<1x32xf32>
    %339 = arith.mulf %330, %309 : vector<1x32xf32>
    %340 = arith.addf %338, %339 : vector<1x32xf32>
    %341 = vector.extract_strided_slice %275 {offsets = [2, 0, 0], sizes = [1, 1, 128], strides = [1, 1, 1]} : vector<8x1x128xf32> to vector<1x1x128xf32>
    %342 = vector.shape_cast %341 : vector<1x1x128xf32> to vector<1x128xf32>
    %343 = arith.truncf %340 : vector<1x32xf32> to vector<1x32xbf16>
    %cst_61 = arith.constant dense<0.000000e+00> : vector<1x128xf32>
    %344 = tpu.matmul %343, %276, %cst_61 {dimension_numbers = #tpu.dot_dimension_numbers<[1], [0], [0], [1], [0, 0, 1, 1], [], []>} : vector<1x32xbf16>, vector<32x128xbf16>, vector<1x128xf32> -> vector<1x128xf32>
    %345 = arith.addf %344, %277 : vector<1x128xf32>
    %346 = vector.extract_strided_slice %342 {offsets = [0, 0], sizes = [1, 32], strides = [1, 1]} : vector<1x128xf32> to vector<1x32xf32>
    %347 = vector.extract_strided_slice %345 {offsets = [0, 0], sizes = [1, 32], strides = [1, 1]} : vector<1x128xf32> to vector<1x32xf32>
    %348 = arith.addf %346, %347 : vector<1x32xf32>
    %349 = arith.negf %348 : vector<1x32xf32>
    %350 = math.exp %349 : vector<1x32xf32>
    %cst_62 = arith.constant 1.000000e+00 : f32
    %351 = vector.broadcast %cst_62 : f32 to vector<1x32xf32>
    %352 = arith.addf %351, %350 : vector<1x32xf32>
    %353 = arith.divf %351, %352 : vector<1x32xf32>
    %354 = vector.extract_strided_slice %342 {offsets = [0, 32], sizes = [1, 32], strides = [1, 1]} : vector<1x128xf32> to vector<1x32xf32>
    %355 = vector.extract_strided_slice %345 {offsets = [0, 32], sizes = [1, 32], strides = [1, 1]} : vector<1x128xf32> to vector<1x32xf32>
    %356 = arith.addf %354, %355 : vector<1x32xf32>
    %357 = arith.negf %356 : vector<1x32xf32>
    %358 = math.exp %357 : vector<1x32xf32>
    %cst_63 = arith.constant 1.000000e+00 : f32
    %359 = vector.broadcast %cst_63 : f32 to vector<1x32xf32>
    %360 = arith.addf %359, %358 : vector<1x32xf32>
    %361 = arith.divf %359, %360 : vector<1x32xf32>
    %362 = vector.extract_strided_slice %342 {offsets = [0, 64], sizes = [1, 32], strides = [1, 1]} : vector<1x128xf32> to vector<1x32xf32>
    %363 = vector.extract_strided_slice %345 {offsets = [0, 64], sizes = [1, 32], strides = [1, 1]} : vector<1x128xf32> to vector<1x32xf32>
    %364 = arith.mulf %353, %363 : vector<1x32xf32>
    %365 = arith.addf %362, %364 : vector<1x32xf32>
    %366 = math.tanh %365 : vector<1x32xf32>
    %cst_64 = arith.constant 1.000000e+00 : f32
    %367 = vector.broadcast %cst_64 : f32 to vector<1x32xf32>
    %368 = arith.subf %367, %361 : vector<1x32xf32>
    %369 = arith.mulf %368, %366 : vector<1x32xf32>
    %370 = arith.mulf %361, %340 : vector<1x32xf32>
    %371 = arith.addf %369, %370 : vector<1x32xf32>
    %372 = vector.extract_strided_slice %275 {offsets = [3, 0, 0], sizes = [1, 1, 128], strides = [1, 1, 1]} : vector<8x1x128xf32> to vector<1x1x128xf32>
    %373 = vector.shape_cast %372 : vector<1x1x128xf32> to vector<1x128xf32>
    %374 = arith.truncf %371 : vector<1x32xf32> to vector<1x32xbf16>
    %cst_65 = arith.constant dense<0.000000e+00> : vector<1x128xf32>
    %375 = tpu.matmul %374, %276, %cst_65 {dimension_numbers = #tpu.dot_dimension_numbers<[1], [0], [0], [1], [0, 0, 1, 1], [], []>} : vector<1x32xbf16>, vector<32x128xbf16>, vector<1x128xf32> -> vector<1x128xf32>
    %376 = arith.addf %375, %277 : vector<1x128xf32>
    %377 = vector.extract_strided_slice %373 {offsets = [0, 0], sizes = [1, 32], strides = [1, 1]} : vector<1x128xf32> to vector<1x32xf32>
    %378 = vector.extract_strided_slice %376 {offsets = [0, 0], sizes = [1, 32], strides = [1, 1]} : vector<1x128xf32> to vector<1x32xf32>
    %379 = arith.addf %377, %378 : vector<1x32xf32>
    %380 = arith.negf %379 : vector<1x32xf32>
    %381 = math.exp %380 : vector<1x32xf32>
    %cst_66 = arith.constant 1.000000e+00 : f32
    %382 = vector.broadcast %cst_66 : f32 to vector<1x32xf32>
    %383 = arith.addf %382, %381 : vector<1x32xf32>
    %384 = arith.divf %382, %383 : vector<1x32xf32>
    %385 = vector.extract_strided_slice %373 {offsets = [0, 32], sizes = [1, 32], strides = [1, 1]} : vector<1x128xf32> to vector<1x32xf32>
    %386 = vector.extract_strided_slice %376 {offsets = [0, 32], sizes = [1, 32], strides = [1, 1]} : vector<1x128xf32> to vector<1x32xf32>
    %387 = arith.addf %385, %386 : vector<1x32xf32>
    %388 = arith.negf %387 : vector<1x32xf32>
    %389 = math.exp %388 : vector<1x32xf32>
    %cst_67 = arith.constant 1.000000e+00 : f32
    %390 = vector.broadcast %cst_67 : f32 to vector<1x32xf32>
    %391 = arith.addf %390, %389 : vector<1x32xf32>
    %392 = arith.divf %390, %391 : vector<1x32xf32>
    %393 = vector.extract_strided_slice %373 {offsets = [0, 64], sizes = [1, 32], strides = [1, 1]} : vector<1x128xf32> to vector<1x32xf32>
    %394 = vector.extract_strided_slice %376 {offsets = [0, 64], sizes = [1, 32], strides = [1, 1]} : vector<1x128xf32> to vector<1x32xf32>
    %395 = arith.mulf %384, %394 : vector<1x32xf32>
    %396 = arith.addf %393, %395 : vector<1x32xf32>
    %397 = math.tanh %396 : vector<1x32xf32>
    %cst_68 = arith.constant 1.000000e+00 : f32
    %398 = vector.broadcast %cst_68 : f32 to vector<1x32xf32>
    %399 = arith.subf %398, %392 : vector<1x32xf32>
    %400 = arith.mulf %399, %397 : vector<1x32xf32>
    %401 = arith.mulf %392, %371 : vector<1x32xf32>
    %402 = arith.addf %400, %401 : vector<1x32xf32>
    %403 = vector.extract_strided_slice %275 {offsets = [4, 0, 0], sizes = [1, 1, 128], strides = [1, 1, 1]} : vector<8x1x128xf32> to vector<1x1x128xf32>
    %404 = vector.shape_cast %403 : vector<1x1x128xf32> to vector<1x128xf32>
    %405 = arith.truncf %402 : vector<1x32xf32> to vector<1x32xbf16>
    %cst_69 = arith.constant dense<0.000000e+00> : vector<1x128xf32>
    %406 = tpu.matmul %405, %276, %cst_69 {dimension_numbers = #tpu.dot_dimension_numbers<[1], [0], [0], [1], [0, 0, 1, 1], [], []>} : vector<1x32xbf16>, vector<32x128xbf16>, vector<1x128xf32> -> vector<1x128xf32>
    %407 = arith.addf %406, %277 : vector<1x128xf32>
    %408 = vector.extract_strided_slice %404 {offsets = [0, 0], sizes = [1, 32], strides = [1, 1]} : vector<1x128xf32> to vector<1x32xf32>
    %409 = vector.extract_strided_slice %407 {offsets = [0, 0], sizes = [1, 32], strides = [1, 1]} : vector<1x128xf32> to vector<1x32xf32>
    %410 = arith.addf %408, %409 : vector<1x32xf32>
    %411 = arith.negf %410 : vector<1x32xf32>
    %412 = math.exp %411 : vector<1x32xf32>
    %cst_70 = arith.constant 1.000000e+00 : f32
    %413 = vector.broadcast %cst_70 : f32 to vector<1x32xf32>
    %414 = arith.addf %413, %412 : vector<1x32xf32>
    %415 = arith.divf %413, %414 : vector<1x32xf32>
    %416 = vector.extract_strided_slice %404 {offsets = [0, 32], sizes = [1, 32], strides = [1, 1]} : vector<1x128xf32> to vector<1x32xf32>
    %417 = vector.extract_strided_slice %407 {offsets = [0, 32], sizes = [1, 32], strides = [1, 1]} : vector<1x128xf32> to vector<1x32xf32>
    %418 = arith.addf %416, %417 : vector<1x32xf32>
    %419 = arith.negf %418 : vector<1x32xf32>
    %420 = math.exp %419 : vector<1x32xf32>
    %cst_71 = arith.constant 1.000000e+00 : f32
    %421 = vector.broadcast %cst_71 : f32 to vector<1x32xf32>
    %422 = arith.addf %421, %420 : vector<1x32xf32>
    %423 = arith.divf %421, %422 : vector<1x32xf32>
    %424 = vector.extract_strided_slice %404 {offsets = [0, 64], sizes = [1, 32], strides = [1, 1]} : vector<1x128xf32> to vector<1x32xf32>
    %425 = vector.extract_strided_slice %407 {offsets = [0, 64], sizes = [1, 32], strides = [1, 1]} : vector<1x128xf32> to vector<1x32xf32>
    %426 = arith.mulf %415, %425 : vector<1x32xf32>
    %427 = arith.addf %424, %426 : vector<1x32xf32>
    %428 = math.tanh %427 : vector<1x32xf32>
    %cst_72 = arith.constant 1.000000e+00 : f32
    %429 = vector.broadcast %cst_72 : f32 to vector<1x32xf32>
    %430 = arith.subf %429, %423 : vector<1x32xf32>
    %431 = arith.mulf %430, %428 : vector<1x32xf32>
    %432 = arith.mulf %423, %402 : vector<1x32xf32>
    %433 = arith.addf %431, %432 : vector<1x32xf32>
    %434 = vector.extract_strided_slice %275 {offsets = [5, 0, 0], sizes = [1, 1, 128], strides = [1, 1, 1]} : vector<8x1x128xf32> to vector<1x1x128xf32>
    %435 = vector.shape_cast %434 : vector<1x1x128xf32> to vector<1x128xf32>
    %436 = arith.truncf %433 : vector<1x32xf32> to vector<1x32xbf16>
    %cst_73 = arith.constant dense<0.000000e+00> : vector<1x128xf32>
    %437 = tpu.matmul %436, %276, %cst_73 {dimension_numbers = #tpu.dot_dimension_numbers<[1], [0], [0], [1], [0, 0, 1, 1], [], []>} : vector<1x32xbf16>, vector<32x128xbf16>, vector<1x128xf32> -> vector<1x128xf32>
    %438 = arith.addf %437, %277 : vector<1x128xf32>
    %439 = vector.extract_strided_slice %435 {offsets = [0, 0], sizes = [1, 32], strides = [1, 1]} : vector<1x128xf32> to vector<1x32xf32>
    %440 = vector.extract_strided_slice %438 {offsets = [0, 0], sizes = [1, 32], strides = [1, 1]} : vector<1x128xf32> to vector<1x32xf32>
    %441 = arith.addf %439, %440 : vector<1x32xf32>
    %442 = arith.negf %441 : vector<1x32xf32>
    %443 = math.exp %442 : vector<1x32xf32>
    %cst_74 = arith.constant 1.000000e+00 : f32
    %444 = vector.broadcast %cst_74 : f32 to vector<1x32xf32>
    %445 = arith.addf %444, %443 : vector<1x32xf32>
    %446 = arith.divf %444, %445 : vector<1x32xf32>
    %447 = vector.extract_strided_slice %435 {offsets = [0, 32], sizes = [1, 32], strides = [1, 1]} : vector<1x128xf32> to vector<1x32xf32>
    %448 = vector.extract_strided_slice %438 {offsets = [0, 32], sizes = [1, 32], strides = [1, 1]} : vector<1x128xf32> to vector<1x32xf32>
    %449 = arith.addf %447, %448 : vector<1x32xf32>
    %450 = arith.negf %449 : vector<1x32xf32>
    %451 = math.exp %450 : vector<1x32xf32>
    %cst_75 = arith.constant 1.000000e+00 : f32
    %452 = vector.broadcast %cst_75 : f32 to vector<1x32xf32>
    %453 = arith.addf %452, %451 : vector<1x32xf32>
    %454 = arith.divf %452, %453 : vector<1x32xf32>
    %455 = vector.extract_strided_slice %435 {offsets = [0, 64], sizes = [1, 32], strides = [1, 1]} : vector<1x128xf32> to vector<1x32xf32>
    %456 = vector.extract_strided_slice %438 {offsets = [0, 64], sizes = [1, 32], strides = [1, 1]} : vector<1x128xf32> to vector<1x32xf32>
    %457 = arith.mulf %446, %456 : vector<1x32xf32>
    %458 = arith.addf %455, %457 : vector<1x32xf32>
    %459 = math.tanh %458 : vector<1x32xf32>
    %cst_76 = arith.constant 1.000000e+00 : f32
    %460 = vector.broadcast %cst_76 : f32 to vector<1x32xf32>
    %461 = arith.subf %460, %454 : vector<1x32xf32>
    %462 = arith.mulf %461, %459 : vector<1x32xf32>
    %463 = arith.mulf %454, %433 : vector<1x32xf32>
    %464 = arith.addf %462, %463 : vector<1x32xf32>
    %465 = vector.extract_strided_slice %275 {offsets = [6, 0, 0], sizes = [1, 1, 128], strides = [1, 1, 1]} : vector<8x1x128xf32> to vector<1x1x128xf32>
    %466 = vector.shape_cast %465 : vector<1x1x128xf32> to vector<1x128xf32>
    %467 = arith.truncf %464 : vector<1x32xf32> to vector<1x32xbf16>
    %cst_77 = arith.constant dense<0.000000e+00> : vector<1x128xf32>
    %468 = tpu.matmul %467, %276, %cst_77 {dimension_numbers = #tpu.dot_dimension_numbers<[1], [0], [0], [1], [0, 0, 1, 1], [], []>} : vector<1x32xbf16>, vector<32x128xbf16>, vector<1x128xf32> -> vector<1x128xf32>
    %469 = arith.addf %468, %277 : vector<1x128xf32>
    %470 = vector.extract_strided_slice %466 {offsets = [0, 0], sizes = [1, 32], strides = [1, 1]} : vector<1x128xf32> to vector<1x32xf32>
    %471 = vector.extract_strided_slice %469 {offsets = [0, 0], sizes = [1, 32], strides = [1, 1]} : vector<1x128xf32> to vector<1x32xf32>
    %472 = arith.addf %470, %471 : vector<1x32xf32>
    %473 = arith.negf %472 : vector<1x32xf32>
    %474 = math.exp %473 : vector<1x32xf32>
    %cst_78 = arith.constant 1.000000e+00 : f32
    %475 = vector.broadcast %cst_78 : f32 to vector<1x32xf32>
    %476 = arith.addf %475, %474 : vector<1x32xf32>
    %477 = arith.divf %475, %476 : vector<1x32xf32>
    %478 = vector.extract_strided_slice %466 {offsets = [0, 32], sizes = [1, 32], strides = [1, 1]} : vector<1x128xf32> to vector<1x32xf32>
    %479 = vector.extract_strided_slice %469 {offsets = [0, 32], sizes = [1, 32], strides = [1, 1]} : vector<1x128xf32> to vector<1x32xf32>
    %480 = arith.addf %478, %479 : vector<1x32xf32>
    %481 = arith.negf %480 : vector<1x32xf32>
    %482 = math.exp %481 : vector<1x32xf32>
    %cst_79 = arith.constant 1.000000e+00 : f32
    %483 = vector.broadcast %cst_79 : f32 to vector<1x32xf32>
    %484 = arith.addf %483, %482 : vector<1x32xf32>
    %485 = arith.divf %483, %484 : vector<1x32xf32>
    %486 = vector.extract_strided_slice %466 {offsets = [0, 64], sizes = [1, 32], strides = [1, 1]} : vector<1x128xf32> to vector<1x32xf32>
    %487 = vector.extract_strided_slice %469 {offsets = [0, 64], sizes = [1, 32], strides = [1, 1]} : vector<1x128xf32> to vector<1x32xf32>
    %488 = arith.mulf %477, %487 : vector<1x32xf32>
    %489 = arith.addf %486, %488 : vector<1x32xf32>
    %490 = math.tanh %489 : vector<1x32xf32>
    %cst_80 = arith.constant 1.000000e+00 : f32
    %491 = vector.broadcast %cst_80 : f32 to vector<1x32xf32>
    %492 = arith.subf %491, %485 : vector<1x32xf32>
    %493 = arith.mulf %492, %490 : vector<1x32xf32>
    %494 = arith.mulf %485, %464 : vector<1x32xf32>
    %495 = arith.addf %493, %494 : vector<1x32xf32>
    %496 = vector.extract_strided_slice %275 {offsets = [7, 0, 0], sizes = [1, 1, 128], strides = [1, 1, 1]} : vector<8x1x128xf32> to vector<1x1x128xf32>
    %497 = vector.shape_cast %496 : vector<1x1x128xf32> to vector<1x128xf32>
    %498 = arith.truncf %495 : vector<1x32xf32> to vector<1x32xbf16>
    %cst_81 = arith.constant dense<0.000000e+00> : vector<1x128xf32>
    %499 = tpu.matmul %498, %276, %cst_81 {dimension_numbers = #tpu.dot_dimension_numbers<[1], [0], [0], [1], [0, 0, 1, 1], [], []>} : vector<1x32xbf16>, vector<32x128xbf16>, vector<1x128xf32> -> vector<1x128xf32>
    %500 = arith.addf %499, %277 : vector<1x128xf32>
    %501 = vector.extract_strided_slice %497 {offsets = [0, 0], sizes = [1, 32], strides = [1, 1]} : vector<1x128xf32> to vector<1x32xf32>
    %502 = vector.extract_strided_slice %500 {offsets = [0, 0], sizes = [1, 32], strides = [1, 1]} : vector<1x128xf32> to vector<1x32xf32>
    %503 = arith.addf %501, %502 : vector<1x32xf32>
    %504 = arith.negf %503 : vector<1x32xf32>
    %505 = math.exp %504 : vector<1x32xf32>
    %cst_82 = arith.constant 1.000000e+00 : f32
    %506 = vector.broadcast %cst_82 : f32 to vector<1x32xf32>
    %507 = arith.addf %506, %505 : vector<1x32xf32>
    %508 = arith.divf %506, %507 : vector<1x32xf32>
    %509 = vector.extract_strided_slice %497 {offsets = [0, 32], sizes = [1, 32], strides = [1, 1]} : vector<1x128xf32> to vector<1x32xf32>
    %510 = vector.extract_strided_slice %500 {offsets = [0, 32], sizes = [1, 32], strides = [1, 1]} : vector<1x128xf32> to vector<1x32xf32>
    %511 = arith.addf %509, %510 : vector<1x32xf32>
    %512 = arith.negf %511 : vector<1x32xf32>
    %513 = math.exp %512 : vector<1x32xf32>
    %cst_83 = arith.constant 1.000000e+00 : f32
    %514 = vector.broadcast %cst_83 : f32 to vector<1x32xf32>
    %515 = arith.addf %514, %513 : vector<1x32xf32>
    %516 = arith.divf %514, %515 : vector<1x32xf32>
    %517 = vector.extract_strided_slice %497 {offsets = [0, 64], sizes = [1, 32], strides = [1, 1]} : vector<1x128xf32> to vector<1x32xf32>
    %518 = vector.extract_strided_slice %500 {offsets = [0, 64], sizes = [1, 32], strides = [1, 1]} : vector<1x128xf32> to vector<1x32xf32>
    %519 = arith.mulf %508, %518 : vector<1x32xf32>
    %520 = arith.addf %517, %519 : vector<1x32xf32>
    %521 = math.tanh %520 : vector<1x32xf32>
    %cst_84 = arith.constant 1.000000e+00 : f32
    %522 = vector.broadcast %cst_84 : f32 to vector<1x32xf32>
    %523 = arith.subf %522, %516 : vector<1x32xf32>
    %524 = arith.mulf %523, %521 : vector<1x32xf32>
    %525 = arith.mulf %516, %495 : vector<1x32xf32>
    %526 = arith.addf %524, %525 : vector<1x32xf32>
    %527 = vector.shape_cast %309 : vector<1x32xf32> to vector<1x1x32xf32>
    %528 = vector.shape_cast %340 : vector<1x32xf32> to vector<1x1x32xf32>
    %529 = vector.shape_cast %371 : vector<1x32xf32> to vector<1x1x32xf32>
    %530 = vector.shape_cast %402 : vector<1x32xf32> to vector<1x1x32xf32>
    %531 = vector.shape_cast %433 : vector<1x32xf32> to vector<1x1x32xf32>
    %532 = vector.shape_cast %464 : vector<1x32xf32> to vector<1x1x32xf32>
    %533 = vector.shape_cast %495 : vector<1x32xf32> to vector<1x1x32xf32>
    %534 = vector.shape_cast %526 : vector<1x32xf32> to vector<1x1x32xf32>
    %535 = tpu.concatenate %527, %528, %529, %530, %531, %532, %533, %534 in 1 : vector<1x1x32xf32>, vector<1x1x32xf32>, vector<1x1x32xf32>, vector<1x1x32xf32>, vector<1x1x32xf32>, vector<1x1x32xf32>, vector<1x1x32xf32>, vector<1x1x32xf32> -> vector<1x8x32xf32>
    %536 = vector.shape_cast %535 : vector<1x8x32xf32> to vector<8x32xf32>
    %537 = arith.truncf %536 : vector<8x32xf32> to vector<8x32xbf16>
    %c0_85 = arith.constant 0 : index
    %c0_86 = arith.constant 0 : index
    %c0_87 = arith.constant 0 : index
    %538 = vector.load %arg10[%c0_85, %c0_86, %c0_87] : memref<3x32x32xbf16, #tpu.memory_space<vmem>>, vector<1x32x32xbf16>
    %539 = vector.shape_cast %538 : vector<1x32x32xbf16> to vector<32x32xbf16>
    %cst_88 = arith.constant dense<0.000000e+00> : vector<8x32xf32>
    %540 = tpu.matmul %537, %539, %cst_88 {dimension_numbers = #tpu.dot_dimension_numbers<[1], [0], [0], [1], [0, 0, 1, 1], [], []>} : vector<8x32xbf16>, vector<32x32xbf16>, vector<8x32xf32> -> vector<8x32xf32>
    %c0_89 = arith.constant 0 : index
    %c0_90 = arith.constant 0 : index
    %c0_91 = arith.constant 0 : index
    %541 = vector.load %arg11[%c0_89, %c0_90, %c0_91] : memref<3x1x32xf32, #tpu.memory_space<vmem>>, vector<1x1x32xf32>
    %542 = vector.shape_cast %541 : vector<1x1x32xf32> to vector<1x32xf32>
    %543 = vector.broadcast %542 : vector<1x32xf32> to vector<8x32xf32>
    %544 = arith.addf %540, %543 : vector<8x32xf32>
    %c1 = arith.constant 1 : index
    %c0_92 = arith.constant 0 : index
    %c0_93 = arith.constant 0 : index
    %545 = vector.load %arg10[%c1, %c0_92, %c0_93] : memref<3x32x32xbf16, #tpu.memory_space<vmem>>, vector<1x32x32xbf16>
    %546 = vector.shape_cast %545 : vector<1x32x32xbf16> to vector<32x32xbf16>
    %cst_94 = arith.constant dense<0.000000e+00> : vector<8x32xf32>
    %547 = tpu.matmul %537, %546, %cst_94 {dimension_numbers = #tpu.dot_dimension_numbers<[1], [0], [0], [1], [0, 0, 1, 1], [], []>} : vector<8x32xbf16>, vector<32x32xbf16>, vector<8x32xf32> -> vector<8x32xf32>
    %c1_95 = arith.constant 1 : index
    %c0_96 = arith.constant 0 : index
    %c0_97 = arith.constant 0 : index
    %548 = vector.load %arg11[%c1_95, %c0_96, %c0_97] : memref<3x1x32xf32, #tpu.memory_space<vmem>>, vector<1x1x32xf32>
    %549 = vector.shape_cast %548 : vector<1x1x32xf32> to vector<1x32xf32>
    %550 = vector.broadcast %549 : vector<1x32xf32> to vector<8x32xf32>
    %551 = arith.addf %547, %550 : vector<8x32xf32>
    %c2 = arith.constant 2 : index
    %c0_98 = arith.constant 0 : index
    %c0_99 = arith.constant 0 : index
    %552 = vector.load %arg10[%c2, %c0_98, %c0_99] : memref<3x32x32xbf16, #tpu.memory_space<vmem>>, vector<1x32x32xbf16>
    %553 = vector.shape_cast %552 : vector<1x32x32xbf16> to vector<32x32xbf16>
    %cst_100 = arith.constant dense<0.000000e+00> : vector<8x32xf32>
    %554 = tpu.matmul %537, %553, %cst_100 {dimension_numbers = #tpu.dot_dimension_numbers<[1], [0], [0], [1], [0, 0, 1, 1], [], []>} : vector<8x32xbf16>, vector<32x32xbf16>, vector<8x32xf32> -> vector<8x32xf32>
    %c2_101 = arith.constant 2 : index
    %c0_102 = arith.constant 0 : index
    %c0_103 = arith.constant 0 : index
    %555 = vector.load %arg11[%c2_101, %c0_102, %c0_103] : memref<3x1x32xf32, #tpu.memory_space<vmem>>, vector<1x1x32xf32>
    %556 = vector.shape_cast %555 : vector<1x1x32xf32> to vector<1x32xf32>
    %557 = vector.broadcast %556 : vector<1x32xf32> to vector<8x32xf32>
    %558 = arith.addf %554, %557 : vector<8x32xf32>
    %559 = vector.extract_strided_slice %544 {offsets = [0, 0], sizes = [8, 4], strides = [1, 1]} : vector<8x32xf32> to vector<8x4xf32>
    %560 = vector.shape_cast %559 : vector<8x4xf32> to vector<1x8x4xf32>
    %561 = vector.extract_strided_slice %544 {offsets = [0, 4], sizes = [8, 4], strides = [1, 1]} : vector<8x32xf32> to vector<8x4xf32>
    %562 = vector.shape_cast %561 : vector<8x4xf32> to vector<1x8x4xf32>
    %563 = vector.extract_strided_slice %544 {offsets = [0, 8], sizes = [8, 4], strides = [1, 1]} : vector<8x32xf32> to vector<8x4xf32>
    %564 = vector.shape_cast %563 : vector<8x4xf32> to vector<1x8x4xf32>
    %565 = vector.extract_strided_slice %544 {offsets = [0, 12], sizes = [8, 4], strides = [1, 1]} : vector<8x32xf32> to vector<8x4xf32>
    %566 = vector.shape_cast %565 : vector<8x4xf32> to vector<1x8x4xf32>
    %567 = vector.extract_strided_slice %544 {offsets = [0, 16], sizes = [8, 4], strides = [1, 1]} : vector<8x32xf32> to vector<8x4xf32>
    %568 = vector.shape_cast %567 : vector<8x4xf32> to vector<1x8x4xf32>
    %569 = vector.extract_strided_slice %544 {offsets = [0, 20], sizes = [8, 4], strides = [1, 1]} : vector<8x32xf32> to vector<8x4xf32>
    %570 = vector.shape_cast %569 : vector<8x4xf32> to vector<1x8x4xf32>
    %571 = vector.extract_strided_slice %544 {offsets = [0, 24], sizes = [8, 4], strides = [1, 1]} : vector<8x32xf32> to vector<8x4xf32>
    %572 = vector.shape_cast %571 : vector<8x4xf32> to vector<1x8x4xf32>
    %573 = vector.extract_strided_slice %544 {offsets = [0, 28], sizes = [8, 4], strides = [1, 1]} : vector<8x32xf32> to vector<8x4xf32>
    %574 = vector.shape_cast %573 : vector<8x4xf32> to vector<1x8x4xf32>
    %575 = tpu.concatenate %560, %562, %564, %566, %568, %570, %572, %574 in 0 : vector<1x8x4xf32>, vector<1x8x4xf32>, vector<1x8x4xf32>, vector<1x8x4xf32>, vector<1x8x4xf32>, vector<1x8x4xf32>, vector<1x8x4xf32>, vector<1x8x4xf32> -> vector<8x8x4xf32>
    %576 = arith.truncf %575 : vector<8x8x4xf32> to vector<8x8x4xbf16>
    %577 = vector.extract_strided_slice %551 {offsets = [0, 0], sizes = [8, 4], strides = [1, 1]} : vector<8x32xf32> to vector<8x4xf32>
    %578 = vector.shape_cast %577 : vector<8x4xf32> to vector<1x8x4xf32>
    %579 = vector.extract_strided_slice %551 {offsets = [0, 4], sizes = [8, 4], strides = [1, 1]} : vector<8x32xf32> to vector<8x4xf32>
    %580 = vector.shape_cast %579 : vector<8x4xf32> to vector<1x8x4xf32>
    %581 = vector.extract_strided_slice %551 {offsets = [0, 8], sizes = [8, 4], strides = [1, 1]} : vector<8x32xf32> to vector<8x4xf32>
    %582 = vector.shape_cast %581 : vector<8x4xf32> to vector<1x8x4xf32>
    %583 = vector.extract_strided_slice %551 {offsets = [0, 12], sizes = [8, 4], strides = [1, 1]} : vector<8x32xf32> to vector<8x4xf32>
    %584 = vector.shape_cast %583 : vector<8x4xf32> to vector<1x8x4xf32>
    %585 = vector.extract_strided_slice %551 {offsets = [0, 16], sizes = [8, 4], strides = [1, 1]} : vector<8x32xf32> to vector<8x4xf32>
    %586 = vector.shape_cast %585 : vector<8x4xf32> to vector<1x8x4xf32>
    %587 = vector.extract_strided_slice %551 {offsets = [0, 20], sizes = [8, 4], strides = [1, 1]} : vector<8x32xf32> to vector<8x4xf32>
    %588 = vector.shape_cast %587 : vector<8x4xf32> to vector<1x8x4xf32>
    %589 = vector.extract_strided_slice %551 {offsets = [0, 24], sizes = [8, 4], strides = [1, 1]} : vector<8x32xf32> to vector<8x4xf32>
    %590 = vector.shape_cast %589 : vector<8x4xf32> to vector<1x8x4xf32>
    %591 = vector.extract_strided_slice %551 {offsets = [0, 28], sizes = [8, 4], strides = [1, 1]} : vector<8x32xf32> to vector<8x4xf32>
    %592 = vector.shape_cast %591 : vector<8x4xf32> to vector<1x8x4xf32>
    %593 = tpu.concatenate %578, %580, %582, %584, %586, %588, %590, %592 in 0 : vector<1x8x4xf32>, vector<1x8x4xf32>, vector<1x8x4xf32>, vector<1x8x4xf32>, vector<1x8x4xf32>, vector<1x8x4xf32>, vector<1x8x4xf32>, vector<1x8x4xf32> -> vector<8x8x4xf32>
    %594 = arith.truncf %593 : vector<8x8x4xf32> to vector<8x8x4xbf16>
    %595 = vector.extract_strided_slice %558 {offsets = [0, 0], sizes = [8, 4], strides = [1, 1]} : vector<8x32xf32> to vector<8x4xf32>
    %596 = vector.shape_cast %595 : vector<8x4xf32> to vector<1x8x4xf32>
    %597 = vector.extract_strided_slice %558 {offsets = [0, 4], sizes = [8, 4], strides = [1, 1]} : vector<8x32xf32> to vector<8x4xf32>
    %598 = vector.shape_cast %597 : vector<8x4xf32> to vector<1x8x4xf32>
    %599 = vector.extract_strided_slice %558 {offsets = [0, 8], sizes = [8, 4], strides = [1, 1]} : vector<8x32xf32> to vector<8x4xf32>
    %600 = vector.shape_cast %599 : vector<8x4xf32> to vector<1x8x4xf32>
    %601 = vector.extract_strided_slice %558 {offsets = [0, 12], sizes = [8, 4], strides = [1, 1]} : vector<8x32xf32> to vector<8x4xf32>
    %602 = vector.shape_cast %601 : vector<8x4xf32> to vector<1x8x4xf32>
    %603 = vector.extract_strided_slice %558 {offsets = [0, 16], sizes = [8, 4], strides = [1, 1]} : vector<8x32xf32> to vector<8x4xf32>
    %604 = vector.shape_cast %603 : vector<8x4xf32> to vector<1x8x4xf32>
    %605 = vector.extract_strided_slice %558 {offsets = [0, 20], sizes = [8, 4], strides = [1, 1]} : vector<8x32xf32> to vector<8x4xf32>
    %606 = vector.shape_cast %605 : vector<8x4xf32> to vector<1x8x4xf32>
    %607 = vector.extract_strided_slice %558 {offsets = [0, 24], sizes = [8, 4], strides = [1, 1]} : vector<8x32xf32> to vector<8x4xf32>
    %608 = vector.shape_cast %607 : vector<8x4xf32> to vector<1x8x4xf32>
    %609 = vector.extract_strided_slice %558 {offsets = [0, 28], sizes = [8, 4], strides = [1, 1]} : vector<8x32xf32> to vector<8x4xf32>
    %610 = vector.shape_cast %609 : vector<8x4xf32> to vector<1x8x4xf32>
    %611 = tpu.concatenate %596, %598, %600, %602, %604, %606, %608, %610 in 0 : vector<1x8x4xf32>, vector<1x8x4xf32>, vector<1x8x4xf32>, vector<1x8x4xf32>, vector<1x8x4xf32>, vector<1x8x4xf32>, vector<1x8x4xf32>, vector<1x8x4xf32> -> vector<8x8x4xf32>
    %612 = arith.truncf %611 : vector<8x8x4xf32> to vector<8x8x4xbf16>
    "tpu.trace_start"() <{level = 10 : i32, message = "bqd,bkd->bqk"}> : () -> ()
    %cst_104 = arith.constant dense<0.000000e+00> : vector<8x8x8xf32>
    %613 = tpu.matmul %576, %594, %cst_104 {dimension_numbers = #tpu.dot_dimension_numbers<[2], [2], [1], [1], [0, 0, 0, 1, 1, 1], [0], [0]>} : vector<8x8x4xbf16>, vector<8x8x4xbf16>, vector<8x8x8xf32> -> vector<8x8x8xf32>
    "tpu.trace_stop"() : () -> ()
    %cst_105 = arith.constant 5.000000e-01 : f32
    %614 = vector.broadcast %cst_105 : f32 to vector<8x8x8xf32>
    %615 = arith.mulf %613, %614 : vector<8x8x8xf32>
    %cst_106 = arith.constant dense<0xFF800000> : vector<8x8xf32>
    %616 = vector.multi_reduction <maximumf>, %615, %cst_106 [2] : vector<8x8x8xf32> to vector<8x8xf32>
    %617 = vector.shape_cast %616 : vector<8x8xf32> to vector<8x8x1xf32>
    %618 = vector.broadcast %617 : vector<8x8x1xf32> to vector<8x8x8xf32>
    %619 = arith.subf %615, %618 : vector<8x8x8xf32>
    %620 = math.exp %619 : vector<8x8x8xf32>
    %cst_107 = arith.constant dense<0.000000e+00> : vector<8x8xf32>
    %621 = vector.multi_reduction <add>, %620, %cst_107 [2] : vector<8x8x8xf32> to vector<8x8xf32>
    %622 = vector.shape_cast %621 : vector<8x8xf32> to vector<8x8x1xf32>
    %623 = tpu.reciprocal %622 {approx = true} : vector<8x8x1xf32> -> vector<8x8x1xf32>
    %624 = vector.broadcast %623 : vector<8x8x1xf32> to vector<8x8x8xf32>
    %625 = arith.mulf %620, %624 : vector<8x8x8xf32>
    %626 = arith.truncf %625 : vector<8x8x8xf32> to vector<8x8x8xbf16>
    "tpu.trace_start"() <{level = 10 : i32, message = "bqk,bkd->bqd"}> : () -> ()
    %cst_108 = arith.constant dense<0.000000e+00> : vector<8x8x4xf32>
    %627 = tpu.matmul %626, %612, %cst_108 {dimension_numbers = #tpu.dot_dimension_numbers<[2], [1], [1], [2], [0, 0, 0, 1, 1, 2], [0], [0]>} : vector<8x8x8xbf16>, vector<8x8x4xbf16>, vector<8x8x4xf32> -> vector<8x8x4xf32>
    "tpu.trace_stop"() : () -> ()
    %628 = vector.extract_strided_slice %627 {offsets = [0, 0, 0], sizes = [1, 8, 4], strides = [1, 1, 1]} : vector<8x8x4xf32> to vector<1x8x4xf32>
    %629 = vector.shape_cast %628 : vector<1x8x4xf32> to vector<8x4xf32>
    %630 = vector.extract_strided_slice %627 {offsets = [1, 0, 0], sizes = [1, 8, 4], strides = [1, 1, 1]} : vector<8x8x4xf32> to vector<1x8x4xf32>
    %631 = vector.shape_cast %630 : vector<1x8x4xf32> to vector<8x4xf32>
    %632 = vector.extract_strided_slice %627 {offsets = [2, 0, 0], sizes = [1, 8, 4], strides = [1, 1, 1]} : vector<8x8x4xf32> to vector<1x8x4xf32>
    %633 = vector.shape_cast %632 : vector<1x8x4xf32> to vector<8x4xf32>
    %634 = vector.extract_strided_slice %627 {offsets = [3, 0, 0], sizes = [1, 8, 4], strides = [1, 1, 1]} : vector<8x8x4xf32> to vector<1x8x4xf32>
    %635 = vector.shape_cast %634 : vector<1x8x4xf32> to vector<8x4xf32>
    %636 = vector.extract_strided_slice %627 {offsets = [4, 0, 0], sizes = [1, 8, 4], strides = [1, 1, 1]} : vector<8x8x4xf32> to vector<1x8x4xf32>
    %637 = vector.shape_cast %636 : vector<1x8x4xf32> to vector<8x4xf32>
    %638 = vector.extract_strided_slice %627 {offsets = [5, 0, 0], sizes = [1, 8, 4], strides = [1, 1, 1]} : vector<8x8x4xf32> to vector<1x8x4xf32>
    %639 = vector.shape_cast %638 : vector<1x8x4xf32> to vector<8x4xf32>
    %640 = vector.extract_strided_slice %627 {offsets = [6, 0, 0], sizes = [1, 8, 4], strides = [1, 1, 1]} : vector<8x8x4xf32> to vector<1x8x4xf32>
    %641 = vector.shape_cast %640 : vector<1x8x4xf32> to vector<8x4xf32>
    %642 = vector.extract_strided_slice %627 {offsets = [7, 0, 0], sizes = [1, 8, 4], strides = [1, 1, 1]} : vector<8x8x4xf32> to vector<1x8x4xf32>
    %643 = vector.shape_cast %642 : vector<1x8x4xf32> to vector<8x4xf32>
    %644 = tpu.concatenate %629, %631, %633, %635, %637, %639, %641, %643 in 1 : vector<8x4xf32>, vector<8x4xf32>, vector<8x4xf32>, vector<8x4xf32>, vector<8x4xf32>, vector<8x4xf32>, vector<8x4xf32>, vector<8x4xf32> -> vector<8x32xf32>
    %645 = arith.truncf %644 : vector<8x32xf32> to vector<8x32xbf16>
    %c0_109 = arith.constant 0 : index
    %c0_110 = arith.constant 0 : index
    %646 = vector.load %arg12[%c0_109, %c0_110] : memref<32x32xbf16, #tpu.memory_space<vmem>>, vector<32x32xbf16>
    %cst_111 = arith.constant dense<0.000000e+00> : vector<8x32xf32>
    %647 = tpu.matmul %645, %646, %cst_111 {dimension_numbers = #tpu.dot_dimension_numbers<[1], [0], [0], [1], [0, 0, 1, 1], [], []>} : vector<8x32xbf16>, vector<32x32xbf16>, vector<8x32xf32> -> vector<8x32xf32>
    %c0_112 = arith.constant 0 : index
    %c0_113 = arith.constant 0 : index
    %648 = vector.load %arg13[%c0_112, %c0_113] : memref<1x32xf32, #tpu.memory_space<vmem>>, vector<1x32xf32>
    %649 = vector.broadcast %648 : vector<1x32xf32> to vector<8x32xf32>
    %650 = arith.addf %647, %649 : vector<8x32xf32>
    %651 = arith.addf %536, %650 : vector<8x32xf32>
    %652 = arith.truncf %651 : vector<8x32xf32> to vector<8x32xbf16>
    %c0_114 = arith.constant 0 : index
    %c0_115 = arith.constant 0 : index
    %653 = vector.load %arg14[%c0_114, %c0_115] : memref<32x128xbf16, #tpu.memory_space<vmem>>, vector<32x128xbf16>
    %cst_116 = arith.constant dense<0.000000e+00> : vector<8x128xf32>
    %654 = tpu.matmul %652, %653, %cst_116 {dimension_numbers = #tpu.dot_dimension_numbers<[1], [0], [0], [1], [0, 0, 1, 1], [], []>} : vector<8x32xbf16>, vector<32x128xbf16>, vector<8x128xf32> -> vector<8x128xf32>
    %c0_117 = arith.constant 0 : index
    %c0_118 = arith.constant 0 : index
    %655 = vector.load %arg15[%c0_117, %c0_118] : memref<1x128xf32, #tpu.memory_space<vmem>>, vector<1x128xf32>
    %656 = vector.broadcast %655 : vector<1x128xf32> to vector<8x128xf32>
    %657 = arith.addf %654, %656 : vector<8x128xf32>
    %658 = vector.shape_cast %657 : vector<8x128xf32> to vector<1x8x128xf32>
    %c0_119 = arith.constant 0 : index
    %c0_120 = arith.constant 0 : index
    %c0_121 = arith.constant 0 : index
    %659 = vector.load %arg16[%c0_119, %c0_120, %c0_121] : memref<1x8x128xf32, #tpu.memory_space<vmem>>, vector<1x8x128xf32>
    tpu.vector_store %arg16[%c0_119, %c0_120, %c0_121], %658 {strides = array<i32>} : memref<1x8x128xf32, #tpu.memory_space<vmem>>, vector<1x8x128xf32>,
    return
  }
  func.func @transform_0(%arg0: i32) -> (i32, i32, i32) {
    %c0_i32 = arith.constant 0 : i32
    %c0_i32_0 = arith.constant 0 : i32
    %c0_i32_1 = arith.constant 0 : i32
    return %arg0, %c0_i32, %c0_i32_0 : i32, i32, i32
  }
  func.func @transform_1(%arg0: i32) -> (i32, i32) {
    %c0_i32 = arith.constant 0 : i32
    %c0_i32_0 = arith.constant 0 : i32
    %c0_i32_1 = arith.constant 0 : i32
    return %c0_i32, %c0_i32_0 : i32, i32
  }
  func.func @transform_2(%arg0: i32) -> (i32, i32) {
    %c0_i32 = arith.constant 0 : i32
    %c0_i32_0 = arith.constant 0 : i32
    %c0_i32_1 = arith.constant 0 : i32
    return %c0_i32, %c0_i32_0 : i32, i32
  }
  func.func @transform_3(%arg0: i32) -> (i32, i32) {
    %c0_i32 = arith.constant 0 : i32
    %c0_i32_0 = arith.constant 0 : i32
    %c0_i32_1 = arith.constant 0 : i32
    return %c0_i32, %c0_i32_0 : i32, i32
  }
  func.func @transform_4(%arg0: i32) -> (i32, i32) {
    %c0_i32 = arith.constant 0 : i32
    %c0_i32_0 = arith.constant 0 : i32
    %c0_i32_1 = arith.constant 0 : i32
    return %c0_i32, %c0_i32_0 : i32, i32
  }
  func.func @transform_5(%arg0: i32) -> (i32, i32) {
    %c0_i32 = arith.constant 0 : i32
    %c0_i32_0 = arith.constant 0 : i32
    %c0_i32_1 = arith.constant 0 : i32
    return %c0_i32, %c0_i32_0 : i32, i32
  }
  func.func @transform_6(%arg0: i32) -> (i32, i32) {
    %c0_i32 = arith.constant 0 : i32
    %c0_i32_0 = arith.constant 0 : i32
    %c0_i32_1 = arith.constant 0 : i32
    return %c0_i32, %c0_i32_0 : i32, i32
  }
  func.func @transform_7(%arg0: i32) -> (i32, i32) {
    %c0_i32 = arith.constant 0 : i32
    %c0_i32_0 = arith.constant 0 : i32
    %c0_i32_1 = arith.constant 0 : i32
    return %c0_i32, %c0_i32_0 : i32, i32
  }
  func.func @transform_8(%arg0: i32) -> (i32, i32) {
    %c0_i32 = arith.constant 0 : i32
    %c0_i32_0 = arith.constant 0 : i32
    %c0_i32_1 = arith.constant 0 : i32
    return %c0_i32, %c0_i32_0 : i32, i32
  }
  func.func @transform_9(%arg0: i32) -> (i32, i32, i32) {
    %c0_i32 = arith.constant 0 : i32
    %c0_i32_0 = arith.constant 0 : i32
    %c0_i32_1 = arith.constant 0 : i32
    %c0_i32_2 = arith.constant 0 : i32
    return %c0_i32, %c0_i32_0, %c0_i32_1 : i32, i32, i32
  }
  func.func @transform_10(%arg0: i32) -> (i32, i32, i32) {
    %c0_i32 = arith.constant 0 : i32
    %c0_i32_0 = arith.constant 0 : i32
    %c0_i32_1 = arith.constant 0 : i32
    %c0_i32_2 = arith.constant 0 : i32
    return %c0_i32, %c0_i32_0, %c0_i32_1 : i32, i32, i32
  }
  func.func @transform_11(%arg0: i32) -> (i32, i32) {
    %c0_i32 = arith.constant 0 : i32
    %c0_i32_0 = arith.constant 0 : i32
    %c0_i32_1 = arith.constant 0 : i32
    return %c0_i32, %c0_i32_0 : i32, i32
  }
  func.func @transform_12(%arg0: i32) -> (i32, i32) {
    %c0_i32 = arith.constant 0 : i32
    %c0_i32_0 = arith.constant 0 : i32
    %c0_i32_1 = arith.constant 0 : i32
    return %c0_i32, %c0_i32_0 : i32, i32
  }
  func.func @transform_13(%arg0: i32) -> (i32, i32) {
    %c0_i32 = arith.constant 0 : i32
    %c0_i32_0 = arith.constant 0 : i32
    %c0_i32_1 = arith.constant 0 : i32
    return %c0_i32, %c0_i32_0 : i32, i32
  }
  func.func @transform_14(%arg0: i32) -> (i32, i32) {
    %c0_i32 = arith.constant 0 : i32
    %c0_i32_0 = arith.constant 0 : i32
    %c0_i32_1 = arith.constant 0 : i32
    return %c0_i32, %c0_i32_0 : i32, i32
  }
  func.func @transform_15(%arg0: i32) -> (i32, i32, i32) {
    %c0_i32 = arith.constant 0 : i32
    %c0_i32_0 = arith.constant 0 : i32
    %c0_i32_1 = arith.constant 0 : i32
    return %arg0, %c0_i32, %c0_i32_0 : i32, i32, i32
  }
}

</mosaic_0001>

<bundles_post_ra>
// kernel: tpu_custom_call.1
= control target key start
LH: loop header
LB: loop body
LE: loop exit
PB: predicated region body
PF: predicated region fallthrough
CT: control target
= control target key end

     0   :  { %s5782_s0 = inlined_call_operand.hbm [shape: bf16[2,8,48], index: 0, kind: input, shape index: {}]   ;;  %s5783_s1 = inlined_call_operand.hbm [shape: bf16[48,128], index: 1, kind: input, shape index: {}]   ;;  %s5784_s2 = inlined_call_operand.hbm [shape: bf16[32,128], index: 2, kind: input, shape index: {}]   ;;  %s5785_s3 = inlined_call_operand.vmem [shape: f32[1,128], index: 3, kind: input, shape index: {}]   ;;  %s5786_s4 = inlined_call_operand.hbm [shape: f32[1,128], index: 4, kind: input, shape index: {}]   ;;  %s5787_s5 = inlined_call_operand.vmem [shape: bf16[32,128], index: 5, kind: input, shape index: {}]   ;;  %s5788_s6 = inlined_call_operand.hbm [shape: bf16[32,128], index: 6, kind: input, shape index: {}]   ;;  %s5789_s7 = inlined_call_operand.hbm [shape: f32[1,128], index: 7, kind: input, shape index: {}]   ;;  %s5790_s8 = inlined_call_operand.hbm [shape: f32[1,128], index: 8, kind: input, shape index: {}]   ;;  %s5791_s9 = inlined_call_operand.hbm [shape: bf16[3,32,32], index: 9, kind: input, shape index: {}]   ;;  %s5792_s10 = inlined_call_operand.hbm [shape: f32[3,1,32], index: 10, kind: input, shape index: {}]   ;;  %s5793_s11 = inlined_call_operand.vmem [shape: bf16[32,32], index: 11, kind: input, shape index: {}]   ;;  %s5794_s12 = inlined_call_operand.hbm [shape: f32[1,32], index: 12, kind: input, shape index: {}]   ;;  %s5795_s13 = inlined_call_operand.vmem [shape: bf16[32,128], index: 13, kind: input, shape index: {}]   ;;  %s5796_s14 = inlined_call_operand.vmem [shape: f32[1,128], index: 14, kind: input, shape index: {}]   ;;  %s5797_s15 = inlined_call_operand.hbm [shape: f32[2,8,128], index: 15, kind: output, shape index: {}]  }
   0x1   :  { %5808 = sst [smem:[#allocation28_spill]] %s5782_s0 }
   0x2   :  { %5809 = sst [smem:[#allocation29_spill]] %s5783_s1 }
   0x3   :  { %5810 = sst [smem:[#allocation30_spill]] %s5784_s2 }
   0x4   :  { %5811 = sst [smem:[#allocation31_spill]] %s5785_s3 }
   0x5   :  { %5812 = sst [smem:[#allocation32_spill]] %s5787_s5 }
   0x6   :  { %5813 = sst [smem:[#allocation33_spill]] %s5793_s11 }
   0x7   :  { %5814 = sst [smem:[#allocation34_spill]] %s5795_s13 }
   0x8   :  { %5815 = sst [smem:[#allocation35_spill]] %s5796_s14 }
   0x9   :  { %5816 = sst [smem:[#allocation36_spill]] %s5797_s15 }
   0xa   :  { %20 = vsyncpa [#allocation3], 0 }
   0xb   :  { %22 = vsyncpa [#allocation3 + $0x1], 0 }
   0xc   :  { %23 = vsyncpa [#allocation6], 0 }
   0xd   :  { %24 = vsyncpa [#allocation9], 0 }
   0xe   :  { %25 = vsyncpa [#allocation12], 0 }
   0xf   :  { %26 = vsyncpa [#allocation15], 0 }
  0x10   :  { %27 = vsyncpa [#allocation18], 0 }
  0x11   :  { %28 = vsyncpa [#allocation4], 0 }
  0x12   :  { %30 = vsyncpa [#allocation4 + $0x1], 0  ;;  %s4906_s18 = smov 0   ;;  %s4908_s19 = smov 0  }
  0x13   :  { %s4910_s20 = smov 0   ;;  %s4912_s21 = smov 0  }
  0x14 LB: > { %s4791_s22 = smov [#allocation5]   ;;  %s4927_s24 = sadd.s32 4294967295, %s4789_s21   ;;  %s4789_s21 = sphi %s4912_s21, %s5854_s21   ;;  %s4785_s20 = sphi %s4910_s20, %s5853_s20   ;;  %s4781_s19 = sphi %s4908_s19, %s5852_s19   ;;  %s4777_s18 = sphi %s4906_s18, %s5851_s18  }
  0x15   : > { %s399_s23 = sshll.u32 %s4791_s22, 4  ;;  %p3621_p0 = scmp.ge.s32.totalorder %s4789_s21, 1  ;;  %s4932_s23 = int_to_ptr.vmem [resolvable:$true] %s399_s23 }
  0x16   : > { %p5805_p1 = scmp.eq.s32.totalorder %s4927_s24, 0  ;;  %p387_p2 = scmp.lt.s32.totalorder %s4789_s21, 3 }
  0x17   : > { %s4792_s26 = smov [#allocation8]   ;;  %s4793_s29 = smov [#allocation11]  }
  0x18   : > { %p4934_p3 = pnand %p3621_p0, %p387_p2  ;;  %s429_s27 = sshll.u32 %s4792_s26, 4  ;;  %s4947_s27 = int_to_ptr.vmem [resolvable:$true] %s429_s27 }
  0x19   : > { %s456_s30 = sshll.u32 %s4793_s29, 4  ;;  %s5820_s1 = sld [smem:[#allocation29_spill]]  ;;  %s4949_s30 = int_to_ptr.vmem [resolvable:$true] %s456_s30 }
  0x1a   : > { %s5817_s25 = scalar_select %p4934_p3, 1, 0 }
  0x1b   : > { %p4153_p5 = pneg %p4934_p3 }
  0x1c   : > { %5818 = sst [smem:[#allocation27_spill]] %s5817_s25 }
  0x1d   : > { %p4943_p6 = pnand %p4153_p5, %p5805_p1 }
  0x1f   : > { %s4421_s22 = scalar_lea.hbm %s5820_s1, 384  ;;  %p4959_p8 = pneg %p4943_p6 }
  0x20   : > { %p4422_p7 = scmp.ne.s32.totalorder %s5820_s1, %s4421_s22  ;;  %p4428_p11 = scmp.lt.u32.totalorder %s4421_s22, %s5820_s1 }
  0x22   : > { %p4424_p9 = pnand %p4959_p8, %p4422_p7 }
  0x24   : > { %p4425_p10 = pneg %p4424_p9 }
  0x26   : > { %p4430_p12 = pnand %p4428_p11, %p4425_p10 }
  0x28   : > { %4433 = shalt.err (!%p4430_p12)
}
  0x29   : > { %s4434_s14 = scalar_lea.vmem %s4932_s23, 384  ;;  %p4442_p5 = scmp.lt.s32.totalorder %s4932_s23, %s4932_s23 }
  0x2a   : > { %p4435_p13 = scmp.ne.s32.totalorder %s4932_s23, %s4434_s14  ;;  %p4443_p4 = scmp.lt.s32.totalorder %s4434_s14, %s4434_s14 }
  0x2c   : > { %p4437_p0 = pnand %p4435_p13, %p4959_p8  ;;  %p4444_p7 = por %p4443_p4, %p4442_p5 }
  0x2e   : > { %p4438_p2 = pneg %p4437_p0 }
  0x30   : > { %p4445_p9 = pnand %p4444_p7, %p4438_p2 }
  0x32   : > { %4448 = shalt.err (!%p4445_p9)
}
  0x33   : > { %s5803_s15 = smov 64   ;;  %s4795_s13 = smov 4  }
  0x34   : > { %4156 = dma.hbm_to_vmem [thread:$0]  (!%p4943_p6), %s5820_s1, 384, %s4932_s23, [#allocation6], %s5803_s15, %s5803_s15, %s4795_s13  }
  0x35   : > { %s4449_s14 = scalar_lea.hbm %s5786_s4, 16 }
  0x36   : > { %p4450_p4 = scmp.ne.s32.totalorder %s5786_s4, %s4449_s14  ;;  %p4456_p12 = scmp.lt.u32.totalorder %s4449_s14, %s5786_s4 }
  0x38   : > { %p4452_p10 = pnand %p4450_p4, %p4959_p8 }
  0x3a   : > { %p4453_p11 = pneg %p4452_p10 }
  0x3c   : > { %p4458_p13 = pnand %p4456_p12, %p4453_p11 }
  0x3e   : > { %4461 = shalt.err (!%p4458_p13)
}
  0x3f   : > { %s4462_s23 = scalar_lea.vmem %s4947_s27, 16  ;;  %s4469_s5 = scalar_lea.vmem %s4947_s27, 32 }
  0x40   : > { %p4463_p0 = scmp.ne.s32.totalorder %s4947_s27, %s4462_s23  ;;  %p4470_p7 = scmp.lt.s32.totalorder %s4947_s27, %s4947_s27 }
  0x41   : > { %p4471_p9 = scmp.lt.s32.totalorder %s4469_s5, %s4462_s23 }
  0x42   : > { %p4465_p2 = pnand %p4463_p0, %p4959_p8 }
  0x43   : > { %p4472_p4 = por %p4471_p9, %p4470_p7 }
  0x44   : > { %p4466_p5 = pneg %p4465_p2 }
  0x46   : > { %p4473_p10 = pnand %p4472_p4, %p4466_p5 }
  0x48   : > { %4476 = shalt.err (!%p4473_p10)
}
  0x49   : > { %4162 = dma.hbm_to_vmem [thread:$0]  (!%p4943_p6), %s5786_s4, 16, %s4947_s27, [#allocation9]  }
  0x4a   : > { %s4477_s17 = scalar_lea.hbm %s5789_s7, 16 }
  0x4b   : > { %p4478_p11 = scmp.ne.s32.totalorder %s5789_s7, %s4477_s17  ;;  %p4484_p0 = scmp.lt.u32.totalorder %s4477_s17, %s5789_s7 }
  0x4d   : > { %p4480_p12 = pnand %p4478_p11, %p4959_p8 }
  0x4f   : > { %p4481_p13 = pneg %p4480_p12 }
  0x51   : > { %p4486_p2 = pnand %p4484_p0, %p4481_p13 }
  0x53   : > { %4489 = shalt.err (!%p4486_p2)
}
  0x54   : > { %s4490_s27 = scalar_lea.vmem %s4949_s30, 16  ;;  %s4497_s5 = scalar_lea.vmem %s4949_s30, 32 }
  0x55   : > { %p4491_p5 = scmp.ne.s32.totalorder %s4949_s30, %s4490_s27  ;;  %p4498_p4 = scmp.lt.s32.totalorder %s4949_s30, %s4949_s30 }
  0x56   : > { %p4499_p10 = scmp.lt.s32.totalorder %s4497_s5, %s4490_s27 }
  0x57   : > { %p4493_p7 = pnand %p4491_p5, %p4959_p8 }
  0x58   : > { %p4500_p11 = por %p4499_p10, %p4498_p4 }
  0x59   : > { %p4494_p9 = pneg %p4493_p7 }
  0x5b   : > { %p4501_p12 = pnand %p4500_p11, %p4494_p9 }
  0x5d   : > { %4504 = shalt.err (!%p4501_p12)
}
  0x5e   : > { %4168 = dma.hbm_to_vmem [thread:$0]  (!%p4943_p6), %s5789_s7, 16, %s4949_s30, [#allocation12]  }
  0x5f   : > { %s4796_s25 = smov [#allocation14]   ;;  %s4797_s17 = smov [#allocation7]  }
  0x60   : > { %s477_s16 = sshll.u32 %s4796_s25, 4  ;;  %s412_s22 = sshll.u32 %s4797_s17, 4  ;;  %s478_s16 = int_to_ptr.vmem [resolvable:$true] %s477_s16  ;;  %s413_s22 = int_to_ptr.vmem [resolvable:$true] %s412_s22 }
  0x61   : > { %s4505_s23 = scalar_lea.hbm %s5791_s9, 768 }
  0x62   : > { %p4506_p13 = scmp.ne.s32.totalorder %s5791_s9, %s4505_s23  ;;  %p4512_p5 = scmp.lt.u32.totalorder %s4505_s23, %s5791_s9 }
  0x64   : > { %p4508_p0 = pnand %p4506_p13, %p4959_p8 }
  0x66   : > { %p4509_p2 = pneg %p4508_p0 }
  0x68   : > { %p4514_p7 = pnand %p4512_p5, %p4509_p2 }
  0x6a   : > { %4517 = shalt.err (!%p4514_p7)
}
  0x6b   : > { %s4518_s30 = scalar_lea.vmem %s478_s16, 768  ;;  %p4526_p11 = scmp.lt.s32.totalorder %s478_s16, %s478_s16 }
  0x6c   : > { %p4519_p9 = scmp.ne.s32.totalorder %s478_s16, %s4518_s30  ;;  %p4527_p12 = scmp.lt.s32.totalorder %s4518_s30, %s4518_s30 }
  0x6e   : > { %p4521_p4 = pnand %p4519_p9, %p4959_p8  ;;  %p4528_p1 = por %p4527_p12, %p4526_p11 }
  0x70   : > { %p4522_p10 = pneg %p4521_p4 }
  0x72   : > { %p4529_p3 = pnand %p4528_p1, %p4522_p10 }
  0x74   : > { %4532 = shalt.err (!%p4529_p3)
}
  0x75   : > { %s5822_s11 = smov 64   ;;  %s5823_s2 = sld [smem:[#allocation30_spill]] }
  0x76   : > { %4174 = dma.hbm_to_vmem [thread:$0]  (!%p4943_p6), %s5791_s9, 768, %s478_s16, [#allocation15], %s5822_s11, %s5822_s11, %s4795_s13  }
  0x7b   : > { %s4533_s14 = scalar_lea.hbm %s5823_s2, 256 }
  0x7c   : > { %p4534_p1 = scmp.ne.s32.totalorder %s5823_s2, %s4533_s14  ;;  %p4540_p0 = scmp.lt.u32.totalorder %s4533_s14, %s5823_s2 }
  0x7e   : > { %p4536_p3 = pnand %p4534_p1, %p4959_p8 }
  0x80   : > { %p4537_p13 = pneg %p4536_p3 }
  0x82   : > { %p4542_p2 = pnand %p4540_p0, %p4537_p13 }
  0x84   : > { %4545 = shalt.err (!%p4542_p2)
}
  0x85   : > { %s4546_s30 = scalar_lea.vmem %s413_s22, 256  ;;  %p4554_p4 = scmp.lt.s32.totalorder %s413_s22, %s413_s22 }
  0x86   : > { %p4547_p5 = scmp.ne.s32.totalorder %s413_s22, %s4546_s30  ;;  %p4555_p10 = scmp.lt.s32.totalorder %s4546_s30, %s4546_s30 }
  0x88   : > { %p4549_p7 = pnand %p4547_p5, %p4959_p8  ;;  %p4556_p11 = por %p4555_p10, %p4554_p4 }
  0x8a   : > { %p4550_p9 = pneg %p4549_p7 }
  0x8c   : > { %p4557_p12 = pnand %p4556_p11, %p4550_p9 }
  0x8e   : > { %4560 = shalt.err (!%p4557_p12)
}
  0x8f   : > { %4159 = dma.hbm_to_vmem [thread:$0]  (!%p4943_p6), %s5823_s2, 256, %s413_s22, [#allocation6], %s5822_s11, %s5822_s11, %s4795_s13  }
  0x90   : > { %s4798_s25 = smov [#allocation10]   ;;  %s4799_s29 = smov [#allocation13]  }
  0x91   : > { %s442_s17 = sshll.u32 %s4798_s25, 4  ;;  %s467_s14 = sshll.u32 %s4799_s29, 4  ;;  %s443_s17 = int_to_ptr.vmem [resolvable:$true] %s442_s17  ;;  %s468_s14 = int_to_ptr.vmem [resolvable:$true] %s467_s14 }
  0x92   : > { %s4561_s5 = scalar_lea.hbm %s5788_s6, 256 }
  0x93   : > { %p4562_p1 = scmp.ne.s32.totalorder %s5788_s6, %s4561_s5  ;;  %p4568_p0 = scmp.lt.u32.totalorder %s4561_s5, %s5788_s6 }
  0x95   : > { %p4564_p3 = pnand %p4562_p1, %p4959_p8 }
  0x97   : > { %p4565_p13 = pneg %p4564_p3 }
  0x99   : > { %p4570_p2 = pnand %p4568_p0, %p4565_p13 }
  0x9b   : > { %4573 = shalt.err (!%p4570_p2)
}
  0x9c   : > { %s4574_s22 = scalar_lea.vmem %s443_s17, 256  ;;  %p4582_p4 = scmp.lt.s32.totalorder %s443_s17, %s443_s17 }
  0x9d   : > { %p4575_p5 = scmp.ne.s32.totalorder %s443_s17, %s4574_s22  ;;  %p4583_p10 = scmp.lt.s32.totalorder %s4574_s22, %s4574_s22 }
  0x9f   : > { %p4577_p7 = pnand %p4575_p5, %p4959_p8  ;;  %p4584_p11 = por %p4583_p10, %p4582_p4 }
  0xa1   : > { %p4578_p9 = pneg %p4577_p7 }
  0xa3   : > { %p4585_p12 = pnand %p4584_p11, %p4578_p9 }
  0xa5   : > { %4588 = shalt.err (!%p4585_p12)
}
  0xa6   : > { %4165 = dma.hbm_to_vmem [thread:$0]  (!%p4943_p6), %s5788_s6, 256, %s443_s17, [#allocation9], %s5822_s11, %s5822_s11, %s4795_s13  }
  0xa7   : > { %s4589_s23 = scalar_lea.hbm %s5790_s8, 16 }
  0xa8   : > { %p4590_p1 = scmp.ne.s32.totalorder %s5790_s8, %s4589_s23  ;;  %p4596_p0 = scmp.lt.u32.totalorder %s4589_s23, %s5790_s8 }
  0xaa   : > { %p4592_p3 = pnand %p4590_p1, %p4959_p8 }
  0xac   : > { %p4593_p13 = pneg %p4592_p3 }
  0xae   : > { %p4598_p2 = pnand %p4596_p0, %p4593_p13 }
  0xb0   : > { %4601 = shalt.err (!%p4598_p2)
}
  0xb1   : > { %s4602_s16 = scalar_lea.vmem %s468_s14, 16  ;;  %s4609_s13 = scalar_lea.vmem %s468_s14, 32 }
  0xb2   : > { %p4603_p5 = scmp.ne.s32.totalorder %s468_s14, %s4602_s16  ;;  %p4610_p4 = scmp.lt.s32.totalorder %s468_s14, %s468_s14 }
  0xb3   : > { %p4611_p10 = scmp.lt.s32.totalorder %s4609_s13, %s4602_s16 }
  0xb4   : > { %p4605_p7 = pnand %p4603_p5, %p4959_p8 }
  0xb5   : > { %p4612_p11 = por %p4611_p10, %p4610_p4 }
  0xb6   : > { %p4606_p9 = pneg %p4605_p7 }
  0xb8   : > { %p4613_p12 = pnand %p4612_p11, %p4606_p9 }
  0xba   : > { %4616 = shalt.err (!%p4613_p12)
}
  0xbb   : > { %4171 = dma.hbm_to_vmem [thread:$0]  (!%p4943_p6), %s5790_s8, 16, %s468_s14, [#allocation12]  }
  0xbc   : > { %s4800_s22 = smov [#allocation16]   ;;  %s4617_s29 = scalar_lea.hbm %s5792_s10, 48 }
  0xbd   : > { %s490_s1 = sshll.u32 %s4800_s22, 4  ;;  %p4618_p1 = scmp.ne.s32.totalorder %s5792_s10, %s4617_s29  ;;  %s491_s1 = int_to_ptr.vmem [resolvable:$true] %s490_s1 }
  0xbe   : > { %p4624_p0 = scmp.lt.u32.totalorder %s4617_s29, %s5792_s10 }
  0xbf   : > { %p4620_p3 = pnand %p4618_p1, %p4959_p8 }
  0xc1   : > { %p4621_p13 = pneg %p4620_p3 }
  0xc3   : > { %p4626_p2 = pnand %p4624_p0, %p4621_p13 }
  0xc5   : > { %4629 = shalt.err (!%p4626_p2)
}
  0xc6   : > { %s4630_s14 = scalar_lea.vmem %s491_s1, 48  ;;  %s4637_s30 = scalar_lea.vmem %s491_s1, 64 }
  0xc7   : > { %p4631_p5 = scmp.ne.s32.totalorder %s491_s1, %s4630_s14  ;;  %p4638_p4 = scmp.lt.s32.totalorder %s491_s1, %s491_s1 }
  0xc8   : > { %p4639_p10 = scmp.lt.s32.totalorder %s4637_s30, %s4630_s14 }
  0xc9   : > { %p4633_p7 = pnand %p4631_p5, %p4959_p8 }
  0xca   : > { %p4640_p11 = por %p4639_p10, %p4638_p4 }
  0xcb   : > { %p4634_p9 = pneg %p4633_p7 }
  0xcd   : > { %p4641_p12 = pnand %p4640_p11, %p4634_p9 }
  0xcf   : > { %4644 = shalt.err (!%p4641_p12)
}
  0xd0   : > { %s4801_s16 = smov 16   ;;  %s4802_s13 = smov 1  }
  0xd1   : > { %4177 = dma.hbm_to_vmem [thread:$0]  (!%p4943_p6), %s5792_s10, 48, %s491_s1, [#allocation15], %s4801_s16, %s4801_s16, %s4802_s13  }
  0xd2   : > { %s4803_s22 = smov [#allocation17]   ;;  %s4645_s23 = scalar_lea.hbm %s5794_s12, 16 }
  0xd3   : > { %s507_s15 = sshll.u32 %s4803_s22, 4  ;;  %p4646_p1 = scmp.ne.s32.totalorder %s5794_s12, %s4645_s23  ;;  %s508_s15 = int_to_ptr.vmem [resolvable:$true] %s507_s15 }
  0xd4   : > { %p4652_p0 = scmp.lt.u32.totalorder %s4645_s23, %s5794_s12 }
  0xd5   : > { %p4648_p3 = pnand %p4646_p1, %p4959_p8 }
  0xd7   : > { %p4649_p13 = pneg %p4648_p3 }
  0xd9   : > { %p4654_p2 = pnand %p4652_p0, %p4649_p13 }
  0xdb   : > { %4657 = shalt.err (!%p4654_p2)
}
  0xdc   : > { %s4658_s1 = scalar_lea.vmem %s508_s15, 16  ;;  %s4665_s30 = scalar_lea.vmem %s508_s15, 32 }
  0xdd   : > { %p4659_p5 = scmp.ne.s32.totalorder %s508_s15, %s4658_s1  ;;  %p4666_p4 = scmp.lt.s32.totalorder %s508_s15, %s508_s15 }
  0xde   : > { %p4667_p10 = scmp.lt.s32.totalorder %s4665_s30, %s4658_s1 }
  0xdf   : > { %p4661_p7 = pnand %p4659_p5, %p4959_p8 }
  0xe0   : > { %p4668_p11 = por %p4667_p10, %p4666_p4 }
  0xe1   : > { %p4662_p9 = pneg %p4661_p7 }
  0xe3   : > { %p4669_p12 = pnand %p4668_p11, %p4662_p9 }
  0xe5   : > { %4672 = shalt.err (!%p4669_p12)
}
  0xe6   : > { %4180 = dma.hbm_to_vmem [thread:$0]  (!%p4943_p6), %s5794_s12, 16, %s508_s15, [#allocation18]  }
  0xe7   : > { %s3620_s26 = sadd.s32 4294967294, %s4789_s21   ;;  %s5150_s28 = sadd.s32 1, %s4789_s21  }
  0xe8   : > { %s43_s11 = sadd.s32 1, %s4785_s20  ;;  %s40_s17 = ssub.s32 %s4789_s21, %s5150_s28 }
  0xe9   : > { %p50_p8 = scmp.ne.s32.totalorder %s4785_s20, %s4781_s19  ;;  %p41_p1 = scmp.eq.s32.totalorder %s40_s17, 0 }
  0xea   : > { %p51_p3 = scmp.eq.s32.totalorder %s4789_s21, 0  ;;  %p56_p13 = scmp.ne.s32.totalorder %s4781_s19, %s4777_s18 }
  0xeb   : > { %p374_p0 = scmp.eq.s32.totalorder %s4927_s24, 1  ;;  %p5824_p5 = scmp.eq.s32.totalorder %s4927_s24, 0 }
  0xec   : > { %s5162_s22 = scalar_select %p41_p1, %s4785_s20, %s43_s11  }
  0xed   : > { %p52_p2 = por %p51_p3, %p50_p8  ;;  %p5166_p7 = por %p5824_p5, %p56_p13 }
  0xee   : > { %p5170_p6 = por %p374_p0, %p50_p8  ;;  %p380_p9 = scmp.eq.s32.totalorder %s3620_s26, 1 }
  0xef   : > { %p4198_p4 = scmp.lt.s32.totalorder %s4789_s21, 2  ;;  %s524_s29 = sand.u32 1, %s4785_s20  }
  0xf0   : > { %s5826_s15 = scalar_select %p5170_p6, 1, 0 }
  0xf1   : > { %p5176_p10 = por %p380_p9, %p56_p13  ;;  %s3632_s27 = sshll.u32 %s524_s29, 2 }
  0xf2   : > { %s3633_s5 = sshll.u32 %s4789_s21, 6  ;;  %s5828_s0 = sld [smem:[#allocation28_spill]] }
  0xf3   : > { %s5827_s23 = scalar_select %p5176_p10, 1, 0 }
  0xf4   : > { %s528_s30 = scalar_lea.vmem [#allocation2], %s3632_s27  ;;  %p5186_p11 = pnand %p4198_p4, %p52_p2 }
  0xf5   : > { %s535_s16 = sshll.u32 %s528_s30, 4  ;;  %s525_s26 = scalar_lea.sflag [#allocation3], %s524_s29  ;;  %s5190_s16 = int_to_ptr.vmem [resolvable:$true] %s535_s16 }
  0xf6   : > { %p4675_p8 = pneg %p5186_p11 }
  0xf8   : > { %s5184_s1 = scalar_lea.hbm %s5828_s0, %s3633_s5  ;;  %s4678_s5 = scalar_lea.hbm %s5828_s0, 128 }
  0xf9   : > { %s4673_s11 = scalar_lea.hbm %s5184_s1, 64  ;;  %p4679_p13 = scmp.lt.u32.totalorder %s5184_s1, %s5828_s0 }
  0xfa   : > { %p4674_p12 = scmp.ne.s32.totalorder %s5184_s1, %s4673_s11  ;;  %p4680_p0 = scmp.lt.u32.totalorder %s4678_s5, %s4673_s11 }
  0xfb   : > { %p4682_p5 = scmp.lt.u32.totalorder %s4673_s11, %s5184_s1 }
  0xfc   : > { %p4676_p1 = pnand %p4675_p8, %p4674_p12  ;;  %p4681_p2 = por %p4680_p0, %p4679_p13 }
  0xfe   : > { %p4677_p3 = pneg %p4676_p1  ;;  %p4683_p9 = por %p4682_p5, %p4681_p2 }
 0x100   : > { %p4684_p4 = pnand %p4683_p9, %p4677_p3 }
 0x102   : > { %4687 = shalt.err (!%p4684_p4)
}
 0x103   : > { %s4688_s29 = scalar_lea.vmem %s5190_s16, 64  ;;  %s4804_s30 = smov [#allocation2]  }
 0x104   : > { %p4689_p12 = scmp.ne.s32.totalorder %s5190_s16, %s4688_s29  ;;  %s4693_s17 = sshll.u32 %s4804_s30, 4  ;;  %s4694_s17 = int_to_ptr.vmem [resolvable:$false] %s4693_s17 }
 0x105   : > { %s4695_s27 = scalar_lea.vmem %s4694_s17, 128  ;;  %p4696_p6 = scmp.lt.s32.totalorder %s5190_s16, %s4694_s17 }
 0x106   : > { %p4691_p1 = pnand %p4689_p12, %p4675_p8  ;;  %p4697_p13 = scmp.lt.s32.totalorder %s4695_s27, %s4688_s29 }
 0x108   : > { %p4692_p10 = pneg %p4691_p1  ;;  %p4698_p0 = por %p4697_p13, %p4696_p6 }
 0x10a   : > { %p4699_p2 = pnand %p4698_p0, %p4692_p10 }
 0x10c   : > { %4702 = shalt.err (!%p4699_p2)
}
 0x10d   : > { %4184 = dma.hbm_to_vmem [thread:$0]  (!%p5186_p11), %s5184_s1, 64, %s5190_s16, %s525_s26  }
 0x10e   : > { %s5830_s11 = sld [smem:[#allocation27_spill]] }
 0x114   : > { %p5831_p3 = scmp.ne.s32.totalorder %s5830_s11, 0 }
 0x115   : > { %s5220_s5 = sand.u32 (!%p5831_p3), 1, %s4781_s19  }
 0x116   : > { %544 = sbr.rel (%p5831_p3) target bundleno = 13314 (0x3402), region = 80  ;;  %s3635_s3 = sshll.u32 (!%p5831_p3), %s5220_s5, 2 }
 0x117   : > { %s547_s14 = scalar_lea.sflag (!%p5831_p3), [#allocation3], %s5220_s5  ;;  %s5224_s29 = scalar_lea.vmem (!%p5831_p3), [#allocation2], %s3635_s3 }
 0x11d   : > { %4748 = dma.done.wait (%p5166_p7), %s547_s14, 64  }
 0x11e   : > { %4750 = vsyncadd (%p5166_p7), %s547_s14, 4294967232  ;;  %p5832_p6 = scmp.eq.s32.totalorder %s4927_s24, 0 }
 0x120   : > { %4752 = dma.done.wait (%p5832_p6), [#allocation6], 640   ;;  %p5833_p10 = pmov %p5832_p6 }
 0x121   : > { %p5834_p11 = pmov %p5832_p6 }
 0x122   : > { %4754 = vsyncadd (%p5833_p10), [#allocation6], 4294966656 }
 0x123   : > { %4756 = dma.done.wait (%p5834_p11), [#allocation9], 272   ;;  %p5835_p8 = pmov %p5832_p6 }
 0x124   : > { %p5836_p5 = pmov %p5832_p6 }
 0x125   : > { %4758 = vsyncadd (%p5835_p8), [#allocation9], 4294967024 }
 0x126   : > { %4760 = dma.done.wait (%p5836_p5), [#allocation12], 32   ;;  %p5837_p9 = pmov %p5836_p5 }
 0x127   : > { %p5838_p7 = pmov %p5836_p5 }
 0x128   : > { %4762 = vsyncadd (%p5837_p9), [#allocation12], 4294967264 }
 0x129   : > { %4764 = dma.done.wait (%p5838_p7), [#allocation15], 816   ;;  %p5839_p4 = pmov %p5836_p5 }
 0x12b   : > { %4766 = vsyncadd (%p5839_p4), [#allocation15], 4294966480  ;;  %p5840_p12 = pmov %p5839_p4 }
 0x12c   : > { %p5841_p1 = pmov %p5839_p4 }
 0x12d   : > { %4768 = dma.done.wait (%p5840_p12), [#allocation18], 16  }
 0x12e   : > { %4770 = vsyncadd (%p5841_p1), [#allocation18], 4294967280  ;;  %v4805_v0 = vmov 0.0   ;;  %vm4806_vm0 = vmmov 0   ;;  %v4274_v1 = vld [vmem:[#allocation5] sm:$0xff]   ;;  %v5256_v2 = vld [vmem:[#allocation7] sm:$0xff]  }
 0x12f   : > { %3831 = vmatprep.subr.bf16.mxu0 %v4805_v0  ;;  %3841 = vmatprep.subr.bf16.mxu1 %v4805_v0  ;;  %v4276_v3 = vld [vmem:[#allocation5 + $0x8] sm:$0xff]   ;;  %v5260_v4 = vld [vmem:[#allocation7 + $0x8] sm:$0xff]   ;;  %v4278_v5 = vld [vmem:[#allocation5 + $0x10] sm:$0xff]   ;;  %vm666_vm1 = vcmask 392192   ;;  %v4807_v7 = vmov 0   ;;  %s4808_s25 = smov 64  }
 0x130   : > { %3845 = vmatprep.mubr.msk.bf16.mxu1 %vm4806_vm0, %v4805_v0  ;;  %3837 = vmatprep.mubr.msk.bf16.mxu0 %vm4806_vm0, %v4805_v0  ;;  %v634_v6 = vld [vmem:[%s5224_s29] sm:$0xf]  ;;  %v5281_v8 = vld [vmem:[#allocation8] sm:$0x1]  ;;  %s5842_s13 = sld [smem:[#allocation31_spill]]  ;;  %s4809_s26 = smov 96  }
 0x131   : > { %3832 = vmatpush3.bf16.msra.mxu0 %v4274_v1  ;;  %3842 = vmatpush3.bf16.msra.mxu1 %v5256_v2  ;;  %vm727_vm2 = vcmask 261120   ;;  %vm1403_vm3 = vcmask 1041409   ;;  %vm1406_vm4 = vcmask 1042434   ;;  %vm1409_vm5 = vcmask 1043459   ;;  %s5843_s27 = sld [smem:[#allocation32_spill]]  ;;  %s4810_s14 = smov 120  }
 0x132   : > { %3833 = vmatprep.subr.bf16.mxu0 %v4805_v0  ;;  %3843 = vmatprep.subr.bf16.mxu1 %v4805_v0  ;;  %vm1412_vm6 = vcmask 1044484   ;;  %vm1415_vm7 = vcmask 1045509   ;;  %vm1418_vm8 = vcmask 1046534   ;;  %vm1421_vm9 = vcmask 1047559   ;;  %s4811_s29 = smov 124   ;;  %s4813_s1 = smov 112  }
 0x133   : > { %vm2121_vm10 = vcmask 1040384   ;;  %vm2123_vm11 = vcmask 1041408   ;;  %vm2125_vm12 = vcmask 1042432   ;;  %vm2127_vm13 = vcmask 1043456   ;;  %s4814_s16 = smov 108   ;;  %s4816_s30 = smov 100  }
 0x134   : > { %vm2129_vm14 = vcmask 1044480   ;;  %vm2131_vm15 = vcmask 1045504   ;;  %s4817_s17 = smov 4   ;;  %s4818_s11 = smov 8  }
 0x135   : > { %3834 = vmatpush3.bf16.msra.mxu0 %v4276_v3  ;;  %3844 = vmatpush3.bf16.msra.mxu1 %v5260_v4  ;;  %s5846_s3 = sld [smem:[#allocation35_spill]]  ;;  %s5847_s2 = sld [smem:[#allocation36_spill]] }
 0x136   : > { %3835 = vmatprep.subr.bf16.mxu0 %v4805_v0  ;;  %3849 = vmatprep.subr.bf16.mxu1 %v4805_v0  ;;  %v3646_v18 = vld [vmem:[%s5842_s13] ss:$0 sm:$0xff]  ;;  %s4815_s13 = smov 104   ;;  %p5848_p0 = scmp.ne.s32.totalorder %s5826_s15, 0 }
 0x138   : > { %3846 = vmatmul.mubr.bf16.vlgmr.msra.gmra.mrb[0].mxu1 %v4807_v7 }
 0x139   : > { %3836 = vmatpush3.bf16.msra.mxu0 %v4278_v5  ;;  %3850 = vmatpush3.bf16.msra.mxu1 %v5256_v2 }
 0x13a   : > { %3853 = vmatprep.mubr.msk.bf16.mxu1 %vm4806_vm0, %v4805_v0  ;;  %3851 = vmatprep.subr.bf16.mxu1 %v4805_v0 }
 0x13b   : > { %3857 = vmatprep.subr.bf16.mxu0 %v4805_v0 }
 0x13c   : > { %3838 = vmatmul.mubr.msk.bf16.vlgmr.msra.gmra.mrb[0].mxu0 %vm666_vm1, %v634_v6  ;;  %vm2133_vm1 = vcmask 1046528  }
 0x13d   : > { %3858 = vmatpush3.bf16.msra.mxu0 %v5256_v2  ;;  %3861 = vmatprep.mubr.msk.bf16.mxu0 %vm4806_vm0, %v4805_v0 }
 0x13e   : > { %3852 = vmatpush3.bf16.msra.mxu1 %v5260_v4  ;;  %3859 = vmatprep.subr.bf16.mxu0 %v4805_v0 }
 0x13f   : > { %3865 = vmatprep.subr.bf16.mxu1 %v4805_v0 }
 0x141   : > { %3860 = vmatpush3.bf16.msra.mxu0 %v5260_v4 }
 0x142   : > { %3873 = vmatprep.subr.bf16.mxu0 %v4805_v0 }
 0x20b   : > { %v765_v9 = vpop.f32.mrb[0].mxu1 }
 0x20c   : > { %v766_v10 = vadd.f32 %v765_v9, %v5281_v8  ;;  %v3847_v11 = vpop.f32.mrb[1].mxu1 }
 0x20d   : > { %v768_v12 = vpop.f32.mrb[2].mxu1 }
 0x20e   : > { %779 = vrot.lane.b32.xlu0 %v766_v10, %s4808_s25  ;;  %v3848_v13 = vpop.f32.mrb[3].mxu1 }
 0x20f   : > { %v704_v14 = vpop.f32.mrb[0].mxu0 }
 0x210   : > { %v3839_v15 = vpop.f32.mrb[1].mxu0  ;;  %v5288_v19 = vadd.f32 %v3646_v18, %v704_v14 }
 0x211   : > { %v707_v16 = vpop.f32.mrb[2].mxu0 }
 0x212   : > { %v3840_v17 = vpop.f32.mrb[3].mxu0  ;;  %v771_v20 = vadd.f32 %v766_v10, %v5288_v19 }
 0x214   : > { %v3653_v21 = vmul.f32 -1.442695, %v771_v20 }
 0x216   : > { %4293 = vpow2.f32 %v3653_v21 }
 0x220   : > { %v4294_v22 = vpop.eup %4293 }
 0x221   : > { %v775_v23 = vadd.f32 1.0, %v4294_v22 }
 0x223   : > { %4295 = vrcp.f32 %v775_v23 }
 0x22d   : > { %v4296_v24 = vpop.eup %4295 }
 0x22e   : > { %v789_v30 = vsub.f32 1.0, %v4296_v24  ;;  %v795_v32 = vmul.f32 0.0, %v4296_v24 }
 0x280   : > { %v780_v25 = vpop.permute.xlu0 %779 }
 0x281   : > { %v782_v26 = vmul.f32 %v4296_v24, %v780_v25 }
 0x283   : > { %784 = vrot.lane.b32.xlu0 %v782_v26, %s4808_s25 }
 0x2f5   : > { %v785_v27 = vpop.permute.xlu0 %784 }
 0x2f6   : > { %v787_v28 = vadd.f32 %v785_v27, %v5288_v19 }
 0x2f8   : > { %4297 = vtanh.f32 %v787_v28 }
 0x302   : > { %v4298_v29 = vpop.eup %4297 }
 0x303   : > { %791 = vrot.lane.b32.xlu1 %v4298_v29, %s4809_s26 }
 0x375   : > { %v792_v31 = vpop.permute.xlu1 %791 }
 0x376   : > { %v794_v33 = vmul.f32 %v792_v31, %v789_v30 }
 0x378   : > { %v796_v34 = vadd.f32 %v795_v32, %v794_v33 }
 0x37a   : > { %v797_v35 = vpack.c.bf16 %v796_v34, %v796_v34  ;;  %v871_v53 = vrot.slane %v796_v34, 7 }
 0x37c   : > { %799 = vrot.lane.b32.xlu1 %v797_v35, %s4809_s26  ;;  %v1394_v1 = vunpack.c.l.b16 %v797_v35 }
 0x3ee   : > { %v800_v36 = vpop.permute.xlu1 %799 }
 0x3ef   : > { %3854 = vmatmul.mubr.msk.bf16.vlgmr.msra.gmra.mrb[4].mxu1 %vm727_vm2, %v800_v36 }
 0x3f0   : > { %3866 = vmatpush3.bf16.msra.mxu1 %v5256_v2  ;;  %3869 = vmatprep.mubr.msk.bf16.mxu1 %vm4806_vm0, %v4805_v0 }
 0x3f1   : > { %3867 = vmatprep.subr.bf16.mxu1 %v4805_v0 }
 0x3f4   : > { %3868 = vmatpush3.bf16.msra.mxu1 %v5260_v4 }
 0x3f5   : > { %3881 = vmatprep.subr.bf16.mxu1 %v4805_v0 }
 0x4c2   : > { %v838_v37 = vpop.f32.mrb[4].mxu1 }
 0x4c3   : > { %v839_v38 = vadd.f32 %v838_v37, %v5281_v8  ;;  %v3855_v39 = vpop.f32.mrb[5].mxu1 }
 0x4c4   : > { %v841_v40 = vpop.f32.mrb[6].mxu1 }
 0x4c5   : > { %v845_v41 = vrot.slane %v839_v38, 7  ;;  %v3856_v42 = vpop.f32.mrb[7].mxu1 }
 0x4c7   : > { %854 = vrot.lane.b32.xlu0 %v845_v41, %s4808_s25  ;;  %v847_v43 = vadd.f32 %v845_v41, %v5288_v19 }
 0x4c9   : > { %v3655_v44 = vmul.f32 -1.442695, %v847_v43 }
 0x4cb   : > { %4299 = vpow2.f32 %v3655_v44 }
 0x4d5   : > { %v4300_v45 = vpop.eup %4299 }
 0x4d6   : > { %v851_v46 = vadd.f32 1.0, %v4300_v45 }
 0x4d8   : > { %4301 = vrcp.f32 %v851_v46 }
 0x4e2   : > { %v4302_v47 = vpop.eup %4301 }
 0x4e3   : > { %v864_v54 = vsub.f32 1.0, %v4302_v47  ;;  %v873_v56 = vmul.f32 %v4302_v47, %v871_v53 }
 0x539   : > { %v855_v48 = vpop.permute.xlu0 %854 }
 0x53a   : > { %v857_v49 = vmul.f32 %v4302_v47, %v855_v48 }
 0x53c   : > { %859 = vrot.lane.b32.xlu1 %v857_v49, %s4808_s25 }
 0x5ae   : > { %v860_v50 = vpop.permute.xlu1 %859 }
 0x5af   : > { %v862_v51 = vadd.f32 %v860_v50, %v5288_v19 }
 0x5b1   : > { %4303 = vtanh.f32 %v862_v51 }
 0x5bb   : > { %v4304_v52 = vpop.eup %4303 }
 0x5bc   : > { %866 = vrot.lane.b32.xlu0 %v4304_v52, %s4809_s26 }
 0x62e   : > { %v867_v55 = vpop.permute.xlu0 %866 }
 0x62f   : > { %v869_v57 = vmul.f32 %v867_v55, %v864_v54 }
 0x631   : > { %v874_v58 = vadd.f32 %v873_v56, %v869_v57 }
 0x633   : > { %v1354_v59 = vrot.slane %v874_v58, 1  ;;  %v875_v60 = vpack.c.bf16 %v874_v58, %v874_v58  ;;  %v951_v27 = vrot.slane %v874_v58, 7 }
 0x635   : > { %v1369_v61 = vpack.c.bf16 %v1354_v59, %v1354_v59  ;;  %v877_v62 = vshrl.u32 %v875_v60, 16 }
 0x637   : > { %v1395_v63 = vunpack.c.l.b16 %v1369_v61  ;;  %879 = vrot.lane.b32.xlu1 %v877_v62, %s4809_s26 }
 0x639   : > { %v1402_v3 = vrot.slane %v1395_v63, 7 }
 0x63b   : > { %v1404_v5 = vsel %vm1403_vm3, %v1402_v3, %v1394_v1  ;;  %vm2425_vm3 = vcmask 31744  }
 0x6a9   : > { %v880_v6 = vpop.permute.xlu1 %879 }
 0x6aa   : > { %3862 = vmatmul.mubr.msk.bf16.vlgmr.msra.gmra.mrb[4].mxu0 %vm727_vm2, %v880_v6 }
 0x6ab   : > { %3874 = vmatpush3.bf16.msra.mxu0 %v5256_v2  ;;  %3877 = vmatprep.mubr.msk.bf16.mxu0 %vm4806_vm0, %v4805_v0 }
 0x6ac   : > { %3875 = vmatprep.subr.bf16.mxu0 %v4805_v0 }
 0x6af   : > { %3876 = vmatpush3.bf16.msra.mxu0 %v5260_v4 }
 0x6b0   : > { %3889 = vmatprep.subr.bf16.mxu0 %v4805_v0 }
 0x77d   : > { %v918_v9 = vpop.f32.mrb[4].mxu0 }
 0x77e   : > { %v919_v10 = vadd.f32 %v918_v9, %v5281_v8  ;;  %v3863_v11 = vpop.f32.mrb[5].mxu0 }
 0x77f   : > { %v921_v12 = vpop.f32.mrb[6].mxu0 }
 0x780   : > { %v925_v13 = vrot.slane %v919_v10, 6  ;;  %v3864_v14 = vpop.f32.mrb[7].mxu0 }
 0x782   : > { %934 = vrot.lane.b32.xlu0 %v925_v13, %s4808_s25  ;;  %v927_v15 = vadd.f32 %v925_v13, %v5288_v19 }
 0x784   : > { %v3657_v16 = vmul.f32 -1.442695, %v927_v15 }
 0x786   : > { %4305 = vpow2.f32 %v3657_v16 }
 0x790   : > { %v4306_v17 = vpop.eup %4305 }
 0x791   : > { %v931_v18 = vadd.f32 1.0, %v4306_v17 }
 0x793   : > { %4307 = vrcp.f32 %v931_v18 }
 0x79d   : > { %v4308_v20 = vpop.eup %4307 }
 0x79e   : > { %v944_v26 = vsub.f32 1.0, %v4308_v20  ;;  %v953_v29 = vmul.f32 %v4308_v20, %v951_v27 }
 0x7f4   : > { %v935_v21 = vpop.permute.xlu0 %934 }
 0x7f5   : > { %v937_v22 = vmul.f32 %v4308_v20, %v935_v21 }
 0x7f7   : > { %939 = vrot.lane.b32.xlu1 %v937_v22, %s4808_s25 }
 0x869   : > { %v940_v23 = vpop.permute.xlu1 %939 }
 0x86a   : > { %v942_v24 = vadd.f32 %v940_v23, %v5288_v19 }
 0x86c   : > { %4309 = vtanh.f32 %v942_v24 }
 0x876   : > { %v4310_v25 = vpop.eup %4309 }
 0x877   : > { %946 = vrot.lane.b32.xlu0 %v4310_v25, %s4809_s26 }
 0x8e9   : > { %v947_v28 = vpop.permute.xlu0 %946 }
 0x8ea   : > { %v949_v30 = vmul.f32 %v947_v28, %v944_v26 }
 0x8ec   : > { %v954_v31 = vadd.f32 %v953_v29, %v949_v30 }
 0x8ee   : > { %v1356_v32 = vrot.slane %v954_v31, 2  ;;  %v955_v33 = vpack.c.bf16 %v954_v31, %v954_v31  ;;  %v1030_v57 = vrot.slane %v954_v31, 7 }
 0x8f0   : > { %v1370_v34 = vpack.c.bf16 %v1356_v32, %v1356_v32  ;;  %v957_v35 = vrot.slane %v955_v33, 1 }
 0x8f2   : > { %v1396_v36 = vunpack.c.l.b16 %v1370_v34  ;;  %958 = vrot.lane.b32.xlu1 %v957_v35, %s4809_s26 }
 0x8f4   : > { %v1405_v37 = vrot.slane %v1396_v36, 6 }
 0x8f6   : > { %v1407_v38 = vsel %vm1406_vm4, %v1405_v37, %v1404_v5  ;;  %vm2802_vm4 = vcmask 64512  }
 0x964   : > { %v959_v39 = vpop.permute.xlu1 %958 }
 0x965   : > { %3870 = vmatmul.mubr.msk.bf16.vlgmr.msra.gmra.mrb[8].mxu1 %vm727_vm2, %v959_v39 }
 0x966   : > { %3882 = vmatpush3.bf16.msra.mxu1 %v5256_v2  ;;  %3885 = vmatprep.mubr.msk.bf16.mxu1 %vm4806_vm0, %v4805_v0 }
 0x967   : > { %3883 = vmatprep.subr.bf16.mxu1 %v4805_v0 }
 0x96a   : > { %3884 = vmatpush3.bf16.msra.mxu1 %v5260_v4 }
 0x96b   : > { %3897 = vmatprep.subr.bf16.mxu1 %v4805_v0 }
 0xa38   : > { %v997_v40 = vpop.f32.mrb[8].mxu1 }
 0xa39   : > { %v998_v41 = vadd.f32 %v997_v40, %v5281_v8  ;;  %v3871_v42 = vpop.f32.mrb[9].mxu1 }
 0xa3a   : > { %v1000_v43 = vpop.f32.mrb[10].mxu1 }
 0xa3b   : > { %v1004_v44 = vrot.slane %v998_v41, 5  ;;  %v3872_v45 = vpop.f32.mrb[11].mxu1 }
 0xa3d   : > { %1013 = vrot.lane.b32.xlu0 %v1004_v44, %s4808_s25  ;;  %v1006_v46 = vadd.f32 %v1004_v44, %v5288_v19 }
 0xa3f   : > { %v3659_v47 = vmul.f32 -1.442695, %v1006_v46 }
 0xa41   : > { %4311 = vpow2.f32 %v3659_v47 }
 0xa4b   : > { %v4312_v48 = vpop.eup %4311 }
 0xa4c   : > { %v1010_v49 = vadd.f32 1.0, %v4312_v48 }
 0xa4e   : > { %4313 = vrcp.f32 %v1010_v49 }
 0xa58   : > { %v4314_v50 = vpop.eup %4313 }
 0xa59   : > { %v1023_v56 = vsub.f32 1.0, %v4314_v50  ;;  %v1032_v59 = vmul.f32 %v4314_v50, %v1030_v57 }
 0xaaf   : > { %v1014_v51 = vpop.permute.xlu0 %1013 }
 0xab0   : > { %v1016_v52 = vmul.f32 %v4314_v50, %v1014_v51 }
 0xab2   : > { %1018 = vrot.lane.b32.xlu1 %v1016_v52, %s4808_s25 }
 0xb24   : > { %v1019_v53 = vpop.permute.xlu1 %1018 }
 0xb25   : > { %v1021_v54 = vadd.f32 %v1019_v53, %v5288_v19 }
 0xb27   : > { %4315 = vtanh.f32 %v1021_v54 }
 0xb31   : > { %v4316_v55 = vpop.eup %4315 }
 0xb32   : > { %1025 = vrot.lane.b32.xlu0 %v4316_v55, %s4809_s26 }
 0xba4   : > { %v1026_v58 = vpop.permute.xlu0 %1025 }
 0xba5   : > { %v1028_v60 = vmul.f32 %v1026_v58, %v1023_v56 }
 0xba7   : > { %v1033_v61 = vadd.f32 %v1032_v59, %v1028_v60 }
 0xba9   : > { %v1358_v62 = vrot.slane %v1033_v61, 3  ;;  %v1034_v63 = vpack.c.bf16 %v1033_v61, %v1033_v61  ;;  %v1111_v30 = vrot.slane %v1033_v61, 7 }
 0xbab   : > { %v1371_v1 = vpack.c.bf16 %v1358_v62, %v1358_v62  ;;  %v1036_v3 = vshrl.u32 %v1034_v63, 16 }
 0xbad   : > { %v1397_v5 = vunpack.c.l.b16 %v1371_v1  ;;  %v1038_v6 = vrot.slane %v1036_v3, 1 }
 0xbaf   : > { %v1408_v9 = vrot.slane %v1397_v5, 5  ;;  %1039 = vrot.lane.b32.xlu1 %v1038_v6, %s4809_s26 }
 0xbb1   : > { %v1410_v10 = vsel %vm1409_vm5, %v1408_v9, %v1407_v38  ;;  %vm3299_vm5 = vcmask 130048  }
 0xc21   : > { %v1040_v11 = vpop.permute.xlu1 %1039 }
 0xc22   : > { %3878 = vmatmul.mubr.msk.bf16.vlgmr.msra.gmra.mrb[8].mxu0 %vm727_vm2, %v1040_v11 }
 0xc23   : > { %3890 = vmatpush3.bf16.msra.mxu0 %v5256_v2  ;;  %3893 = vmatprep.mubr.msk.bf16.mxu0 %vm4806_vm0, %v4805_v0 }
 0xc24   : > { %3891 = vmatprep.subr.bf16.mxu0 %v4805_v0 }
 0xc27   : > { %3892 = vmatpush3.bf16.msra.mxu0 %v5260_v4 }
 0xc28   : > { %3905 = vmatprep.subr.bf16.mxu0 %v4805_v0 }
 0xcf5   : > { %v1078_v12 = vpop.f32.mrb[8].mxu0 }
 0xcf6   : > { %v1079_v13 = vadd.f32 %v1078_v12, %v5281_v8  ;;  %v3879_v14 = vpop.f32.mrb[9].mxu0 }
 0xcf7   : > { %v1081_v15 = vpop.f32.mrb[10].mxu0 }
 0xcf8   : > { %v1085_v16 = vrot.slane %v1079_v13, 4  ;;  %v3880_v17 = vpop.f32.mrb[11].mxu0 }
 0xcfa   : > { %1094 = vrot.lane.b32.xlu0 %v1085_v16, %s4808_s25  ;;  %v1087_v18 = vadd.f32 %v1085_v16, %v5288_v19 }
 0xcfc   : > { %v3661_v20 = vmul.f32 -1.442695, %v1087_v18 }
 0xcfe   : > { %4317 = vpow2.f32 %v3661_v20 }
 0xd08   : > { %v4318_v21 = vpop.eup %4317 }
 0xd09   : > { %v1091_v22 = vadd.f32 1.0, %v4318_v21 }
 0xd0b   : > { %4319 = vrcp.f32 %v1091_v22 }
 0xd15   : > { %v4320_v23 = vpop.eup %4319 }
 0xd16   : > { %v1104_v29 = vsub.f32 1.0, %v4320_v23  ;;  %v1113_v32 = vmul.f32 %v4320_v23, %v1111_v30 }
 0xd6c   : > { %v1095_v24 = vpop.permute.xlu0 %1094 }
 0xd6d   : > { %v1097_v25 = vmul.f32 %v4320_v23, %v1095_v24 }
 0xd6f   : > { %1099 = vrot.lane.b32.xlu1 %v1097_v25, %s4808_s25 }
 0xde1   : > { %v1100_v26 = vpop.permute.xlu1 %1099 }
 0xde2   : > { %v1102_v27 = vadd.f32 %v1100_v26, %v5288_v19 }
 0xde4   : > { %4321 = vtanh.f32 %v1102_v27 }
 0xdee   : > { %v4322_v28 = vpop.eup %4321 }
 0xdef   : > { %1106 = vrot.lane.b32.xlu0 %v4322_v28, %s4809_s26 }
 0xe61   : > { %v1107_v31 = vpop.permute.xlu0 %1106 }
 0xe62   : > { %v1109_v33 = vmul.f32 %v1107_v31, %v1104_v29 }
 0xe64   : > { %v1114_v34 = vadd.f32 %v1113_v32, %v1109_v33 }
 0xe66   : > { %v1360_v35 = vrot.slane %v1114_v34, 4  ;;  %v1115_v36 = vpack.c.bf16 %v1114_v34, %v1114_v34  ;;  %v1190_v58 = vrot.slane %v1114_v34, 7 }
 0xe68   : > { %v1372_v37 = vpack.c.bf16 %v1360_v35, %v1360_v35  ;;  %v1117_v38 = vrot.slane %v1115_v36, 2 }
 0xe6a   : > { %v1398_v39 = vunpack.c.l.b16 %v1372_v37  ;;  %1118 = vrot.lane.b32.xlu1 %v1117_v38, %s4809_s26 }
 0xe6c   : > { %v1411_v40 = vrot.slane %v1398_v39, 4 }
 0xe6e   : > { %v1413_v41 = vsel %vm1412_vm6, %v1411_v40, %v1410_v10  ;;  %vm3301_vm6 = vcmask 162816  }
 0xedc   : > { %v1119_v42 = vpop.permute.xlu1 %1118 }
 0xedd   : > { %3886 = vmatmul.mubr.msk.bf16.vlgmr.msra.gmra.mrb[12].mxu1 %vm727_vm2, %v1119_v42 }
 0xede   : > { %3898 = vmatpush3.bf16.msra.mxu1 %v5256_v2  ;;  %3901 = vmatprep.mubr.msk.bf16.mxu1 %vm4806_vm0, %v4805_v0 }
 0xedf   : > { %3899 = vmatprep.subr.bf16.mxu1 %v4805_v0 }
 0xee2   : > { %3900 = vmatpush3.bf16.msra.mxu1 %v5260_v4 }
 0xee3   : > { %3913 = vmatprep.subr.bf16.mxu1 %v4805_v0 }
 0xfb0   : > { %v1157_v43 = vpop.f32.mrb[12].mxu1 }
 0xfb1   : > { %v1158_v44 = vadd.f32 %v1157_v43, %v5281_v8  ;;  %v3887_v45 = vpop.f32.mrb[13].mxu1 }
 0xfb2   : > { %v1160_v46 = vpop.f32.mrb[14].mxu1 }
 0xfb3   : > { %v1164_v47 = vrot.slane %v1158_v44, 3  ;;  %v3888_v48 = vpop.f32.mrb[15].mxu1 }
 0xfb5   : > { %1173 = vrot.lane.b32.xlu0 %v1164_v47, %s4808_s25  ;;  %v1166_v2 = vadd.f32 %v1164_v47, %v5288_v19 }
 0xfb7   : > { %v3663_v49 = vmul.f32 -1.442695, %v1166_v2 }
 0xfb9   : > { %4323 = vpow2.f32 %v3663_v49 }
 0xfc3   : > { %v4324_v50 = vpop.eup %4323 }
 0xfc4   : > { %v1170_v51 = vadd.f32 1.0, %v4324_v50 }
 0xfc6   : > { %4325 = vrcp.f32 %v1170_v51 }
 0xfd0   : > { %v4326_v52 = vpop.eup %4325 }
 0xfd1   : > { %v1183_v57 = vsub.f32 1.0, %v4326_v52  ;;  %v1192_v60 = vmul.f32 %v4326_v52, %v1190_v58  ;;  %v4281_v58 = vld [vmem:[%s5843_s27] sm:$0xff]  }
0x1027   : > { %v1174_v4 = vpop.permute.xlu0 %1173 }
0x1028   : > { %v1176_v53 = vmul.f32 %v4326_v52, %v1174_v4 }
0x102a   : > { %1178 = vrot.lane.b32.xlu1 %v1176_v53, %s4808_s25 }
0x109c   : > { %v1179_v54 = vpop.permute.xlu1 %1178 }
0x109d   : > { %v1181_v55 = vadd.f32 %v1179_v54, %v5288_v19 }
0x109f   : > { %4327 = vtanh.f32 %v1181_v55 }
0x10a9   : > { %v4328_v56 = vpop.eup %4327 }
0x10aa   : > { %1185 = vrot.lane.b32.xlu0 %v4328_v56, %s4809_s26 }
0x111c   : > { %v1186_v59 = vpop.permute.xlu0 %1185 }
0x111d   : > { %v1188_v61 = vmul.f32 %v1186_v59, %v1183_v57  ;;  %v5384_v57 = vld [vmem:[#allocation10] sm:$0xff]   ;;  %v5390_v59 = vld [vmem:[#allocation10 + $0x8] sm:$0xff]  }
0x111f   : > { %v1193_v62 = vadd.f32 %v1192_v60, %v1188_v61  ;;  %v4282_v60 = vld [vmem:[%s5843_s27 + $0x8] sm:$0xff]  }
0x1121   : > { %v1362_v63 = vrot.slane %v1193_v62, 5  ;;  %v1194_v1 = vpack.c.bf16 %v1193_v62, %v1193_v62  ;;  %v1271_v31 = vrot.slane %v1193_v62, 7 }
0x1123   : > { %v1373_v3 = vpack.c.bf16 %v1362_v63, %v1362_v63  ;;  %v1196_v5 = vshrl.u32 %v1194_v1, 16 }
0x1125   : > { %v1399_v6 = vunpack.c.l.b16 %v1373_v3  ;;  %v1198_v9 = vrot.slane %v1196_v5, 2 }
0x1127   : > { %v1414_v10 = vrot.slane %v1399_v6, 3  ;;  %1199 = vrot.lane.b32.xlu1 %v1198_v9, %s4809_s26 }
0x1129   : > { %v1416_v11 = vsel %vm1415_vm7, %v1414_v10, %v1413_v41  ;;  %vm3303_vm7 = vcmask 195584  }
0x1199   : > { %v1200_v12 = vpop.permute.xlu1 %1199 }
0x119a   : > { %3894 = vmatmul.mubr.msk.bf16.vlgmr.msra.gmra.mrb[12].mxu0 %vm727_vm2, %v1200_v12  ;;  %v5408_v12 = vld [vmem:[#allocation13] sm:$0x1] }
0x119b   : > { %3909 = vmatprep.mubr.msk.bf16.mxu0 %vm4806_vm0, %v4805_v0  ;;  %3906 = vmatpush3.bf16.msra.mxu0 %v4281_v58 }
0x119c   : > { %3907 = vmatprep.subr.bf16.mxu0 %v4805_v0 }
0x119f   : > { %3908 = vmatpush3.bf16.msra.mxu0 %v4282_v60 }
0x11a0   : > { %3921 = vmatprep.subr.bf16.mxu0 %v4805_v0 }
0x126d   : > { %v1238_v13 = vpop.f32.mrb[12].mxu0 }
0x126e   : > { %v1239_v14 = vadd.f32 %v1238_v13, %v5281_v8  ;;  %v3895_v15 = vpop.f32.mrb[13].mxu0 }
0x126f   : > { %v1241_v16 = vpop.f32.mrb[14].mxu0 }
0x1270   : > { %v1245_v17 = vrot.slane %v1239_v14, 2  ;;  %v3896_v18 = vpop.f32.mrb[15].mxu0 }
0x1272   : > { %1254 = vrot.lane.b32.xlu0 %v1245_v17, %s4808_s25  ;;  %v1247_v20 = vadd.f32 %v1245_v17, %v5288_v19 }
0x1274   : > { %v3665_v21 = vmul.f32 -1.442695, %v1247_v20  ;;  %v3668_v20 = vld [vmem:[#allocation11] ss:$0 sm:$0xff] }
0x1276   : > { %4329 = vpow2.f32 %v3665_v21 }
0x1280   : > { %v4330_v22 = vpop.eup %4329 }
0x1281   : > { %v1251_v23 = vadd.f32 1.0, %v4330_v22 }
0x1283   : > { %4331 = vrcp.f32 %v1251_v23 }
0x128d   : > { %v4332_v24 = vpop.eup %4331 }
0x128e   : > { %v1264_v30 = vsub.f32 1.0, %v4332_v24  ;;  %v1273_v33 = vmul.f32 %v4332_v24, %v1271_v31 }
0x12e4   : > { %v1255_v25 = vpop.permute.xlu0 %1254 }
0x12e5   : > { %v1257_v26 = vmul.f32 %v4332_v24, %v1255_v25 }
0x12e7   : > { %1259 = vrot.lane.b32.xlu1 %v1257_v26, %s4808_s25 }
0x1359   : > { %v1260_v27 = vpop.permute.xlu1 %1259 }
0x135a   : > { %v1262_v28 = vadd.f32 %v1260_v27, %v5288_v19 }
0x135c   : > { %4333 = vtanh.f32 %v1262_v28 }
0x1366   : > { %v4334_v29 = vpop.eup %4333 }
0x1367   : > { %1266 = vrot.lane.b32.xlu0 %v4334_v29, %s4809_s26 }
0x13d9   : > { %v1267_v32 = vpop.permute.xlu0 %1266 }
0x13da   : > { %v1269_v34 = vmul.f32 %v1267_v32, %v1264_v30 }
0x13dc   : > { %v1274_v35 = vadd.f32 %v1273_v33, %v1269_v34 }
0x13de   : > { %v1364_v36 = vrot.slane %v1274_v35, 6  ;;  %v1275_v37 = vpack.c.bf16 %v1274_v35, %v1274_v35  ;;  %v1350_v61 = vrot.slane %v1274_v35, 7 }
0x13e0   : > { %v1374_v38 = vpack.c.bf16 %v1364_v36, %v1364_v36  ;;  %v1277_v39 = vrot.slane %v1275_v37, 3 }
0x13e2   : > { %v1400_v40 = vunpack.c.l.b16 %v1374_v38  ;;  %1278 = vrot.lane.b32.xlu1 %v1277_v39, %s4809_s26 }
0x13e4   : > { %v1417_v41 = vrot.slane %v1400_v40, 2 }
0x13e6   : > { %v1419_v42 = vsel %vm1418_vm8, %v1417_v41, %v1416_v11  ;;  %vm3305_vm8 = vcmask 228352  }
0x1454   : > { %v1279_v43 = vpop.permute.xlu1 %1278 }
0x1455   : > { %3902 = vmatmul.mubr.msk.bf16.vlgmr.msra.gmra.mrb[16].mxu1 %vm727_vm2, %v1279_v43 }
0x1456   : > { %3917 = vmatprep.mubr.msk.bf16.mxu1 %vm4806_vm0, %v4805_v0  ;;  %3914 = vmatpush3.bf16.msra.mxu1 %v5384_v57 }
0x1457   : > { %3915 = vmatprep.subr.bf16.mxu1 %v4805_v0 }
0x145a   : > { %3916 = vmatpush3.bf16.msra.mxu1 %v5390_v59 }
0x145b   : > { %3929 = vmatprep.subr.bf16.mxu1 %v4805_v0 }
0x145d   : > { %3918 = vmatmul.mubr.bf16.vlgmr.msra.gmra.mrb[20].mxu1 %v4807_v7 }
0x145e   : > { %3930 = vmatpush3.bf16.msra.mxu1 %v5384_v57  ;;  %3933 = vmatprep.mubr.msk.bf16.mxu1 %vm4806_vm0, %v4805_v0 }
0x145f   : > { %3931 = vmatprep.subr.bf16.mxu1 %v4805_v0 }
0x1462   : > { %3932 = vmatpush3.bf16.msra.mxu1 %v5390_v59 }
0x1463   : > { %3945 = vmatprep.subr.bf16.mxu1 %v4805_v0 }
0x1528   : > { %v1317_v44 = vpop.f32.mrb[16].mxu1 }
0x1529   : > { %v1318_v45 = vadd.f32 %v1317_v44, %v5281_v8  ;;  %v3903_v46 = vpop.f32.mrb[17].mxu1 }
0x152a   : > { %v1320_v47 = vpop.f32.mrb[18].mxu1 }
0x152b   : > { %v1324_v48 = vrot.slane %v1318_v45, 1  ;;  %v3904_v2 = vpop.f32.mrb[19].mxu1 }
0x152d   : > { %1333 = vrot.lane.b32.xlu0 %v1324_v48, %s4808_s25  ;;  %v1326_v49 = vadd.f32 %v1324_v48, %v5288_v19 }
0x152f   : > { %v3667_v50 = vmul.f32 -1.442695, %v1326_v49 }
0x1530   : > { %v1532_v13 = vpop.f32.mrb[20].mxu1 }
0x1531   : > { %4335 = vpow2.f32 %v3667_v50  ;;  %v1533_v14 = vadd.f32 %v1532_v13, %v5408_v12  ;;  %v3919_v15 = vpop.f32.mrb[21].mxu1 }
0x1532   : > { %v1535_v16 = vpop.f32.mrb[22].mxu1 }
0x1533   : > { %v3920_v17 = vpop.f32.mrb[23].mxu1 }
0x153b   : > { %v4336_v51 = vpop.eup %4335 }
0x153c   : > { %v1330_v52 = vadd.f32 1.0, %v4336_v51 }
0x153e   : > { %4337 = vrcp.f32 %v1330_v52 }
0x1548   : > { %v4338_v4 = vpop.eup %4337 }
0x1549   : > { %v1352_v63 = vmul.f32 %v4338_v4, %v1350_v61 }
0x159f   : > { %v1334_v53 = vpop.permute.xlu0 %1333 }
0x15a0   : > { %v1336_v54 = vmul.f32 %v4338_v4, %v1334_v53 }
0x15a2   : > { %1338 = vrot.lane.b32.xlu1 %v1336_v54, %s4808_s25 }
0x1614   : > { %v1339_v55 = vpop.permute.xlu1 %1338 }
0x1615   : > { %v1341_v8 = vadd.f32 %v1339_v55, %v5288_v19  ;;  %v1343_v19 = vsub.f32 1.0, %v4338_v4 }
0x1617   : > { %4339 = vtanh.f32 %v1341_v8 }
0x1621   : > { %v4340_v56 = vpop.eup %4339 }
0x1622   : > { %1345 = vrot.lane.b32.xlu0 %v4340_v56, %s4809_s26 }
0x1626   : > { %1546 = vrot.lane.b32.xlu0 %v1533_v14, %s4808_s25 }
0x1694   : > { %v1346_v62 = vpop.permute.xlu0 %1345 }
0x1695   : > { %v1348_v1 = vmul.f32 %v1346_v62, %v1343_v19 }
0x1697   : > { %v1353_v3 = vadd.f32 %v1352_v63, %v1348_v1 }
0x1698   : > { %v1547_v30 = vpop.permute.xlu0 %1546 }
0x1699   : > { %v1367_v5 = vrot.slane %v1353_v3, 7 }
0x169b   : > { %v1375_v6 = vpack.c.bf16 %v1367_v5, %v1367_v5 }
0x169d   : > { %v1401_v7 = vunpack.c.l.b16 %v1375_v6 }
0x169f   : > { %v1420_v9 = vrot.slane %v1401_v7, 1 }
0x16a1   : > { %v1422_v10 = vsel %vm1421_vm9, %v1420_v9, %v1419_v42 }
0x16a2   : > { %v1423_v11 = vpack.c.b16 %v1422_v10, %v1422_v10 }
0x16a4   : > { %1424 = vrot.lane.b32.xlu1 %v1423_v11, %s4809_s26 }
0x1716   : > { %v1425_v18 = vpop.permute.xlu1 %1424 }
0x1717   : > { %3910 = vmatmul.mubr.msk.bf16.vlgmr.msra.gmra.mrb[16].mxu0 %vm727_vm2, %v1425_v18 }
0x1718   : > { %3922 = vmatpush3.bf16.msra.mxu0 %v5384_v57  ;;  %3925 = vmatprep.mubr.msk.bf16.mxu0 %vm4806_vm0, %v4805_v0 }
0x1719   : > { %3923 = vmatprep.subr.bf16.mxu0 %v4805_v0 }
0x171c   : > { %3924 = vmatpush3.bf16.msra.mxu0 %v5390_v59 }
0x171d   : > { %3937 = vmatprep.subr.bf16.mxu0 %v4805_v0 }
0x17ea   : > { %v1475_v21 = vpop.f32.mrb[16].mxu0 }
0x17eb   : > { %v5419_v22 = vadd.f32 %v3668_v20, %v1475_v21  ;;  %v3911_v23 = vpop.f32.mrb[17].mxu0 }
0x17ec   : > { %v1478_v24 = vpop.f32.mrb[18].mxu0 }
0x17ed   : > { %v3912_v25 = vpop.f32.mrb[19].mxu0  ;;  %v1538_v26 = vadd.f32 %v1533_v14, %v5419_v22 }
0x17ef   : > { %v3674_v27 = vmul.f32 -1.442695, %v1538_v26 }
0x17f1   : > { %4341 = vpow2.f32 %v3674_v27 }
0x17fb   : > { %v4342_v28 = vpop.eup %4341 }
0x17fc   : > { %v1542_v29 = vadd.f32 1.0, %v4342_v28 }
0x17fe   : > { %4343 = vrcp.f32 %v1542_v29 }
0x1808   : > { %v4344_v31 = vpop.eup %4343 }
0x1809   : > { %v1549_v32 = vmul.f32 %v4344_v31, %v1547_v30  ;;  %v1556_v36 = vsub.f32 1.0, %v4344_v31  ;;  %v1562_v38 = vmul.f32 0.0, %v4344_v31 }
0x180b   : > { %1551 = vrot.lane.b32.xlu1 %v1549_v32, %s4808_s25 }
0x187d   : > { %v1552_v33 = vpop.permute.xlu1 %1551 }
0x187e   : > { %v1554_v34 = vadd.f32 %v1552_v33, %v5419_v22 }
0x1880   : > { %4345 = vtanh.f32 %v1554_v34 }
0x188a   : > { %v4346_v35 = vpop.eup %4345 }
0x188b   : > { %1558 = vrot.lane.b32.xlu0 %v4346_v35, %s4809_s26 }
0x18fd   : > { %v1559_v37 = vpop.permute.xlu0 %1558 }
0x18fe   : > { %v1561_v39 = vmul.f32 %v1559_v37, %v1556_v36 }
0x1900   : > { %v5425_v40 = vadd.f32 %v1562_v38, %v1561_v39 }
0x1902   : > { %v1564_v41 = vpack.c.bf16 %v5425_v40, %v5425_v40  ;;  %v1638_v58 = vrot.slane %v5425_v40, 7 }
0x1904   : > { %1566 = vrot.lane.b32.xlu1 %v1564_v41, %s4809_s26 }
0x1976   : > { %v1567_v42 = vpop.permute.xlu1 %1566 }
0x1977   : > { %3926 = vmatmul.mubr.msk.bf16.vlgmr.msra.gmra.mrb[20].mxu0 %vm727_vm2, %v1567_v42 }
0x1978   : > { %3938 = vmatpush3.bf16.msra.mxu0 %v5384_v57  ;;  %3941 = vmatprep.mubr.msk.bf16.mxu0 %vm4806_vm0, %v4805_v0 }
0x1979   : > { %3939 = vmatprep.subr.bf16.mxu0 %v4805_v0 }
0x197c   : > { %3940 = vmatpush3.bf16.msra.mxu0 %v5390_v59 }
0x197d   : > { %3953 = vmatprep.subr.bf16.mxu0 %v4805_v0 }
0x1a4a   : > { %v1605_v43 = vpop.f32.mrb[20].mxu0 }
0x1a4b   : > { %v1606_v44 = vadd.f32 %v1605_v43, %v5408_v12  ;;  %v3927_v45 = vpop.f32.mrb[21].mxu0 }
0x1a4c   : > { %v1608_v46 = vpop.f32.mrb[22].mxu0 }
0x1a4d   : > { %v1612_v47 = vrot.slane %v1606_v44, 7  ;;  %v3928_v48 = vpop.f32.mrb[23].mxu0 }
0x1a4f   : > { %1621 = vrot.lane.b32.xlu0 %v1612_v47, %s4808_s25  ;;  %v1614_v2 = vadd.f32 %v1612_v47, %v5419_v22 }
0x1a51   : > { %v3676_v49 = vmul.f32 -1.442695, %v1614_v2 }
0x1a53   : > { %4347 = vpow2.f32 %v3676_v49 }
0x1a5d   : > { %v4348_v50 = vpop.eup %4347 }
0x1a5e   : > { %v1618_v51 = vadd.f32 1.0, %v4348_v50 }
0x1a60   : > { %4349 = vrcp.f32 %v1618_v51 }
0x1a6a   : > { %v4350_v52 = vpop.eup %4349 }
0x1a6b   : > { %v1631_v56 = vsub.f32 1.0, %v4350_v52  ;;  %v1640_v19 = vmul.f32 %v4350_v52, %v1638_v58 }
0x1ac1   : > { %v1622_v4 = vpop.permute.xlu0 %1621 }
0x1ac2   : > { %v1624_v53 = vmul.f32 %v4350_v52, %v1622_v4 }
0x1ac4   : > { %1626 = vrot.lane.b32.xlu1 %v1624_v53, %s4808_s25 }
0x1b36   : > { %v1627_v54 = vpop.permute.xlu1 %1626 }
0x1b37   : > { %v1629_v55 = vadd.f32 %v1627_v54, %v5419_v22 }
0x1b39   : > { %4351 = vtanh.f32 %v1629_v55 }
0x1b43   : > { %v4352_v8 = vpop.eup %4351 }
0x1b44   : > { %1633 = vrot.lane.b32.xlu0 %v4352_v8, %s4809_s26 }
0x1bb6   : > { %v1634_v60 = vpop.permute.xlu0 %1633 }
0x1bb7   : > { %v1636_v61 = vmul.f32 %v1634_v60, %v1631_v56 }
0x1bb9   : > { %v1641_v62 = vadd.f32 %v1640_v19, %v1636_v61 }
0x1bbb   : > { %v1642_v63 = vpack.c.bf16 %v1641_v62, %v1641_v62  ;;  %v1718_v26 = vrot.slane %v1641_v62, 7  ;;  %v2122_v31 = vsel %vm2121_vm10, %v5425_v40, %v1641_v62 }
0x1bbd   : > { %v1644_v1 = vshrl.u32 %v1642_v63, 16 }
0x1bbf   : > { %1646 = vrot.lane.b32.xlu1 %v1644_v1, %s4809_s26 }
0x1c31   : > { %v1647_v3 = vpop.permute.xlu1 %1646 }
0x1c32   : > { %3934 = vmatmul.mubr.msk.bf16.vlgmr.msra.gmra.mrb[24].mxu1 %vm727_vm2, %v1647_v3 }
0x1c33   : > { %3946 = vmatpush3.bf16.msra.mxu1 %v5384_v57  ;;  %3949 = vmatprep.mubr.msk.bf16.mxu1 %vm4806_vm0, %v4805_v0 }
0x1c34   : > { %3947 = vmatprep.subr.bf16.mxu1 %v4805_v0 }
0x1c37   : > { %3948 = vmatpush3.bf16.msra.mxu1 %v5390_v59 }
0x1c38   : > { %3961 = vmatprep.subr.bf16.mxu1 %v4805_v0 }
0x1d05   : > { %v1685_v5 = vpop.f32.mrb[24].mxu1 }
0x1d06   : > { %v1686_v6 = vadd.f32 %v1685_v5, %v5408_v12  ;;  %v3935_v7 = vpop.f32.mrb[25].mxu1 }
0x1d07   : > { %v1688_v9 = vpop.f32.mrb[26].mxu1 }
0x1d08   : > { %v1692_v10 = vrot.slane %v1686_v6, 6  ;;  %v3936_v11 = vpop.f32.mrb[27].mxu1 }
0x1d0a   : > { %1701 = vrot.lane.b32.xlu0 %v1692_v10, %s4808_s25  ;;  %v1694_v13 = vadd.f32 %v1692_v10, %v5419_v22 }
0x1d0c   : > { %v3678_v14 = vmul.f32 -1.442695, %v1694_v13 }
0x1d0e   : > { %4353 = vpow2.f32 %v3678_v14 }
0x1d18   : > { %v4354_v15 = vpop.eup %4353 }
0x1d19   : > { %v1698_v16 = vadd.f32 1.0, %v4354_v15 }
0x1d1b   : > { %4355 = vrcp.f32 %v1698_v16 }
0x1d25   : > { %v4356_v17 = vpop.eup %4355 }
0x1d26   : > { %v1711_v25 = vsub.f32 1.0, %v4356_v17  ;;  %v1720_v28 = vmul.f32 %v4356_v17, %v1718_v26 }
0x1d7c   : > { %v1702_v18 = vpop.permute.xlu0 %1701 }
0x1d7d   : > { %v1704_v20 = vmul.f32 %v4356_v17, %v1702_v18 }
0x1d7f   : > { %1706 = vrot.lane.b32.xlu1 %v1704_v20, %s4808_s25 }
0x1df1   : > { %v1707_v21 = vpop.permute.xlu1 %1706 }
0x1df2   : > { %v1709_v23 = vadd.f32 %v1707_v21, %v5419_v22 }
0x1df4   : > { %4357 = vtanh.f32 %v1709_v23 }
0x1dfe   : > { %v4358_v24 = vpop.eup %4357 }
0x1dff   : > { %1713 = vrot.lane.b32.xlu0 %v4358_v24, %s4809_s26 }
0x1e71   : > { %v1714_v27 = vpop.permute.xlu0 %1713 }
0x1e72   : > { %v1716_v29 = vmul.f32 %v1714_v27, %v1711_v25 }
0x1e74   : > { %v1721_v30 = vadd.f32 %v1720_v28, %v1716_v29 }
0x1e76   : > { %v2124_v32 = vsel %vm2123_vm11, %v2122_v31, %v1721_v30  ;;  %v1722_v33 = vpack.c.bf16 %v1721_v30, %v1721_v30  ;;  %v1797_v52 = vrot.slane %v1721_v30, 7 }
0x1e78   : > { %v1724_v34 = vrot.slane %v1722_v33, 1 }
0x1e7a   : > { %1725 = vrot.lane.b32.xlu1 %v1724_v34, %s4809_s26 }
0x1eec   : > { %v1726_v35 = vpop.permute.xlu1 %1725 }
0x1eed   : > { %3942 = vmatmul.mubr.msk.bf16.vlgmr.msra.gmra.mrb[24].mxu0 %vm727_vm2, %v1726_v35 }
0x1eee   : > { %3954 = vmatpush3.bf16.msra.mxu0 %v5384_v57  ;;  %3957 = vmatprep.mubr.msk.bf16.mxu0 %vm4806_vm0, %v4805_v0 }
0x1eef   : > { %3955 = vmatprep.subr.bf16.mxu0 %v4805_v0 }
0x1ef2   : > { %3956 = vmatpush3.bf16.msra.mxu0 %v5390_v59 }
0x1ef3   : > { %3969 = vmatprep.subr.bf16.mxu0 %v4805_v0 }
0x1fc0   : > { %v1764_v36 = vpop.f32.mrb[24].mxu0 }
0x1fc1   : > { %v1765_v37 = vadd.f32 %v1764_v36, %v5408_v12  ;;  %v3943_v38 = vpop.f32.mrb[25].mxu0 }
0x1fc2   : > { %v1767_v39 = vpop.f32.mrb[26].mxu0 }
0x1fc3   : > { %v1771_v40 = vrot.slane %v1765_v37, 5  ;;  %v3944_v41 = vpop.f32.mrb[27].mxu0 }
0x1fc5   : > { %1780 = vrot.lane.b32.xlu0 %v1771_v40, %s4808_s25  ;;  %v1773_v42 = vadd.f32 %v1771_v40, %v5419_v22 }
0x1fc7   : > { %v3680_v43 = vmul.f32 -1.442695, %v1773_v42 }
0x1fc9   : > { %4359 = vpow2.f32 %v3680_v43 }
0x1fd3   : > { %v4360_v44 = vpop.eup %4359 }
0x1fd4   : > { %v1777_v45 = vadd.f32 1.0, %v4360_v44 }
0x1fd6   : > { %4361 = vrcp.f32 %v1777_v45 }
0x1fe0   : > { %v4362_v46 = vpop.eup %4361 }
0x1fe1   : > { %v1790_v51 = vsub.f32 1.0, %v4362_v46  ;;  %v1799_v53 = vmul.f32 %v4362_v46, %v1797_v52 }
0x2037   : > { %v1781_v47 = vpop.permute.xlu0 %1780 }
0x2038   : > { %v1783_v48 = vmul.f32 %v4362_v46, %v1781_v47 }
0x203a   : > { %1785 = vrot.lane.b32.xlu1 %v1783_v48, %s4808_s25 }
0x20ac   : > { %v1786_v2 = vpop.permute.xlu1 %1785 }
0x20ad   : > { %v1788_v49 = vadd.f32 %v1786_v2, %v5419_v22 }
0x20af   : > { %4363 = vtanh.f32 %v1788_v49 }
0x20b9   : > { %v4364_v50 = vpop.eup %4363 }
0x20ba   : > { %1792 = vrot.lane.b32.xlu0 %v4364_v50, %s4809_s26 }
0x212c   : > { %v1793_v4 = vpop.permute.xlu0 %1792 }
0x212d   : > { %v1795_v54 = vmul.f32 %v1793_v4, %v1790_v51 }
0x212f   : > { %v1800_v55 = vadd.f32 %v1799_v53, %v1795_v54 }
0x2131   : > { %v2126_v8 = vsel %vm2125_vm12, %v2124_v32, %v1800_v55  ;;  %v1801_v56 = vpack.c.bf16 %v1800_v55, %v1800_v55  ;;  %v1878_v20 = vrot.slane %v1800_v55, 7 }
0x2133   : > { %v1803_v58 = vshrl.u32 %v1801_v56, 16 }
0x2135   : > { %v1805_v60 = vrot.slane %v1803_v58, 1 }
0x2137   : > { %1806 = vrot.lane.b32.xlu1 %v1805_v60, %s4809_s26 }
0x21a9   : > { %v1807_v19 = vpop.permute.xlu1 %1806 }
0x21aa   : > { %3950 = vmatmul.mubr.msk.bf16.vlgmr.msra.gmra.mrb[28].mxu1 %vm727_vm2, %v1807_v19 }
0x21ab   : > { %3962 = vmatpush3.bf16.msra.mxu1 %v5384_v57  ;;  %3965 = vmatprep.mubr.msk.bf16.mxu1 %vm4806_vm0, %v4805_v0 }
0x21ac   : > { %3963 = vmatprep.subr.bf16.mxu1 %v4805_v0 }
0x21af   : > { %3964 = vmatpush3.bf16.msra.mxu1 %v5390_v59 }
0x21b0   : > { %3977 = vmatprep.subr.bf16.mxu1 %v4805_v0 }
0x227d   : > { %v1845_v61 = vpop.f32.mrb[28].mxu1 }
0x227e   : > { %v1846_v62 = vadd.f32 %v1845_v61, %v5408_v12  ;;  %v3951_v63 = vpop.f32.mrb[29].mxu1 }
0x227f   : > { %v1848_v1 = vpop.f32.mrb[30].mxu1 }
0x2280   : > { %v1852_v3 = vrot.slane %v1846_v62, 4  ;;  %v3952_v5 = vpop.f32.mrb[31].mxu1 }
0x2282   : > { %1861 = vrot.lane.b32.xlu0 %v1852_v3, %s4808_s25  ;;  %v1854_v6 = vadd.f32 %v1852_v3, %v5419_v22 }
0x2284   : > { %v3682_v7 = vmul.f32 -1.442695, %v1854_v6 }
0x2286   : > { %4365 = vpow2.f32 %v3682_v7 }
0x2290   : > { %v4366_v9 = vpop.eup %4365 }
0x2291   : > { %v1858_v10 = vadd.f32 1.0, %v4366_v9 }
0x2293   : > { %4367 = vrcp.f32 %v1858_v10 }
0x229d   : > { %v4368_v11 = vpop.eup %4367 }
0x229e   : > { %v1871_v18 = vsub.f32 1.0, %v4368_v11  ;;  %v1880_v23 = vmul.f32 %v4368_v11, %v1878_v20 }
0x22f4   : > { %v1862_v13 = vpop.permute.xlu0 %1861 }
0x22f5   : > { %v1864_v14 = vmul.f32 %v4368_v11, %v1862_v13 }
0x22f7   : > { %1866 = vrot.lane.b32.xlu1 %v1864_v14, %s4808_s25 }
0x2369   : > { %v1867_v15 = vpop.permute.xlu1 %1866 }
0x236a   : > { %v1869_v16 = vadd.f32 %v1867_v15, %v5419_v22 }
0x236c   : > { %4369 = vtanh.f32 %v1869_v16 }
0x2376   : > { %v4370_v17 = vpop.eup %4369 }
0x2377   : > { %1873 = vrot.lane.b32.xlu0 %v4370_v17, %s4809_s26 }
0x23e9   : > { %v1874_v21 = vpop.permute.xlu0 %1873 }
0x23ea   : > { %v1876_v24 = vmul.f32 %v1874_v21, %v1871_v18 }
0x23ec   : > { %v1881_v25 = vadd.f32 %v1880_v23, %v1876_v24 }
0x23ee   : > { %v2128_v26 = vsel %vm2127_vm13, %v2126_v8, %v1881_v25  ;;  %v1882_v27 = vpack.c.bf16 %v1881_v25, %v1881_v25  ;;  %v1957_v45 = vrot.slane %v1881_v25, 7 }
0x23f0   : > { %v1884_v28 = vrot.slane %v1882_v27, 2 }
0x23f2   : > { %1885 = vrot.lane.b32.xlu1 %v1884_v28, %s4809_s26 }
0x2464   : > { %v1886_v29 = vpop.permute.xlu1 %1885 }
0x2465   : > { %3958 = vmatmul.mubr.msk.bf16.vlgmr.msra.gmra.mrb[28].mxu0 %vm727_vm2, %v1886_v29 }
0x2466   : > { %3970 = vmatpush3.bf16.msra.mxu0 %v5384_v57  ;;  %3973 = vmatprep.mubr.msk.bf16.mxu0 %vm4806_vm0, %v4805_v0 }
0x2467   : > { %3971 = vmatprep.subr.bf16.mxu0 %v4805_v0 }
0x246a   : > { %3972 = vmatpush3.bf16.msra.mxu0 %v5390_v59 }
0x246b   : > { %3985 = vmatprep.subr.bf16.mxu0 %v4805_v0 }
0x2538   : > { %v1924_v30 = vpop.f32.mrb[28].mxu0 }
0x2539   : > { %v1925_v31 = vadd.f32 %v1924_v30, %v5408_v12  ;;  %v3959_v32 = vpop.f32.mrb[29].mxu0 }
0x253a   : > { %v1927_v33 = vpop.f32.mrb[30].mxu0 }
0x253b   : > { %v1931_v34 = vrot.slane %v1925_v31, 3  ;;  %v3960_v35 = vpop.f32.mrb[31].mxu0 }
0x253d   : > { %1940 = vrot.lane.b32.xlu0 %v1931_v34, %s4808_s25  ;;  %v1933_v57 = vadd.f32 %v1931_v34, %v5419_v22 }
0x253f   : > { %v3684_v36 = vmul.f32 -1.442695, %v1933_v57  ;;  %v4283_v57 = vld [vmem:[#allocation14] sm:$0xff]  }
0x2541   : > { %4371 = vpow2.f32 %v3684_v36  ;;  %v4284_v36 = vld [vmem:[#allocation14 + $0x10] sm:$0xff]  }
0x254b   : > { %v4372_v37 = vpop.eup %4371 }
0x254c   : > { %v1937_v38 = vadd.f32 1.0, %v4372_v37  ;;  %v4285_v37 = vld [vmem:[#allocation14 + $0x8] sm:$0xff]  }
0x254e   : > { %4373 = vrcp.f32 %v1937_v38  ;;  %v4286_v38 = vld [vmem:[#allocation14 + $0x18] sm:$0xff]  }
0x2558   : > { %v4374_v39 = vpop.eup %4373 }
0x2559   : > { %v1950_v44 = vsub.f32 1.0, %v4374_v39  ;;  %v1959_v47 = vmul.f32 %v4374_v39, %v1957_v45 }
0x25af   : > { %v1941_v59 = vpop.permute.xlu0 %1940 }
0x25b0   : > { %v1943_v40 = vmul.f32 %v4374_v39, %v1941_v59 }
0x25b2   : > { %1945 = vrot.lane.b32.xlu1 %v1943_v40, %s4808_s25 }
0x2624   : > { %v1946_v41 = vpop.permute.xlu1 %1945 }
0x2625   : > { %v1948_v42 = vadd.f32 %v1946_v41, %v5419_v22 }
0x2627   : > { %4375 = vtanh.f32 %v1948_v42 }
0x2631   : > { %v4376_v43 = vpop.eup %4375 }
0x2632   : > { %1952 = vrot.lane.b32.xlu0 %v4376_v43, %s4809_s26 }
0x26a4   : > { %v1953_v46 = vpop.permute.xlu0 %1952 }
0x26a5   : > { %v1955_v48 = vmul.f32 %v1953_v46, %v1950_v44  ;;  %v4287_v46 = vld [vmem:[#allocation14 + $0x20] sm:$0xff]  }
0x26a7   : > { %v1960_v2 = vadd.f32 %v1959_v47, %v1955_v48  ;;  %v4288_v48 = vld [vmem:[#allocation14 + $0x28] sm:$0xff]  }
0x26a9   : > { %v2130_v49 = vsel %vm2129_vm14, %v2128_v26, %v1960_v2  ;;  %v1961_v50 = vpack.c.bf16 %v1960_v2, %v1960_v2  ;;  %v2038_v10 = vrot.slane %v1960_v2, 7  ;;  %v3693_v2 = vld [vmem:[#allocation16 + $0x1] ss:$0 sm:$0xff] }
0x26ab   : > { %v1963_v51 = vshrl.u32 %v1961_v50, 16 }
0x26ad   : > { %v1965_v52 = vrot.slane %v1963_v51, 2 }
0x26af   : > { %1966 = vrot.lane.b32.xlu1 %v1965_v52, %s4809_s26 }
0x2721   : > { %v1967_v4 = vpop.permute.xlu1 %1966 }
0x2722   : > { %3966 = vmatmul.mubr.msk.bf16.vlgmr.msra.gmra.mrb[32].mxu1 %vm727_vm2, %v1967_v4 }
0x2723   : > { %3981 = vmatprep.mubr.msk.bf16.mxu1 %vm4806_vm0, %v4805_v0  ;;  %3978 = vmatpush3.bf16.msra.mxu1 %v4283_v57 }
0x2724   : > { %3979 = vmatprep.subr.bf16.mxu1 %v4805_v0 }
0x2727   : > { %3980 = vmatpush3.bf16.msra.mxu1 %v4285_v37 }
0x2728   : > { %3993 = vmatprep.subr.bf16.mxu1 %v4805_v0 }
0x27f5   : > { %v2005_v53 = vpop.f32.mrb[32].mxu1 }
0x27f6   : > { %v2006_v54 = vadd.f32 %v2005_v53, %v5408_v12  ;;  %v3967_v55 = vpop.f32.mrb[33].mxu1  ;;  %v3689_v53 = vld [vmem:[#allocation16] ss:$0 sm:$0xff] }
0x27f7   : > { %v2008_v8 = vpop.f32.mrb[34].mxu1 }
0x27f8   : > { %v2012_v56 = vrot.slane %v2006_v54, 2  ;;  %v3968_v58 = vpop.f32.mrb[35].mxu1 }
0x27fa   : > { %2021 = vrot.lane.b32.xlu0 %v2012_v56, %s4808_s25  ;;  %v2014_v60 = vadd.f32 %v2012_v56, %v5419_v22 }
0x27fc   : > { %v3686_v19 = vmul.f32 -1.442695, %v2014_v60 }
0x27fe   : > { %4377 = vpow2.f32 %v3686_v19 }
0x2808   : > { %v4378_v61 = vpop.eup %4377 }
0x2809   : > { %v2018_v62 = vadd.f32 1.0, %v4378_v61 }
0x280b   : > { %4379 = vrcp.f32 %v2018_v62 }
0x2815   : > { %v4380_v63 = vpop.eup %4379 }
0x2816   : > { %v2031_v9 = vsub.f32 1.0, %v4380_v63  ;;  %v2040_v13 = vmul.f32 %v4380_v63, %v2038_v10 }
0x286c   : > { %v2022_v1 = vpop.permute.xlu0 %2021 }
0x286d   : > { %v2024_v3 = vmul.f32 %v4380_v63, %v2022_v1 }
0x286f   : > { %2026 = vrot.lane.b32.xlu1 %v2024_v3, %s4808_s25 }
0x28e1   : > { %v2027_v5 = vpop.permute.xlu1 %2026 }
0x28e2   : > { %v2029_v6 = vadd.f32 %v2027_v5, %v5419_v22 }
0x28e4   : > { %4381 = vtanh.f32 %v2029_v6 }
0x28ee   : > { %v4382_v7 = vpop.eup %4381 }
0x28ef   : > { %2033 = vrot.lane.b32.xlu0 %v4382_v7, %s4809_s26 }
0x2961   : > { %v2034_v11 = vpop.permute.xlu0 %2033 }
0x2962   : > { %v2036_v14 = vmul.f32 %v2034_v11, %v2031_v9 }
0x2964   : > { %v2041_v15 = vadd.f32 %v2040_v13, %v2036_v14 }
0x2966   : > { %v2132_v16 = vsel %vm2131_vm15, %v2130_v49, %v2041_v15  ;;  %v2042_v17 = vpack.c.bf16 %v2041_v15, %v2041_v15  ;;  %v2117_v59 = vrot.slane %v2041_v15, 7 }
0x2968   : > { %v2044_v18 = vrot.slane %v2042_v17, 3 }
0x296a   : > { %2045 = vrot.lane.b32.xlu1 %v2044_v18, %s4809_s26 }
0x29dc   : > { %v2046_v20 = vpop.permute.xlu1 %2045 }
0x29dd   : > { %3974 = vmatmul.mubr.msk.bf16.vlgmr.msra.gmra.mrb[32].mxu0 %vm727_vm2, %v2046_v20 }
0x29de   : > { %3989 = vmatprep.mubr.msk.bf16.mxu0 %vm4806_vm0, %v4805_v0  ;;  %3986 = vmatpush3.bf16.msra.mxu0 %v4284_v36 }
0x29df   : > { %3987 = vmatprep.subr.bf16.mxu0 %v4805_v0 }
0x29e2   : > { %3988 = vmatpush3.bf16.msra.mxu0 %v4286_v38 }
0x29e3   : > { %4001 = vmatprep.subr.bf16.mxu0 %v4805_v0 }
0x2ab0   : > { %v2084_v21 = vpop.f32.mrb[32].mxu0 }
0x2ab1   : > { %v2085_v23 = vadd.f32 %v2084_v21, %v5408_v12  ;;  %v3975_v24 = vpop.f32.mrb[33].mxu0 }
0x2ab2   : > { %v2087_v25 = vpop.f32.mrb[34].mxu0 }
0x2ab3   : > { %v2091_v26 = vrot.slane %v2085_v23, 1  ;;  %v3976_v27 = vpop.f32.mrb[35].mxu0 }
0x2ab5   : > { %2100 = vrot.lane.b32.xlu0 %v2091_v26, %s4808_s25  ;;  %v2093_v28 = vadd.f32 %v2091_v26, %v5419_v22 }
0x2ab7   : > { %v3688_v29 = vmul.f32 -1.442695, %v2093_v28  ;;  %v3697_v28 = vld [vmem:[#allocation16 + $0x2] ss:$0 sm:$0xff] }
0x2ab9   : > { %4383 = vpow2.f32 %v3688_v29 }
0x2ac3   : > { %v4384_v30 = vpop.eup %4383 }
0x2ac4   : > { %v2097_v31 = vadd.f32 1.0, %v4384_v30 }
0x2ac6   : > { %4385 = vrcp.f32 %v2097_v31 }
0x2ad0   : > { %v4386_v32 = vpop.eup %4385 }
0x2ad1   : > { %v2119_v41 = vmul.f32 %v4386_v32, %v2117_v59 }
0x2b27   : > { %v2101_v33 = vpop.permute.xlu0 %2100 }
0x2b28   : > { %v2103_v34 = vmul.f32 %v4386_v32, %v2101_v33 }
0x2b2a   : > { %2105 = vrot.lane.b32.xlu1 %v2103_v34, %s4808_s25  ;;  %s4812_s25 = smov 116  }
0x2b9c   : > { %v2106_v35 = vpop.permute.xlu1 %2105 }
0x2b9d   : > { %v2108_v12 = vadd.f32 %v2106_v35, %v5419_v22  ;;  %v2110_v22 = vsub.f32 1.0, %v4386_v32 }
0x2b9f   : > { %4387 = vtanh.f32 %v2108_v12 }
0x2ba9   : > { %v4388_v39 = vpop.eup %4387 }
0x2baa   : > { %2112 = vrot.lane.b32.xlu0 %v4388_v39, %s4809_s26 }
0x2c1c   : > { %v2113_v40 = vpop.permute.xlu0 %2112 }
0x2c1d   : > { %v2115_v42 = vmul.f32 %v2113_v40, %v2110_v22 }
0x2c1f   : > { %v2120_v43 = vadd.f32 %v2119_v41, %v2115_v42 }
0x2c21   : > { %v5526_v44 = vsel %vm2133_vm1, %v2132_v16, %v2120_v43 }
0x2c22   : > { %v2135_v45 = vpack.c.bf16 %v5526_v44, %v5526_v44 }
0x2c24   : > { %2148 = vrot.lane.b32.xlu1 %v2135_v45, %s4809_s26 }
0x2c96   : > { %v2149_v47 = vpop.permute.xlu1 %2148 }
0x2c97   : > { %3982 = vmatmul.mubr.msk.bf16.vlgmr.msra.gmra.mrb[36].mxu1 %vm727_vm2, %v2149_v47  ;;  %3990 = vmatmul.mubr.msk.bf16.vlgmr.msra.gmra.mrb[36].mxu0 %vm727_vm2, %v2149_v47 }
0x2c98   : > { %3994 = vmatpush3.bf16.msra.mxu1 %v4287_v46  ;;  %3997 = vmatprep.mubr.msk.bf16.mxu1 %vm4806_vm0, %v4805_v0 }
0x2c99   : > { %3995 = vmatprep.subr.bf16.mxu1 %v4805_v0  ;;  %4003 = vmatprep.mubr.msk.bf16.mxu0 %vm4806_vm0, %v4805_v0 }
0x2c9c   : > { %3996 = vmatpush3.bf16.msra.mxu1 %v4288_v48 }
0x2c9d   : > { %4007 = vmatprep.subr.bf16.mxu1 %v4805_v0 }
0x2c9f   : > { %3998 = vmatmul.mubr.msk.bf16.vlgmr.msra.gmra.mrb[40].mxu1 %vm727_vm2, %v2149_v47 }
0x2ca0   : > { %4009 = vmatprep.mubr.msk.bf16.mxu1 %vm4806_vm0, %v4805_v0 }
0x2d6a   : > { %v2199_v49 = vpop.f32.mrb[36].mxu1  ;;  %v2264_v50 = vpop.f32.mrb[36].mxu0 }
0x2d6b   : > { %v2265_v51 = vadd.f32 %v3693_v2, %v2264_v50  ;;  %v3983_v52 = vpop.f32.mrb[37].mxu1  ;;  %v3991_v4 = vpop.f32.mrb[37].mxu0  ;;  %v2200_v60 = vadd.f32 %v3689_v53, %v2199_v49 }
0x2d6c   : > { %v2202_v54 = vpop.f32.mrb[38].mxu1  ;;  %v2267_v55 = vpop.f32.mrb[38].mxu0 }
0x2d6d   : > { %v3984_v8 = vpop.f32.mrb[39].mxu1  ;;  %2369 = vrot.lane.b32.xlu1 %v2265_v51, %s4810_s14  ;;  %2366 = vrot.lane.b32.xlu0 %v2265_v51, %s4811_s29  ;;  %v3992_v56 = vpop.f32.mrb[39].mxu0  ;;  %v2387_v58 = vpack.c.bf16 %v2265_v51, %v2265_v51  ;;  %v2357_v3 = vpack.c.bf16 %v2200_v60, %v2200_v60 }
0x2d6f   : > { %v2430_v19 = vsel %vm2425_vm3, %v2387_v58, 0 }
0x2d70   : > { %4002 = vmatpush3.bf16.xpose.msra.mxu0 %v2430_v19 }
0x2d71   : > { %2372 = vrot.lane.b32.xlu1 %v2265_v51, %s4812_s25  ;;  %2336 = vrot.lane.b32.xlu0 %v2200_v60, %s4811_s29 }
0x2d72   : > { %v2329_v61 = vpop.f32.mrb[40].mxu1  ;;  %4013 = vmatprep.subr.bf16.mxu0 %v4805_v0 }
0x2d73   : > { %v3999_v62 = vpop.f32.mrb[41].mxu1  ;;  %v5575_v34 = vadd.f32 %v3697_v28, %v2329_v61 }
0x2d74   : > { %v2332_v63 = vpop.f32.mrb[42].mxu1 }
0x2d75   : > { %v4000_v1 = vpop.f32.mrb[43].mxu1  ;;  %2375 = vrot.lane.b32.xlu1 %v2265_v51, %s4813_s1  ;;  %2339 = vrot.lane.b32.xlu0 %v2200_v60, %s4810_s14  ;;  %v2417_v38 = vpack.c.bf16 %v5575_v34, %v5575_v34 }
0x2d77   : > { %4004 = vmatmul.mubr.msk.bf16.vlgmr.msra.gmra.mrb[40].mxu0 %vm2425_vm3, %v2357_v3  ;;  %v2903_v41 = vsel %vm2127_vm13, %v2417_v38, 0 }
0x2d78   : > { %4015 = vmatprep.mubr.msk.bf16.mxu0 %vm4806_vm0, %v4805_v0 }
0x2d79   : > { %2378 = vrot.lane.b32.xlu1 %v2265_v51, %s4814_s16  ;;  %2342 = vrot.lane.b32.xlu0 %v2200_v60, %s4812_s25 }
0x2d7d   : > { %2381 = vrot.lane.b32.xlu1 %v2265_v51, %s4815_s13  ;;  %2345 = vrot.lane.b32.xlu0 %v2200_v60, %s4813_s1 }
0x2d81   : > { %2384 = vrot.lane.b32.xlu1 %v2265_v51, %s4816_s30  ;;  %2348 = vrot.lane.b32.xlu0 %v2200_v60, %s4814_s16 }
0x2d85   : > { %2354 = vrot.lane.b32.xlu1 %v2200_v60, %s4816_s30  ;;  %2351 = vrot.lane.b32.xlu0 %v2200_v60, %s4815_s13 }
0x2ddf   : > { %v2370_v5 = vpop.permute.xlu1 %2369  ;;  %v2367_v6 = vpop.permute.xlu0 %2366 }
0x2de0   : > { %v2389_v7 = vpack.c.bf16 %v2370_v5, %v2370_v5  ;;  %v2388_v9 = vpack.c.bf16 %v2367_v6, %v2367_v6 }
0x2de2   : > { %v2522_v10 = vsel %vm2425_vm3, %v2389_v7, 0  ;;  %v2476_v11 = vsel %vm2425_vm3, %v2388_v9, 0 }
0x2de3   : > { %v2373_v13 = vpop.permute.xlu1 %2372  ;;  %4008 = vmatpush3.bf16.xpose.msra.mxu1 %v2476_v11  ;;  %v2337_v14 = vpop.permute.xlu0 %2336  ;;  %4014 = vmatpush3.bf16.xpose.msra.mxu0 %v2522_v10 }
0x2de4   : > { %4019 = vmatprep.subr.bf16.mxu1 %v4805_v0  ;;  %4025 = vmatprep.subr.bf16.mxu0 %v4805_v0  ;;  %v2390_v15 = vpack.c.bf16 %v2373_v13, %v2373_v13  ;;  %v2358_v18 = vpack.c.bf16 %v2337_v14, %v2337_v14 }
0x2de6   : > { %v2568_v23 = vsel %vm2425_vm3, %v2390_v15, 0 }
0x2de7   : > { %v2376_v16 = vpop.permute.xlu1 %2375  ;;  %v2340_v17 = vpop.permute.xlu0 %2339 }
0x2de8   : > { %v2391_v20 = vpack.c.bf16 %v2376_v16, %v2376_v16  ;;  %v2359_v21 = vpack.c.bf16 %v2340_v17, %v2340_v17 }
0x2dea   : > { %v2614_v24 = vsel %vm2425_vm3, %v2391_v20, 0  ;;  %4010 = vmatmul.mubr.msk.bf16.vlgmr.msra.gmra.mrb[44].mxu1 %vm2425_vm3, %v2358_v18  ;;  %4016 = vmatmul.mubr.msk.bf16.vlgmr.msra.gmra.mrb[44].mxu0 %vm2425_vm3, %v2359_v21 }
0x2deb   : > { %v2379_v25 = vpop.permute.xlu1 %2378  ;;  %4020 = vmatpush3.bf16.xpose.msra.mxu1 %v2568_v23  ;;  %v2343_v26 = vpop.permute.xlu0 %2342  ;;  %4026 = vmatpush3.bf16.xpose.msra.mxu0 %v2614_v24 }
0x2dec   : > { %4021 = vmatprep.mubr.msk.bf16.mxu1 %vm4806_vm0, %v4805_v0  ;;  %4027 = vmatprep.mubr.msk.bf16.mxu0 %vm4806_vm0, %v4805_v0  ;;  %v2392_v27 = vpack.c.bf16 %v2379_v25, %v2379_v25  ;;  %v2360_v31 = vpack.c.bf16 %v2343_v26, %v2343_v26 }
0x2ded   : > { %4031 = vmatprep.subr.bf16.mxu1 %v4805_v0  ;;  %4037 = vmatprep.subr.bf16.mxu0 %v4805_v0 }
0x2dee   : > { %v2660_v35 = vsel %vm2425_vm3, %v2392_v27, 0 }
0x2def   : > { %v2382_v29 = vpop.permute.xlu1 %2381  ;;  %v2346_v30 = vpop.permute.xlu0 %2345 }
0x2df0   : > { %v2393_v32 = vpack.c.bf16 %v2382_v29, %v2382_v29  ;;  %v2361_v33 = vpack.c.bf16 %v2346_v30, %v2346_v30 }
0x2df2   : > { %v2706_v12 = vsel %vm2425_vm3, %v2393_v32, 0  ;;  %4022 = vmatmul.mubr.msk.bf16.vlgmr.msra.gmra.mrb[48].mxu1 %vm2425_vm3, %v2360_v31  ;;  %4028 = vmatmul.mubr.msk.bf16.vlgmr.msra.gmra.mrb[48].mxu0 %vm2425_vm3, %v2361_v33 }
0x2df3   : > { %v2385_v57 = vpop.permute.xlu1 %2384  ;;  %4032 = vmatpush3.bf16.xpose.msra.mxu1 %v2660_v35  ;;  %v2349_v36 = vpop.permute.xlu0 %2348  ;;  %4038 = vmatpush3.bf16.xpose.msra.mxu0 %v2706_v12 }
0x2df4   : > { %4033 = vmatprep.mubr.msk.bf16.mxu1 %vm4806_vm0, %v4805_v0  ;;  %4039 = vmatprep.mubr.msk.bf16.mxu0 %vm4806_vm0, %v4805_v0  ;;  %v2394_v37 = vpack.c.bf16 %v2385_v57, %v2385_v57  ;;  %v2362_v22 = vpack.c.bf16 %v2349_v36, %v2349_v36 }
0x2df5   : > { %4043 = vmatprep.subr.bf16.mxu1 %v4805_v0  ;;  %4049 = vmatprep.subr.bf16.mxu0 %v4805_v0 }
0x2df6   : > { %v2752_v40 = vsel %vm2425_vm3, %v2394_v37, 0 }
0x2df7   : > { %v2352_v39 = vpop.permute.xlu0 %2351  ;;  %v2355_v42 = vpop.permute.xlu1 %2354 }
0x2df8   : > { %v2363_v59 = vpack.c.bf16 %v2352_v39, %v2352_v39  ;;  %v2364_v43 = vpack.c.bf16 %v2355_v42, %v2355_v42 }
0x2dfa   : > { %4034 = vmatmul.mubr.msk.bf16.vlgmr.msra.gmra.mrb[52].mxu1 %vm2425_vm3, %v2362_v22  ;;  %4040 = vmatmul.mubr.msk.bf16.vlgmr.msra.gmra.mrb[52].mxu0 %vm2425_vm3, %v2363_v59 }
0x2dfb   : > { %4044 = vmatpush3.bf16.xpose.msra.mxu1 %v2752_v40  ;;  %4050 = vmatpush3.bf16.msra.mxu0 %v2903_v41 }
0x2dfc   : > { %4045 = vmatprep.mubr.msk.bf16.mxu1 %vm4806_vm0, %v4805_v0  ;;  %4055 = vmatprep.subr.bf16.mxu1 %v4805_v0 }
0x2dfd   : > { %4051 = vmatprep.mubr.msk.bf16.mxu0 %vm4806_vm0, %v4805_v0  ;;  %4061 = vmatprep.subr.bf16.mxu0 %v4805_v0 }
0x2e02   : > { %4046 = vmatmul.mubr.msk.bf16.vlgmr.msra.gmra.mrb[56].mxu1 %vm2425_vm3, %v2364_v43 }
0x2e03   : > { %4057 = vmatprep.mubr.msk.bf16.mxu1 %vm4806_vm0, %v4805_v0 }
0x2e4a   : > { %v2466_v45 = vpop.f32.mrb[40].mxu0 }
0x2e4b   : > { %v2794_v46 = vmul.f32 0.5, %v2466_v45  ;;  %v4005_v47 = vpop.f32.mrb[41].mxu0 }
0x2e4c   : > { %v2469_v48 = vpop.f32.mrb[42].mxu0 }
0x2e4d   : > { %v4006_v2 = vpop.f32.mrb[43].mxu0  ;;  %v2803_v49 = vsel %vm2802_vm4, %v2794_v46, -inf }
0x2e4e   : > { %2804 = vmax.xlane.f32.xlu0 %v2803_v49 }
0x2ebd   : > { %v2512_v50 = vpop.f32.mrb[44].mxu1  ;;  %v2558_v51 = vpop.f32.mrb[44].mxu0 }
0x2ebe   : > { %v5603_v52 = vmul.f32 0.5, %v2512_v50  ;;  %v5605_v4 = vmul.f32 0.5, %v2558_v51  ;;  %v4011_v53 = vpop.f32.mrb[45].mxu1  ;;  %v4017_v54 = vpop.f32.mrb[45].mxu0 }
0x2ebf   : > { %v2515_v55 = vpop.f32.mrb[46].mxu1  ;;  %v2561_v8 = vpop.f32.mrb[46].mxu0 }
0x2ec0   : > { %v4012_v56 = vpop.f32.mrb[47].mxu1  ;;  %v4018_v58 = vpop.f32.mrb[47].mxu0  ;;  %v2806_v60 = vsel %vm2802_vm4, %v5603_v52, -inf  ;;  %v2809_v19 = vsel %vm2802_vm4, %v5605_v4, -inf }
0x2ec1   : > { %2807 = vmax.xlane.f32.xlu1 %v2806_v60  ;;  %2810 = vmax.xlane.f32.xlu0 %v2809_v19 }
0x2ec5   : > { %v2604_v61 = vpop.f32.mrb[48].mxu1  ;;  %v2650_v62 = vpop.f32.mrb[48].mxu0 }
0x2ec6   : > { %v2797_v63 = vmul.f32 0.5, %v2604_v61  ;;  %v2798_v1 = vmul.f32 0.5, %v2650_v62  ;;  %v4023_v3 = vpop.f32.mrb[49].mxu1  ;;  %v4029_v5 = vpop.f32.mrb[49].mxu0 }
0x2ec7   : > { %v2607_v6 = vpop.f32.mrb[50].mxu1  ;;  %v2653_v7 = vpop.f32.mrb[50].mxu0 }
0x2ec8   : > { %v4024_v9 = vpop.f32.mrb[51].mxu1  ;;  %v4030_v10 = vpop.f32.mrb[51].mxu0  ;;  %v2812_v11 = vsel %vm2802_vm4, %v2797_v63, -inf  ;;  %v2815_v13 = vsel %vm2802_vm4, %v2798_v1, -inf }
0x2ec9   : > { %2813 = vmax.xlane.f32.xlu0 %v2812_v11  ;;  %2816 = vmax.xlane.f32.xlu1 %v2815_v13 }
0x2ecd   : > { %v2696_v14 = vpop.f32.mrb[52].mxu1  ;;  %v2742_v15 = vpop.f32.mrb[52].mxu0 }
0x2ece   : > { %v2799_v16 = vmul.f32 0.5, %v2696_v14  ;;  %v2800_v17 = vmul.f32 0.5, %v2742_v15  ;;  %v4035_v18 = vpop.f32.mrb[53].mxu1  ;;  %v4041_v20 = vpop.f32.mrb[53].mxu0 }
0x2ecf   : > { %v2699_v21 = vpop.f32.mrb[54].mxu1  ;;  %v2745_v23 = vpop.f32.mrb[54].mxu0 }
0x2ed0   : > { %v4036_v24 = vpop.f32.mrb[55].mxu1  ;;  %v4042_v25 = vpop.f32.mrb[55].mxu0  ;;  %v2818_v26 = vsel %vm2802_vm4, %v2799_v16, -inf  ;;  %v2821_v27 = vsel %vm2802_vm4, %v2800_v17, -inf }
0x2ed1   : > { %2819 = vmax.xlane.f32.xlu0 %v2818_v26  ;;  %2822 = vmax.xlane.f32.xlu1 %v2821_v27 }
0x2ed5   : > { %v2788_v28 = vpop.f32.mrb[56].mxu1 }
0x2ed6   : > { %v2801_v29 = vmul.f32 0.5, %v2788_v28  ;;  %v4047_v30 = vpop.f32.mrb[57].mxu1 }
0x2ed7   : > { %v2791_v31 = vpop.f32.mrb[58].mxu1 }
0x2ed8   : > { %v4048_v32 = vpop.f32.mrb[59].mxu1  ;;  %v2824_v33 = vsel %vm2802_vm4, %v2801_v29, -inf }
0x2ed9   : > { %2825 = vmax.xlane.f32.xlu0 %v2824_v33 }
0x2edb   : > { %v2805_v35 = vpop.xlane.xlu0 %2804 }
0x2edc   : > { %v2827_v12 = vsub.f32 %v2794_v46, %v2805_v35 }
0x2ede   : > { %v2835_v57 = vmul.f32 1.442695, %v2827_v12 }
0x2ee0   : > { %4389 = vpow2.f32 %v2835_v57 }
0x2ee2   : > { %2396 = vrot.lane.b32.xlu1 %v5575_v34, %s4811_s29  ;;  %s5844_s29 = sld [smem:[#allocation33_spill]] }
0x2ee6   : > { %2402 = vrot.lane.b32.xlu1 %v5575_v34, %s4812_s25  ;;  %s4819_s25 = smov 12  }
0x2eea   : > { %2405 = vrot.lane.b32.xlu1 %v5575_v34, %s4813_s1  ;;  %v5624_v36 = vpop.eup %4389  ;;  %s4820_s1 = smov 16  }
0x2eeb   : > { %v2851_v37 = vsel %vm2802_vm4, %v5624_v36, 0.0 }
0x2eef   : > { %2399 = vrot.lane.b32.xlu0 %v5575_v34, %s4810_s14  ;;  %s3726_s14 = sshll.u32 %s4927_s24, 7 }
0x2f0e   : > { %2852 = vadd.xlane.f32.xlu1 %v2851_v37 }
0x2f1f   : > { %2408 = vrot.lane.b32.xlu1 %v5575_v34, %s4814_s16 }
0x2f4e   : > { %v2808_v38 = vpop.xlane.xlu1 %2807  ;;  %v2811_v39 = vpop.xlane.xlu0 %2810 }
0x2f4f   : > { %v2828_v22 = vsub.f32 %v5603_v52, %v2808_v38  ;;  %v2829_v59 = vsub.f32 %v5605_v4, %v2811_v39 }
0x2f51   : > { %v2837_v40 = vmul.f32 1.442695, %v2828_v22  ;;  %v2839_v41 = vmul.f32 1.442695, %v2829_v59 }
0x2f53   : > { %4391 = vpow2.f32 %v2837_v40 }
0x2f54   : > { %4393 = vpow2.f32 %v2839_v41 }
0x2f56   : > { %v2814_v42 = vpop.xlane.xlu0 %2813  ;;  %v2817_v43 = vpop.xlane.xlu1 %2816 }
0x2f57   : > { %v2830_v45 = vsub.f32 %v2797_v63, %v2814_v42  ;;  %v2831_v46 = vsub.f32 %v2798_v1, %v2817_v43 }
0x2f59   : > { %v2841_v47 = vmul.f32 1.442695, %v2830_v45  ;;  %v2843_v48 = vmul.f32 1.442695, %v2831_v46 }
0x2f5b   : > { %4395 = vpow2.f32 %v2841_v47 }
0x2f5c   : > { %4397 = vpow2.f32 %v2843_v48 }
0x2f5d   : > { %v5632_v2 = vpop.eup %4391 }
0x2f5e   : > { %v5634_v49 = vpop.eup %4393  ;;  %v2820_v50 = vpop.xlane.xlu0 %2819  ;;  %v2854_v52 = vsel %vm2802_vm4, %v5632_v2, 0.0 }
0x2f5f   : > { %v2823_v51 = vpop.xlane.xlu1 %2822  ;;  %v2832_v4 = vsub.f32 %v2799_v16, %v2820_v50  ;;  %2855 = vadd.xlane.f32.xlu0 %v2854_v52  ;;  %v2857_v54 = vsel %vm2802_vm4, %v5634_v49, 0.0 }
0x2f60   : > { %v2833_v53 = vsub.f32 %v2800_v17, %v2823_v51  ;;  %2858 = vadd.xlane.f32.xlu1 %v2857_v54 }
0x2f61   : > { %v2845_v55 = vmul.f32 1.442695, %v2832_v4 }
0x2f62   : > { %v2847_v8 = vmul.f32 1.442695, %v2833_v53 }
0x2f63   : > { %v2397_v56 = vpop.permute.xlu1 %2396  ;;  %4399 = vpow2.f32 %v2845_v55 }
0x2f64   : > { %v2418_v58 = vpack.c.bf16 %v2397_v56, %v2397_v56  ;;  %4401 = vpow2.f32 %v2847_v8 }
0x2f65   : > { %v5640_v60 = vpop.eup %4395 }
0x2f66   : > { %v2949_v19 = vsel %vm2127_vm13, %v2418_v58, 0  ;;  %v5643_v61 = vpop.eup %4397  ;;  %v2826_v62 = vpop.xlane.xlu0 %2825  ;;  %v2860_v63 = vsel %vm2802_vm4, %v5640_v60, 0.0 }
0x2f67   : > { %4056 = vmatpush3.bf16.msra.mxu1 %v2949_v19  ;;  %v2834_v1 = vsub.f32 %v2801_v29, %v2826_v62  ;;  %2861 = vadd.xlane.f32.xlu0 %v2860_v63  ;;  %v2863_v3 = vsel %vm2802_vm4, %v5643_v61, 0.0  ;;  %v2403_v14 = vpop.permute.xlu1 %2402 }
0x2f68   : > { %4067 = vmatprep.subr.bf16.mxu1 %v4805_v0  ;;  %2864 = vadd.xlane.f32.xlu1 %v2863_v3  ;;  %v2420_v31 = vpack.c.bf16 %v2403_v14, %v2403_v14 }
0x2f69   : > { %v2849_v5 = vmul.f32 1.442695, %v2834_v1 }
0x2f6a   : > { %v2400_v17 = vpop.permute.xlu0 %2399 }
0x2f6b   : > { %4403 = vpow2.f32 %v2849_v5  ;;  %v2406_v15 = vpop.permute.xlu1 %2405  ;;  %v2419_v20 = vpack.c.bf16 %v2400_v17, %v2400_v17 }
0x2f6c   : > { %v2421_v33 = vpack.c.bf16 %v2406_v15, %v2406_v15  ;;  %v4289_v15 = vld [vmem:[%s5844_s29] sm:$0xff]  }
0x2f6d   : > { %v5650_v6 = vpop.eup %4399  ;;  %v2995_v24 = vsel %vm2127_vm13, %v2419_v20, 0 }
0x2f6e   : > { %v2866_v7 = vsel %vm2802_vm4, %v5650_v6, 0.0  ;;  %v5654_v9 = vpop.eup %4401  ;;  %v3087_v38 = vsel %vm2127_vm13, %v2421_v33, 0 }
0x2f6f   : > { %2867 = vadd.xlane.f32.xlu0 %v2866_v7  ;;  %v2869_v10 = vsel %vm2802_vm4, %v5654_v9, 0.0 }
0x2f73   : > { %2870 = vadd.xlane.f32.xlu0 %v2869_v10 }
0x2f75   : > { %v5658_v11 = vpop.eup %4403 }
0x2f76   : > { %v2872_v13 = vsel %vm2802_vm4, %v5658_v11, 0.0 }
0x2f77   : > { %2873 = vadd.xlane.f32.xlu0 %v2872_v13 }
0x2f79   : > { %2411 = vrot.lane.b32.xlu1 %v5575_v34, %s4815_s13  ;;  %s4824_s13 = smov 32  }
0x2f8d   : > { %2414 = vrot.lane.b32.xlu0 %v5575_v34, %s4816_s30  ;;  %s4821_s30 = smov 20  }
0x2f9b   : > { %v2853_v16 = vpop.xlane.xlu1 %2852 }
0x2f9c   : > { %4405 = vrcp.f32 %v2853_v16 }
0x2f9f   : > { %v2409_v34 = vpop.permute.xlu1 %2408 }
0x2fa0   : > { %v2422_v40 = vpack.c.bf16 %v2409_v34, %v2409_v34  ;;  %v4290_v34 = vld [vmem:[%s5844_s29 + $0x8] sm:$0xff]  }
0x2fa2   : > { %v3133_v48 = vsel %vm2127_vm13, %v2422_v40, 0 }
0x2fa6   : > { %v4406_v18 = vpop.eup %4405 }
0x2fa7   : > { %v2883_v21 = vmul.f32 %v4406_v18, %v5624_v36  ;;  %v3041_v36 = vsel %vm2127_vm13, %v2420_v31, 0 }
0x2fa9   : > { %v2891_v23 = vpack.c.bf16 %v2883_v21, %v2883_v21 }
0x2fab   : > { %4052 = vmatmul.mubr.msk.bf16.vlgmr.msra.gmra.mrb[56].mxu0 %vm2802_vm4, %v2891_v23 }
0x2fac   : > { %4062 = vmatpush3.bf16.msra.mxu0 %v2995_v24  ;;  %4063 = vmatprep.mubr.msk.bf16.mxu0 %vm4806_vm0, %v4805_v0 }
0x2fad   : > { %4073 = vmatprep.subr.bf16.mxu0 %v4805_v0 }
0x2fec   : > { %v2856_v25 = vpop.xlane.xlu0 %2855 }
0x2fed   : > { %4407 = vrcp.f32 %v2856_v25  ;;  %v2859_v26 = vpop.xlane.xlu1 %2858 }
0x2fee   : > { %4409 = vrcp.f32 %v2859_v26 }
0x2ff4   : > { %v2862_v27 = vpop.xlane.xlu0 %2861 }
0x2ff5   : > { %4411 = vrcp.f32 %v2862_v27  ;;  %v2865_v28 = vpop.xlane.xlu1 %2864 }
0x2ff6   : > { %4413 = vrcp.f32 %v2865_v28 }
0x2ff7   : > { %v4408_v29 = vpop.eup %4407 }
0x2ff8   : > { %v4410_v30 = vpop.eup %4409  ;;  %v2884_v32 = vmul.f32 %v4408_v29, %v5632_v2 }
0x2ff9   : > { %v2885_v35 = vmul.f32 %v4410_v30, %v5634_v49  ;;  %v2412_v39 = vpop.permute.xlu1 %2411 }
0x2ffa   : > { %v2892_v12 = vpack.c.bf16 %v2884_v32, %v2884_v32  ;;  %v2423_v45 = vpack.c.bf16 %v2412_v39, %v2412_v39 }
0x2ffb   : > { %v2893_v57 = vpack.c.bf16 %v2885_v35, %v2885_v35 }
0x2ffc   : > { %v2868_v37 = vpop.xlane.xlu0 %2867  ;;  %4058 = vmatmul.mubr.msk.bf16.vlgmr.msra.gmra.mrb[60].mxu1 %vm2802_vm4, %v2892_v12  ;;  %v3179_v49 = vsel %vm2127_vm13, %v2423_v45, 0 }
0x2ffd   : > { %4415 = vrcp.f32 %v2868_v37  ;;  %4064 = vmatmul.mubr.msk.bf16.vlgmr.msra.gmra.mrb[60].mxu0 %vm2802_vm4, %v2893_v57  ;;  %4068 = vmatpush3.bf16.msra.mxu1 %v3041_v36 }
0x2ffe   : > { %4074 = vmatpush3.bf16.msra.mxu0 %v3087_v38  ;;  %4069 = vmatprep.mubr.msk.bf16.mxu1 %vm4806_vm0, %v4805_v0 }
0x2fff   : > { %v4412_v22 = vpop.eup %4411  ;;  %4075 = vmatprep.mubr.msk.bf16.mxu0 %vm4806_vm0, %v4805_v0  ;;  %4079 = vmatprep.subr.bf16.mxu1 %v4805_v0 }
0x3000   : > { %v4414_v59 = vpop.eup %4413  ;;  %v2886_v41 = vmul.f32 %v4412_v22, %v5640_v60  ;;  %v2871_v42 = vpop.xlane.xlu0 %2870  ;;  %4085 = vmatprep.subr.bf16.mxu0 %v4805_v0 }
0x3001   : > { %v2887_v43 = vmul.f32 %v4414_v59, %v5643_v61  ;;  %4417 = vrcp.f32 %v2871_v42 }
0x3002   : > { %v2894_v46 = vpack.c.bf16 %v2886_v41, %v2886_v41 }
0x3003   : > { %v2895_v47 = vpack.c.bf16 %v2887_v43, %v2887_v43 }
0x3004   : > { %v2874_v2 = vpop.xlane.xlu0 %2873  ;;  %4070 = vmatmul.mubr.msk.bf16.vlgmr.msra.gmra.mrb[64].mxu1 %vm2802_vm4, %v2894_v46 }
0x3005   : > { %4419 = vrcp.f32 %v2874_v2  ;;  %4076 = vmatmul.mubr.msk.bf16.vlgmr.msra.gmra.mrb[64].mxu0 %vm2802_vm4, %v2895_v47  ;;  %4080 = vmatpush3.bf16.msra.mxu1 %v3133_v48 }
0x3006   : > { %4086 = vmatpush3.bf16.msra.mxu0 %v3179_v49  ;;  %4081 = vmatprep.mubr.msk.bf16.mxu1 %vm4806_vm0, %v4805_v0 }
0x3007   : > { %v4416_v50 = vpop.eup %4415  ;;  %4091 = vmatprep.subr.bf16.mxu1 %v4805_v0  ;;  %4087 = vmatprep.mubr.msk.bf16.mxu0 %vm4806_vm0, %v4805_v0 }
0x3008   : > { %v2888_v51 = vmul.f32 %v4416_v50, %v5650_v6  ;;  %v2415_v52 = vpop.permute.xlu0 %2414  ;;  %4097 = vmatprep.subr.bf16.mxu0 %v4805_v0 }
0x3009   : > { %v2424_v4 = vpack.c.bf16 %v2415_v52, %v2415_v52 }
0x300a   : > { %v2896_v53 = vpack.c.bf16 %v2888_v51, %v2888_v51  ;;  %v3717_v51 = vld [vmem:[#allocation17] ss:$0 sm:$0xff] }
0x300b   : > { %v4418_v54 = vpop.eup %4417  ;;  %v3225_v55 = vsel %vm2127_vm13, %v2424_v4, 0 }
0x300c   : > { %v2889_v8 = vmul.f32 %v4418_v54, %v5654_v9  ;;  %4082 = vmatmul.mubr.msk.bf16.vlgmr.msra.gmra.mrb[68].mxu1 %vm2802_vm4, %v2896_v53 }
0x300d   : > { %4092 = vmatpush3.bf16.msra.mxu1 %v3225_v55  ;;  %4093 = vmatprep.mubr.msk.bf16.mxu1 %vm4806_vm0, %v4805_v0 }
0x300e   : > { %v2897_v56 = vpack.c.bf16 %v2889_v8, %v2889_v8  ;;  %4105 = vmatprep.subr.bf16.mxu1 %v4805_v0 }
0x300f   : > { %v4420_v58 = vpop.eup %4419 }
0x3010   : > { %v2890_v60 = vmul.f32 %v4420_v58, %v5658_v11  ;;  %4088 = vmatmul.mubr.msk.bf16.vlgmr.msra.gmra.mrb[68].mxu0 %vm2802_vm4, %v2897_v56 }
0x3011   : > { %4101 = vmatprep.mubr.msk.bf16.mxu0 %vm4806_vm0, %v4805_v0  ;;  %4098 = vmatpush3.bf16.msra.mxu0 %v4289_v15 }
0x3012   : > { %v2898_v19 = vpack.c.bf16 %v2890_v60, %v2890_v60  ;;  %4099 = vmatprep.subr.bf16.mxu0 %v4805_v0 }
0x3014   : > { %4094 = vmatmul.mubr.msk.bf16.vlgmr.msra.gmra.mrb[72].mxu1 %vm2802_vm4, %v2898_v19 }
0x3015   : > { %4109 = vmatprep.mubr.msk.bf16.mxu1 %vm4806_vm0, %v4805_v0  ;;  %4100 = vmatpush3.bf16.msra.mxu0 %v4290_v34  ;;  %vm3297_vm0 = vcmask 97280  }
0x307e   : > { %v2939_v61 = vpop.f32.mrb[56].mxu0 }
0x307f   : > { %v4053_v62 = vpop.f32.mrb[57].mxu0 }
0x3080   : > { %v2942_v63 = vpop.f32.mrb[58].mxu0 }
0x3081   : > { %v4054_v1 = vpop.f32.mrb[59].mxu0 }
0x30cf   : > { %v2985_v3 = vpop.f32.mrb[60].mxu1 }
0x30d0   : > { %v3031_v5 = vpop.f32.mrb[60].mxu0  ;;  %3268 = vrot.lane.b32.xlu1 %v2985_v3, %s4817_s17  ;;  %v4059_v6 = vpop.f32.mrb[61].mxu1  ;;  %s4822_s17 = smov 24  }
0x30d1   : > { %3272 = vrot.lane.b32.xlu0 %v3031_v5, %s4818_s11  ;;  %v4065_v7 = vpop.f32.mrb[61].mxu0  ;;  %v2988_v9 = vpop.f32.mrb[62].mxu1  ;;  %s4823_s11 = smov 28  }
0x30d2   : > { %v3034_v10 = vpop.f32.mrb[62].mxu0  ;;  %v4060_v11 = vpop.f32.mrb[63].mxu1 }
0x30d3   : > { %v4066_v13 = vpop.f32.mrb[63].mxu0 }
0x30d7   : > { %v3077_v14 = vpop.f32.mrb[64].mxu1 }
0x30d8   : > { %v3123_v16 = vpop.f32.mrb[64].mxu0  ;;  %3276 = vrot.lane.b32.xlu1 %v3077_v14, %s4819_s25  ;;  %v4071_v17 = vpop.f32.mrb[65].mxu1  ;;  %s5845_s25 = sld [smem:[#allocation34_spill]] }
0x30d9   : > { %3280 = vrot.lane.b32.xlu0 %v3123_v16, %s4820_s1  ;;  %v4077_v18 = vpop.f32.mrb[65].mxu0  ;;  %v3080_v20 = vpop.f32.mrb[66].mxu1 }
0x30da   : > { %v3126_v21 = vpop.f32.mrb[66].mxu0  ;;  %v4072_v23 = vpop.f32.mrb[67].mxu1 }
0x30db   : > { %v4078_v24 = vpop.f32.mrb[67].mxu0 }
0x30de   : > { %v4291_v49 = vld [vmem:[%s5845_s25] sm:$0xff]   ;;  %v4292_v50 = vld [vmem:[%s5845_s25 + $0x8] sm:$0xff]  }
0x30df   : > { %v3169_v25 = vpop.f32.mrb[68].mxu1  ;;  %4106 = vmatpush3.bf16.msra.mxu1 %v4291_v49 }
0x30e0   : > { %3284 = vrot.lane.b32.xlu1 %v3169_v25, %s4821_s30  ;;  %v4083_v26 = vpop.f32.mrb[69].mxu1  ;;  %4107 = vmatprep.subr.bf16.mxu1 %v4805_v0  ;;  %s3645_s30 = sshll.u32 %s5220_s5, 3  ;;  %v3721_v0 = vld [vmem:[%s5846_s3] ss:$0 sm:$0xff] }
0x30e1   : > { %v3172_v27 = vpop.f32.mrb[70].mxu1  ;;  %s632_s1 = scalar_lea.vmem [#allocation19], %s3645_s30  ;;  %s4825_s30 = smov [#allocation19]  }
0x30e2   : > { %v4084_v28 = vpop.f32.mrb[71].mxu1  ;;  %s3464_s16 = sshll.u32 %s632_s1, 4  ;;  %s5740_s16 = int_to_ptr.vmem [resolvable:$true] %s3464_s16 }
0x30e3   : > { %v3215_v29 = vpop.f32.mrb[68].mxu0  ;;  %4108 = vmatpush3.bf16.msra.mxu1 %v4292_v50  ;;  %s4703_s24 = scalar_lea.vmem %s5740_s16, 128 }
0x30e4   : > { %3288 = vrot.lane.b32.xlu0 %v3215_v29, %s4822_s17  ;;  %v4089_v30 = vpop.f32.mrb[69].mxu0  ;;  %s3451_s17 = scalar_lea.sflag [#allocation4], %s5220_s5  ;;  %p4704_p13 = scmp.ne.s32.totalorder %s5740_s16, %s4703_s24 }
0x30e5   : > { %v3218_v31 = vpop.f32.mrb[70].mxu0 }
0x30e6   : > { %v4090_v32 = vpop.f32.mrb[71].mxu0  ;;  %p4705_p2 = pnand %p4704_p13, %p5848_p0 }
0x30e7   : > { %v3261_v33 = vpop.f32.mrb[72].mxu1 }
0x30e8   : > { %3292 = vrot.lane.b32.xlu1 %v3261_v33, %s4823_s11  ;;  %v4095_v35 = vpop.f32.mrb[73].mxu1  ;;  %p4706_p3 = pneg %p4705_p2  ;;  %s4707_s11 = sshll.u32 %s4825_s30, 4  ;;  %s4708_s11 = int_to_ptr.vmem [resolvable:$false] %s4707_s11 }
0x30e9   : > { %v3264_v12 = vpop.f32.mrb[74].mxu1  ;;  %s4709_s0 = scalar_lea.vmem %s4708_s11, 256  ;;  %p4710_p6 = scmp.lt.s32.totalorder %s5740_s16, %s4708_s11 }
0x30ea   : > { %v4096_v57 = vpop.f32.mrb[75].mxu1  ;;  %p4711_p10 = scmp.lt.s32.totalorder %s4709_s0, %s4703_s24 }
0x30ec   : > { %p4712_p11 = por %p4711_p10, %p4710_p6 }
0x30ee   : > { %p4713_p8 = pnand %p4712_p11, %p4706_p3 }
0x3142   : > { %v3269_v36 = vpop.permute.xlu1 %3268 }
0x3143   : > { %v3273_v37 = vpop.permute.xlu0 %3272  ;;  %v3295_v38 = vsel %vm2425_vm3, %v2939_v61, %v3269_v36 }
0x3144   : > { %v3296_v59 = vsel %vm2802_vm4, %v3295_v38, %v3273_v37 }
0x314a   : > { %v3277_v39 = vpop.permute.xlu1 %3276 }
0x314b   : > { %v3281_v22 = vpop.permute.xlu0 %3280  ;;  %v3298_v40 = vsel %vm3297_vm0, %v3296_v59, %v3277_v39 }
0x314c   : > { %v3300_v43 = vsel %vm3299_vm5, %v3298_v40, %v3281_v22 }
0x3152   : > { %v3285_v41 = vpop.permute.xlu1 %3284 }
0x3153   : > { %v3302_v45 = vsel %vm3301_vm6, %v3300_v43, %v3285_v41 }
0x3156   : > { %v3289_v42 = vpop.permute.xlu0 %3288 }
0x3157   : > { %v3304_v46 = vsel %vm3303_vm7, %v3302_v45, %v3289_v42 }
0x315a   : > { %v3293_v47 = vpop.permute.xlu1 %3292 }
0x315b   : > { %v3306_v48 = vsel %vm3305_vm8, %v3304_v46, %v3293_v47 }
0x315c   : > { %v3307_v2 = vpack.c.bf16 %v3306_v48, %v3306_v48 }
0x315e   : > { %4102 = vmatmul.mubr.msk.bf16.vlgmr.msra.gmra.mrb[72].mxu0 %vm727_vm2, %v3307_v2 }
0x3231   : > { %v3368_v52 = vpop.f32.mrb[72].mxu0 }
0x3232   : > { %v3369_v4 = vadd.f32 %v3717_v51, %v3368_v52  ;;  %v4103_v53 = vpop.f32.mrb[73].mxu0 }
0x3233   : > { %v3371_v54 = vpop.f32.mrb[74].mxu0 }
0x3234   : > { %3375 = vrot.lane.b32.xlu0 %v3369_v4, %s4824_s13  ;;  %v4104_v55 = vpop.f32.mrb[75].mxu0 }
0x32a6   : > { %v3376_v8 = vpop.permute.xlu0 %3375 }
0x32a7   : > { %v3378_v56 = vadd.f32 %v3376_v8, %v5526_v44 }
0x32a9   : > { %v3379_v58 = vpack.c.bf16 %v3378_v56, %v3378_v56 }
0x32ab   : > { %3392 = vrot.lane.b32.xlu1 %v3379_v58, %s4809_s26  ;;  %s5738_s26 = scalar_lea.hbm %s5847_s2, %s3726_s14 }
0x331d   : > { %v3393_v60 = vpop.permute.xlu1 %3392 }
0x331e   : > { %4110 = vmatmul.mubr.msk.bf16.vlgmr.msra.gmra.mrb[76].mxu1 %vm727_vm2, %v3393_v60 }
0x33f1   : > { %v3443_v19 = vpop.f32.mrb[76].mxu1 }
0x33f2   : > { %v3444_v61 = vadd.f32 %v3721_v0, %v3443_v19  ;;  %v4111_v62 = vpop.f32.mrb[77].mxu1 }
0x33f3   : > { %v3446_v44 = vpop.f32.mrb[78].mxu1 }
0x33f4   : > { %3449 = vst [vmem:[%s632_s1] sm:$0xff] %v3444_v61  ;;  %v4112_v63 = vpop.f32.mrb[79].mxu1 }
0x33f5   : > { %4716 = shalt.err (!%p4713_p8)
}
0x33f6   : > { %s4717_s5 = scalar_lea.hbm %s5738_s26, 128  ;;  %s4721_s1 = scalar_lea.hbm %s5847_s2, 256 }
0x33f7   : > { %p4718_p5 = scmp.ne.s32.totalorder %s5738_s26, %s4717_s5  ;;  %p4722_p4 = scmp.lt.u32.totalorder %s5738_s26, %s5847_s2 }
0x33f8   : > { %p4723_p12 = scmp.lt.u32.totalorder %s4721_s1, %s4717_s5  ;;  %p4725_p13 = scmp.lt.u32.totalorder %s4717_s5, %s5738_s26 }
0x33f9   : > { %p4719_p9 = pnand %p4718_p5, %p5848_p0 }
0x33fa   : > { %p4724_p1 = por %p4723_p12, %p4722_p4 }
0x33fb   : > { %p4720_p7 = pneg %p4719_p9 }
0x33fc   : > { %p4726_p2 = por %p4725_p13, %p4724_p1 }
0x33fe   : > { %p4727_p3 = pnand %p4726_p2, %p4720_p7 }
0x3400   : > { %4730 = shalt.err (!%p4727_p3)
}
0x3401   : > { %4151 = dma.vmem_to_hbm [thread:$0]  (%p5848_p0), %s5740_s16, 128, %s5738_s26, %s3451_s17  }
0x3402 PF: > { %s3476_s24 = sand.u32 1, %s4777_s18   ;;  %p5849_p6 = scmp.ne.s32.totalorder %s5827_s23, 0 }
0x3403   : > { %p5850_p10 = scmp.ge.s32.totalorder %s4789_s21, 2  ;;  %s3477_s11 = scalar_lea.sflag [#allocation4], %s3476_s24 }
0x3405   : > { %p4186_p11 = pnand %p5850_p10, %p5849_p6 }
0x3407   : > { %4772 = dma.done.wait (!%p4186_p11), %s3477_s11, 128  }
0x3408   : > { %4774 = vsyncadd (!%p4186_p11), %s3477_s11, 4294967168  ;;  %p33_p8 = scmp.ge.s32.totalorder %s5150_s28, 4   ;;  %s5851_s18 = smov %s4781_s19 }
0x3409   : > { %s5852_s19 = smov %s4785_s20  ;;  %s5853_s20 = smov %s5162_s22 }
0x340a   : > { %s5854_s21 = smov %s5150_s28  ;;  %35 = sbr.rel (!%p33_p8) target bundleno = 20 (0x14), region = 165 }
0x3411   :  { %3482 = vsyncpa [#allocation3], 1 }
0x3412   :  { %3484 = vsyncpa [#allocation3 + $0x1], 1 }
0x3413   :  { %3485 = vsyncpa [#allocation6], 1 }
0x3414   :  { %3486 = vsyncpa [#allocation9], 1 }
0x3415   :  { %3487 = vsyncpa [#allocation12], 1 }
0x3416   :  { %3488 = vsyncpa [#allocation15], 1 }
0x3417   :  { %3489 = vsyncpa [#allocation18], 1 }
0x3418   :  { %3490 = vsyncpa [#allocation4], 1 }
0x3419   :  { %3492 = vsyncpa [#allocation4 + $0x1], 1 }

</bundles_post_ra>
